<compile_context>
chip_gen: v7x
topology: tpu7x:2x2x1
jax: 0.10.0
libtpu: 0.0.40
codegen_flags: <defaults>
</compile_context>

<pallas_src>
import functools
import math

import jax
import jax.numpy as jnp
from jax.experimental import pallas as pl
from jax.experimental.pallas import tpu as pltpu


# ----------------------------------------------------------------------------
# in-kernel helpers (fp32 element-wise math; bf16 only enters the MXU dots)
# ----------------------------------------------------------------------------
def _ln(x, w, b, eps=1e-6):
    # PyTorch nn.LayerNorm(eps=1e-6): biased variance over last dim.
    mu = jnp.mean(x, axis=-1, keepdims=True)
    var = jnp.mean(jnp.square(x - mu), axis=-1, keepdims=True)
    return (x - mu) * jax.lax.rsqrt(var + eps) * w + b


def _softmax(x):
    m = jnp.max(x, axis=-1, keepdims=True)
    e = jnp.exp(x - m)
    return e / jnp.sum(e, axis=-1, keepdims=True)   # exact divide (parity)


def _gelu(x):
    # TODO(synk): nn.GELU() default is exact erf; tanh approx (|err| ~ 3e-4).
    c = math.sqrt(2.0 / math.pi)
    return 0.5 * x * (1.0 + jnp.tanh(c * (x + 0.044715 * x * x * x)))


def _bf16(x):
    return x.astype(jnp.bfloat16)


def _rep(shape):
    """Full-array block, replicated across all grid points (any grid arity)."""
    nd = len(shape)
    return pl.BlockSpec(shape, lambda *_: (0,) * nd)


def _pick_row_tile(m, preferred=512):
    """Row tile that either divides M (multiple of 8) or equals M."""
    if m <= preferred:
        return m
    for t in (preferred, 256, 128, 64, 32, 16, 8):
        if m % t == 0:
            return t
    return m


# ----------------------------------------------------------------------------
# kernel 1: fused spec_embed (block mean over channels) + spat_map linear
#   x: (M, SPS*HW) natural row-major layout (M = B*NUM_TOKENS)
#   y: (M, D) = mean_s(x[:, s*HW:(s+1)*HW]) @ W + b     (1/sps folded into W)
# ----------------------------------------------------------------------------
def _spec_spat_kernel(x_ref, w_ref, b_ref, o_ref, *, sps, hw):
    x = x_ref[...]
    pooled = x[:, 0:hw]
    for s in range(1, sps):
        pooled = pooled + x[:, s * hw:(s + 1) * hw]
    o_ref[...] = (
        jnp.dot(_bf16(pooled), w_ref[...], preferred_element_type=jnp.float32)
        + b_ref[...]
    )


def pallas_spec_spat(x, w, b, *, sps, hw):
    m = x.shape[0]
    d = w.shape[1]
    tm = _pick_row_tile(m)
    return pl.pallas_call(
        functools.partial(_spec_spat_kernel, sps=sps, hw=hw),
        out_shape=jax.ShapeDtypeStruct((m, d), jnp.float32),
        grid=(m // tm,),
        in_specs=[
            pl.BlockSpec((tm, sps * hw), lambda i: (i, 0)),
            _rep((hw, d)),
            _rep((1, d)),
        ],
        out_specs=pl.BlockSpec((tm, d), lambda i: (i, 0)),
        compiler_params=pltpu.CompilerParams(dimension_semantics=("parallel",)),
    )(x, w, b)


# ----------------------------------------------------------------------------
# kernel 2: fused transformer stack
#   grid = (batch_chunks "parallel", layers "arbitrary")
#   per grid step: one pre-LN block (head-batched attention + MLP) on the
#   VMEM-resident (bc*N, D) slab; last layer also runs the fused final
#   LayerNorm + Linear epilogue and writes the output block.
# ----------------------------------------------------------------------------
def _stack_kernel(x_ref, vec_ref, bfc1_ref, wqkv_ref, wproj_ref, wfc1_ref,
                  wfc2_ref, fln_ref, fw_ref, fb_ref, o_ref, xr_ref,
                  *, num_heads, bc, n_tok):
    l = pl.program_id(1)
    n = n_tok
    nh = num_heads
    d = x_ref.shape[-1]
    r = bc * n

    # layer 0: load the resident activation slab (batch folded into rows)
    @pl.when(l == 0)
    def _():
        for i in range(bc):
            xr_ref[i * n:(i + 1) * n, :] = x_ref[i]

    x = xr_ref[...]                                   # (R, D) fp32

    vec = vec_ref[0]                                  # (6, D) packed vectors
    ln1w, ln1b = vec[0:1], vec[1:2]
    ln2w, ln2b = vec[2:3], vec[3:4]
    bproj, bfc2 = vec[4:5], vec[5:6]
    bfc1 = bfc1_ref[0]                                # (1, hid)

    # ---- attention (head-batched einsums; q scale folded into wqkv) -------
    h1 = _bf16(_ln(x, ln1w, ln1b))                    # (R, D) bf16
    h1h = jnp.broadcast_to(h1[None], (3 * nh, r, d))  # (3H, R, D)
    qkv = jnp.einsum('hrd,hed->hre', h1h, wqkv_ref[0],
                     preferred_element_type=jnp.float32)
    qkv = _bf16(qkv)                                  # (3H, R, hd)
    q, k, v = qkv[0:nh], qkv[nh:2 * nh], qkv[2 * nh:3 * nh]

    outs = []
    for i in range(bc):                               # attention per sample
        s0, s1 = i * n, (i + 1) * n
        s = jnp.einsum('hqe,hke->hqk', q[:, s0:s1], k[:, s0:s1],
                       preferred_element_type=jnp.float32)
        p = _softmax(s)                               # fp32 statistics
        outs.append(jnp.einsum('hqk,hke->hqe', _bf16(p), v[:, s0:s1],
                               preferred_element_type=jnp.float32))
    oh = outs[0] if bc == 1 else jnp.concatenate(outs, axis=1)   # (H, R, hd)

    # per-head projection, head reassembly = sum over the head axis
    proj = jnp.einsum('hre,hed->hrd', _bf16(oh), wproj_ref[0],
                      preferred_element_type=jnp.float32)        # (H, R, D)
    x = x + jnp.sum(proj, axis=0) + bproj

    # ---- MLP ---------------------------------------------------------------
    h2 = _bf16(_ln(x, ln2w, ln2b))
    h2 = jnp.dot(h2, wfc1_ref[0], preferred_element_type=jnp.float32) + bfc1
    h2 = _bf16(_gelu(h2))
    h2 = jnp.dot(h2, wfc2_ref[0], preferred_element_type=jnp.float32) + bfc2
    x = x + h2
    xr_ref[...] = x

    # ---- last layer: fused final LayerNorm + Linear epilogue ---------------
    @pl.when(l == pl.num_programs(1) - 1)
    def _():
        fln = fln_ref[...]                            # (2, D) = [weight; bias]
        h = _bf16(_ln(x, fln[0:1], fln[1:2]))
        y = (jnp.dot(h, fw_ref[...], preferred_element_type=jnp.float32)
             + fb_ref[...])
        for i in range(bc):
            o_ref[i] = y[i * n:(i + 1) * n, :]


def pallas_stack(x, sp, num_heads, *, max_chunks=2):
    b, n, d = x.shape
    depth = sp["vecs"].shape[0]
    hid = sp["wfc1"].shape[-1]
    hd = d // num_heads
    dout = sp["fin_w"].shape[-1]
    nc = max_chunks if (b >= max_chunks and b % max_chunks == 0) else 1
    bc = b // nc

    def lyr(block):
        zr = (0,) * (len(block) - 1)
        return pl.BlockSpec(block, lambda c, l: (l,) + zr)

    kern = functools.partial(_stack_kernel, num_heads=num_heads, bc=bc, n_tok=n)
    return pl.pallas_call(
        kern,
        out_shape=jax.ShapeDtypeStruct((b, n, dout), jnp.float32),
        grid=(nc, depth),
        in_specs=[
            pl.BlockSpec((bc, n, d), lambda c, l: (c, 0, 0)),
            lyr((1, 6, d)),                      # [ln1w,ln1b,ln2w,ln2b,bproj,bfc2]
            lyr((1, 1, hid)),                    # fc1 bias
            lyr((1, 3 * num_heads, hd, d)),      # per-head q/k/v weights (scaled q)
            lyr((1, num_heads, hd, d)),          # per-head output projection
            lyr((1, d, hid)),                    # fc1
            lyr((1, hid, d)),                    # fc2
            _rep((2, d)),                        # final LN [w; b]
            _rep((d, dout)),                     # final Linear weight
            _rep((1, dout)),                     # final Linear bias
        ],
        out_specs=pl.BlockSpec((bc, n, dout), lambda c, l: (c, 0, 0)),
        scratch_shapes=[pltpu.VMEM((bc * n, d), jnp.float32)],
        compiler_params=pltpu.CompilerParams(
            dimension_semantics=("parallel", "arbitrary"),
        ),
    )(x, sp["vecs"], sp["bfc1"], sp["wqkv"], sp["wproj"], sp["wfc1"],
      sp["wfc2"], sp["fin_ln"], sp["fin_w"], sp["fin_b"])


# ----------------------------------------------------------------------------
# kernel 3: masked MSE loss, row-tiled reduction:
#   loss = sum(mean_feat((pred-target)^2) * mask) / sum(mask)
#   partial sums kept column-wise; cross-lane reduce + exact divide at the end
# ----------------------------------------------------------------------------
def _loss_kernel(pred_ref, tgt_ref, mask_ref, o_ref, num_ref, den_ref):
    @pl.when(pl.program_id(0) == 0)
    def _():
        num_ref[...] = jnp.zeros_like(num_ref)
        den_ref[...] = jnp.zeros_like(den_ref)

    diff = pred_ref[...] - tgt_ref[...]
    m = mask_ref[...]                                          # (tm, 1)
    num_ref[...] += jnp.sum(diff * diff * m, axis=0, keepdims=True)   # (1, P)
    den_ref[...] += jnp.sum(m, axis=0, keepdims=True)                 # (1, 1)

    @pl.when(pl.program_id(0) == pl.num_programs(0) - 1)
    def _():
        pf = float(num_ref.shape[-1])
        total = jnp.sum(num_ref[...], axis=-1, keepdims=True)
        o_ref[...] = total / (den_ref[...] * pf)               # exact divide


def pallas_loss(pred, target, mask):
    m, p = pred.shape
    tm = _pick_row_tile(m)
    out = pl.pallas_call(
        _loss_kernel,
        out_shape=jax.ShapeDtypeStruct((1, 1), jnp.float32),
        grid=(m // tm,),
        in_specs=[
            pl.BlockSpec((tm, p), lambda i: (i, 0)),
            pl.BlockSpec((tm, p), lambda i: (i, 0)),
            pl.BlockSpec((tm, 1), lambda i: (i, 0)),
        ],
        out_specs=pl.BlockSpec((1, 1), lambda i: (0, 0)),
        scratch_shapes=[
            pltpu.VMEM((1, p), jnp.float32),
            pltpu.VMEM((1, 1), jnp.float32),
        ],
        compiler_params=pltpu.CompilerParams(dimension_semantics=("arbitrary",)),
    )(pred, target, mask)
    return out[0, 0]


# ----------------------------------------------------------------------------
# parameter init (shapes from SpecMAE.__init__; synthetic values)
#   matmul weights stored pre-transposed / per-head and in bf16; LN params,
#   biases, mask token and pos-embed stay fp32.  q-scale and 1/sps folded in.
# ----------------------------------------------------------------------------
def init_params(key, cfg):
    d = cfg["embed_dim"]
    dd = cfg["dec_embed_dim"]
    hidden = int(d * cfg["mlp_ratio"])
    dhidden = int(dd * cfg["mlp_ratio"])
    hw = cfg["img_size"] ** 2
    nt = cfg["num_tokens"]
    sps = cfg["in_chans"] // nt
    pdim = sps * hw

    keys = iter(jax.random.split(key, 256))

    def tn(shape, std=0.02):
        return (
            std * jax.random.truncated_normal(next(keys), -2.0, 2.0, shape)
        ).astype(jnp.float32)

    def make_stack(dim, hid, heads, depth, fix_init):
        hd = dim // heads
        qscale = hd ** -0.5
        vecs, bfc1s, wqkvs, wprojs, wfc1s, wfc2s = [], [], [], [], [], []
        for i in range(depth):
            rescale = math.sqrt(2.0 * (i + 1)) if fix_init else 1.0
            vecs.append(jnp.stack([
                jnp.ones((dim,), jnp.float32),    # ln1_w
                jnp.zeros((dim,), jnp.float32),   # ln1_b
                jnp.ones((dim,), jnp.float32),    # ln2_w
                jnp.zeros((dim,), jnp.float32),   # ln2_b
                jnp.zeros((dim,), jnp.float32),   # proj bias
                jnp.zeros((dim,), jnp.float32),   # fc2 bias
            ]))
            bfc1s.append(jnp.zeros((1, hid), jnp.float32))
            wqkv_t = tn((3 * dim, dim))                       # torch (out,in), no bias
            wqkv_h = wqkv_t.reshape(3 * heads, hd, dim)       # [q0..qH,k0..kH,v0..vH]
            wqkv_h = wqkv_h.at[:heads].multiply(qscale)       # fold attention scale
            wqkvs.append(wqkv_h)
            wproj_t = tn((dim, dim)) / rescale                # fix_init_weight rescale
            wprojs.append(jnp.transpose(wproj_t).reshape(heads, hd, dim))
            wfc1s.append(jnp.transpose(tn((hid, dim))))
            wfc2s.append(jnp.transpose(tn((dim, hid)) / rescale))
        return dict(
            vecs=jnp.stack(vecs),                              # (L, 6, dim) f32
            bfc1=jnp.stack(bfc1s),                             # (L, 1, hid) f32
            wqkv=jnp.stack(wqkvs).astype(jnp.bfloat16),        # (L, 3H, hd, dim)
            wproj=jnp.stack(wprojs).astype(jnp.bfloat16),      # (L, H, hd, dim)
            wfc1=jnp.stack(wfc1s).astype(jnp.bfloat16),        # (L, dim, hid)
            wfc2=jnp.stack(wfc2s).astype(jnp.bfloat16),        # (L, hid, dim)
        )

    enc = make_stack(d, hidden, cfg["num_heads"], cfg["depth"], True)
    enc["fin_ln"] = jnp.stack(                                  # encoder norm
        [jnp.ones((d,), jnp.float32), jnp.zeros((d,), jnp.float32)])
    enc["fin_w"] = jnp.transpose(tn((dd, d))).astype(jnp.bfloat16)   # decoder_embed
    enc["fin_b"] = jnp.zeros((1, dd), jnp.float32)

    dec = make_stack(dd, dhidden, cfg["dec_num_heads"], cfg["dec_depth"], False)
    dec["fin_ln"] = jnp.stack(                                  # decoder_norm
        [jnp.ones((dd,), jnp.float32), jnp.zeros((dd,), jnp.float32)])
    dec["fin_w"] = jnp.transpose(tn((pdim, dd))).astype(jnp.bfloat16)  # decoder_pred
    dec["fin_b"] = jnp.zeros((1, pdim), jnp.float32)

    return dict(
        spat_w=(jnp.transpose(tn((d, hw))) * (1.0 / sps)).astype(jnp.bfloat16),
        spat_b=jnp.zeros((1, d), jnp.float32),
        enc=enc,
        dec=dec,
        mask_token=jnp.zeros((1, 1, dd), jnp.float32),
        dec_pos_embed=jnp.zeros((1, nt, dd), jnp.float32),
    )


# ----------------------------------------------------------------------------
# SpecMAE forward -> (loss, pred, mask)
# ----------------------------------------------------------------------------
def spec_mae_forward(params, imgs, noise_key, mask_ratio, cfg):
    B, C, H, W = imgs.shape
    nt = cfg["num_tokens"]
    sps = C // nt
    hw = H * W
    d = cfg["embed_dim"]
    dd = cfg["dec_embed_dim"]
    pdim = sps * hw

    # natural row-major token layout; identical to patchify(imgs) -> loss target
    x_flat = imgs.reshape(B * nt, sps * hw).astype(jnp.float32)

    # --- encoder ----------------------------------------------------------
    # patch_embed + AdaptiveAvgPool1d(NUM_TOKENS) + transpose + spat_map fused.
    x = pallas_spec_spat(x_flat, params["spat_w"], params["spat_b"], sps=sps, hw=hw)
    x = x.reshape(B, nt, d)

    # random_masking (glue: rand / argsort / gather)
    len_keep = int(nt * (1 - mask_ratio))
    noise = jax.random.uniform(noise_key, (B, nt), dtype=jnp.float32)
    ids_shuffle = jnp.argsort(noise, axis=1)
    ids_restore = jnp.argsort(ids_shuffle, axis=1)
    ids_keep = ids_shuffle[:, :len_keep]
    x = jnp.take_along_axis(x, ids_keep[:, :, None], axis=1)      # (B, keep, D)
    mask = jnp.ones((B, nt), jnp.float32).at[:, :len_keep].set(0.0)
    mask = jnp.take_along_axis(mask, ids_restore, axis=1)

    # fused: all encoder blocks + norm + decoder_embed  (one pallas_call)
    x = pallas_stack(x, params["enc"], cfg["num_heads"])          # (B, keep, DD)

    # --- decoder ----------------------------------------------------------
    mask_tokens = jnp.broadcast_to(params["mask_token"], (B, nt - len_keep, dd))
    x_ = jnp.concatenate([x, mask_tokens], axis=1)
    x_ = jnp.take_along_axis(x_, ids_restore[:, :, None], axis=1)
    x = x_ + params["dec_pos_embed"]

    # fused: all decoder blocks + decoder_norm + decoder_pred (one pallas_call)
    pred = pallas_stack(x, params["dec"], cfg["dec_num_heads"])   # (B, NT, pdim)

    # --- loss ---------------------------------------------------------------
    loss = pallas_loss(pred.reshape(B * nt, pdim), x_flat, mask.reshape(B * nt, 1))
    return loss, pred, mask


# ----------------------------------------------------------------------------
if __name__ == "__main__":
    cfg = dict(
        num_tokens=8,        # NUM_TOKENS
        img_size=16,         # HW = 256
        in_chans=16,         # spec_patch_size = 16 // 8 = 2
        embed_dim=128,
        depth=2,
        num_heads=4,
        mlp_ratio=4.0,
        dec_embed_dim=128,
        dec_depth=2,
        dec_num_heads=4,
    )
    key = jax.random.PRNGKey(0)
    pkey, ikey, mkey = jax.random.split(key, 3)
    params = init_params(pkey, cfg)
    imgs = jax.random.normal(
        ikey, (2, cfg["in_chans"], cfg["img_size"], cfg["img_size"]), jnp.float32
    )

    fwd = jax.jit(
        lambda p, x, k: spec_mae_forward(p, x, k, mask_ratio=0.75, cfg=cfg)
    )
    loss, pred, mask = fwd(params, imgs, mkey)
    jax.block_until_ready((loss, pred, mask))
    assert pred.shape == (2, cfg["num_tokens"], 2 * cfg["img_size"] ** 2)
    assert mask.shape == (2, cfg["num_tokens"])
    assert bool(jnp.isfinite(loss))
    print("KERNEL_OK")
</pallas_src>

<mosaic_0001>
module attributes {stable_mosaic.version = 11 : i64} {
  func.func @_spec_spat_kernel(%arg0: i32, %arg1: memref<16x512xf32, #tpu.memory_space<vmem>>, %arg2: memref<256x128xbf16, #tpu.memory_space<vmem>>, %arg3: memref<1x128xf32, #tpu.memory_space<vmem>>, %arg4: memref<16x128xf32, #tpu.memory_space<vmem>>) attributes {dimension_semantics = [#tpu.dimension_semantics<parallel>], iteration_bounds = array<i64: 1>, scalar_prefetch = 0 : i64, scratch_operands = 0 : i64, tpu.core_type = #tpu.core_type<tc>, window_params = [{transform_indices = @transform_0, window_bounds = array<i64: 16, 512>}, {pipeline_mode = #tpu.pipeline_mode<synchronous>, transform_indices = @transform_1, window_bounds = array<i64: 256, 128>}, {pipeline_mode = #tpu.pipeline_mode<synchronous>, transform_indices = @transform_2, window_bounds = array<i64: 1, 128>}, {transform_indices = @transform_3, window_bounds = array<i64: 16, 128>}]} {
    %c0 = arith.constant 0 : index
    %c0_0 = arith.constant 0 : index
    %0 = vector.load %arg1[%c0, %c0_0] : memref<16x512xf32, #tpu.memory_space<vmem>>, vector<16x512xf32>
    %1 = vector.extract_strided_slice %0 {offsets = [0, 0], sizes = [16, 256], strides = [1, 1]} : vector<16x512xf32> to vector<16x256xf32>
    %2 = vector.extract_strided_slice %0 {offsets = [0, 256], sizes = [16, 256], strides = [1, 1]} : vector<16x512xf32> to vector<16x256xf32>
    %3 = arith.addf %1, %2 : vector<16x256xf32>
    %4 = arith.truncf %3 : vector<16x256xf32> to vector<16x256xbf16>
    %c0_1 = arith.constant 0 : index
    %c0_2 = arith.constant 0 : index
    %5 = vector.load %arg2[%c0_1, %c0_2] : memref<256x128xbf16, #tpu.memory_space<vmem>>, vector<256x128xbf16>
    %cst = arith.constant dense<0.000000e+00> : vector<16x128xf32>
    %6 = tpu.matmul %4, %5, %cst {dimension_numbers = #tpu.dot_dimension_numbers<[1], [0], [0], [1], [0, 0, 1, 1], [], []>} : vector<16x256xbf16>, vector<256x128xbf16>, vector<16x128xf32> -> vector<16x128xf32>
    %c0_3 = arith.constant 0 : index
    %c0_4 = arith.constant 0 : index
    %7 = vector.load %arg3[%c0_3, %c0_4] : memref<1x128xf32, #tpu.memory_space<vmem>>, vector<1x128xf32>
    %8 = vector.broadcast %7 : vector<1x128xf32> to vector<16x128xf32>
    %9 = arith.addf %6, %8 : vector<16x128xf32>
    %c0_5 = arith.constant 0 : index
    %c0_6 = arith.constant 0 : index
    %10 = vector.load %arg4[%c0_5, %c0_6] : memref<16x128xf32, #tpu.memory_space<vmem>>, vector<16x128xf32>
    tpu.vector_store %arg4[%c0_5, %c0_6], %9 {strides = array<i32>} : memref<16x128xf32, #tpu.memory_space<vmem>>, vector<16x128xf32>,
    return
  }
  func.func @transform_0(%arg0: i32) -> (i32, i32) {
    %c0_i32 = arith.constant 0 : i32
    %c0_i32_0 = arith.constant 0 : i32
    return %arg0, %c0_i32 : i32, i32
  }
  func.func @transform_1(%arg0: i32) -> (i32, i32) {
    %c0_i32 = arith.constant 0 : i32
    %c0_i32_0 = arith.constant 0 : i32
    %c0_i32_1 = arith.constant 0 : i32
    return %c0_i32, %c0_i32_0 : i32, i32
  }
  func.func @transform_2(%arg0: i32) -> (i32, i32) {
    %c0_i32 = arith.constant 0 : i32
    %c0_i32_0 = arith.constant 0 : i32
    %c0_i32_1 = arith.constant 0 : i32
    return %c0_i32, %c0_i32_0 : i32, i32
  }
  func.func @transform_3(%arg0: i32) -> (i32, i32) {
    %c0_i32 = arith.constant 0 : i32
    %c0_i32_0 = arith.constant 0 : i32
    return %arg0, %c0_i32 : i32, i32
  }
}

module attributes {stable_mosaic.version = 11 : i64} {
  func.func @_stack_kernel(%arg0: i32, %arg1: i32, %arg2: memref<1x2x128xf32, #tpu.memory_space<vmem>>, %arg3: memref<1x6x128xf32, #tpu.memory_space<vmem>>, %arg4: memref<1x1x512xf32, #tpu.memory_space<vmem>>, %arg5: memref<1x12x32x128xbf16, #tpu.memory_space<vmem>>, %arg6: memref<1x4x32x128xbf16, #tpu.memory_space<vmem>>, %arg7: memref<1x128x512xbf16, #tpu.memory_space<vmem>>, %arg8: memref<1x512x128xbf16, #tpu.memory_space<vmem>>, %arg9: memref<2x128xf32, #tpu.memory_space<vmem>>, %arg10: memref<128x128xbf16, #tpu.memory_space<vmem>>, %arg11: memref<1x128xf32, #tpu.memory_space<vmem>>, %arg12: memref<1x2x128xf32, #tpu.memory_space<vmem>>, %arg13: memref<2x128xf32, #tpu.memory_space<vmem>>) attributes {dimension_semantics = [#tpu.dimension_semantics<parallel>, #tpu.dimension_semantics<arbitrary>], iteration_bounds = array<i64: 2, 2>, scalar_prefetch = 0 : i64, scratch_operands = 1 : i64, tpu.core_type = #tpu.core_type<tc>, window_params = [{transform_indices = @transform_0, window_bounds = array<i64: 1, 2, 128>}, {transform_indices = @transform_1, window_bounds = array<i64: 1, 6, 128>}, {transform_indices = @transform_2, window_bounds = array<i64: 1, 1, 512>}, {transform_indices = @transform_3, window_bounds = array<i64: 1, 12, 32, 128>}, {transform_indices = @transform_4, window_bounds = array<i64: 1, 4, 32, 128>}, {transform_indices = @transform_5, window_bounds = array<i64: 1, 128, 512>}, {transform_indices = @transform_6, window_bounds = array<i64: 1, 512, 128>}, {pipeline_mode = #tpu.pipeline_mode<synchronous>, transform_indices = @transform_7, window_bounds = array<i64: 2, 128>}, {pipeline_mode = #tpu.pipeline_mode<synchronous>, transform_indices = @transform_8, window_bounds = array<i64: 128, 128>}, {pipeline_mode = #tpu.pipeline_mode<synchronous>, transform_indices = @transform_9, window_bounds = array<i64: 1, 128>}, {transform_indices = @transform_10, window_bounds = array<i64: 1, 2, 128>}]} {
    %c0_i32 = arith.constant 0 : i32
    %0 = arith.cmpi eq, %arg1, %c0_i32 : i32
    %1 = arith.extui %0 : i1 to i32
    %c0_i32_0 = arith.constant 0 : i32
    %2 = arith.cmpi ne, %1, %c0_i32_0 : i32
    scf.if %2 {
      %c0_47 = arith.constant 0 : index
      %c0_48 = arith.constant 0 : index
      %c0_49 = arith.constant 0 : index
      %119 = vector.load %arg2[%c0_47, %c0_48, %c0_49] : memref<1x2x128xf32, #tpu.memory_space<vmem>>, vector<1x2x128xf32>
      %120 = vector.shape_cast %119 : vector<1x2x128xf32> to vector<2x128xf32>
      %c0_50 = arith.constant 0 : index
      %c0_51 = arith.constant 0 : index
      %121 = vector.load %arg13[%c0_50, %c0_51] : memref<2x128xf32, #tpu.memory_space<vmem>>, vector<2x128xf32>
      tpu.vector_store %arg13[%c0_50, %c0_51], %120 {strides = array<i32>} : memref<2x128xf32, #tpu.memory_space<vmem>>, vector<2x128xf32>,
    } else {
    }
    %c0 = arith.constant 0 : index
    %c0_1 = arith.constant 0 : index
    %3 = vector.load %arg13[%c0, %c0_1] : memref<2x128xf32, #tpu.memory_space<vmem>>, vector<2x128xf32>
    %c0_2 = arith.constant 0 : index
    %c0_3 = arith.constant 0 : index
    %c0_4 = arith.constant 0 : index
    %4 = vector.load %arg3[%c0_2, %c0_3, %c0_4] : memref<1x6x128xf32, #tpu.memory_space<vmem>>, vector<1x6x128xf32>
    %5 = vector.shape_cast %4 : vector<1x6x128xf32> to vector<6x128xf32>
    %6 = vector.extract_strided_slice %5 {offsets = [0, 0], sizes = [1, 128], strides = [1, 1]} : vector<6x128xf32> to vector<1x128xf32>
    %7 = vector.extract_strided_slice %5 {offsets = [1, 0], sizes = [1, 128], strides = [1, 1]} : vector<6x128xf32> to vector<1x128xf32>
    %8 = vector.extract_strided_slice %5 {offsets = [2, 0], sizes = [1, 128], strides = [1, 1]} : vector<6x128xf32> to vector<1x128xf32>
    %9 = vector.extract_strided_slice %5 {offsets = [3, 0], sizes = [1, 128], strides = [1, 1]} : vector<6x128xf32> to vector<1x128xf32>
    %10 = vector.extract_strided_slice %5 {offsets = [4, 0], sizes = [1, 128], strides = [1, 1]} : vector<6x128xf32> to vector<1x128xf32>
    %11 = vector.extract_strided_slice %5 {offsets = [5, 0], sizes = [1, 128], strides = [1, 1]} : vector<6x128xf32> to vector<1x128xf32>
    %c0_5 = arith.constant 0 : index
    %c0_6 = arith.constant 0 : index
    %c0_7 = arith.constant 0 : index
    %12 = vector.load %arg4[%c0_5, %c0_6, %c0_7] : memref<1x1x512xf32, #tpu.memory_space<vmem>>, vector<1x1x512xf32>
    %13 = vector.shape_cast %12 : vector<1x1x512xf32> to vector<1x512xf32>
    %cst = arith.constant dense<0.000000e+00> : vector<2xf32>
    %14 = vector.multi_reduction <add>, %3, %cst [1] : vector<2x128xf32> to vector<2xf32>
    %15 = vector.shape_cast %14 : vector<2xf32> to vector<2x1xf32>
    %cst_8 = arith.constant 1.280000e+02 : f32
    %16 = vector.broadcast %cst_8 : f32 to vector<2x1xf32>
    %17 = arith.divf %15, %16 : vector<2x1xf32>
    %18 = vector.broadcast %17 : vector<2x1xf32> to vector<2x128xf32>
    %19 = arith.subf %3, %18 : vector<2x128xf32>
    %20 = arith.mulf %19, %19 : vector<2x128xf32>
    %cst_9 = arith.constant dense<0.000000e+00> : vector<2xf32>
    %21 = vector.multi_reduction <add>, %20, %cst_9 [1] : vector<2x128xf32> to vector<2xf32>
    %22 = vector.shape_cast %21 : vector<2xf32> to vector<2x1xf32>
    %cst_10 = arith.constant 1.280000e+02 : f32
    %23 = vector.broadcast %cst_10 : f32 to vector<2x1xf32>
    %24 = arith.divf %22, %23 : vector<2x1xf32>
    %25 = vector.broadcast %17 : vector<2x1xf32> to vector<2x128xf32>
    %26 = arith.subf %3, %25 : vector<2x128xf32>
    %cst_11 = arith.constant 9.99999997E-7 : f32
    %27 = vector.broadcast %cst_11 : f32 to vector<2x1xf32>
    %28 = arith.addf %24, %27 : vector<2x1xf32>
    %29 = math.rsqrt %28 : vector<2x1xf32>
    %30 = vector.broadcast %29 : vector<2x1xf32> to vector<2x128xf32>
    %31 = arith.mulf %26, %30 : vector<2x128xf32>
    %32 = vector.broadcast %6 : vector<1x128xf32> to vector<2x128xf32>
    %33 = arith.mulf %31, %32 : vector<2x128xf32>
    %34 = vector.broadcast %7 : vector<1x128xf32> to vector<2x128xf32>
    %35 = arith.addf %33, %34 : vector<2x128xf32>
    %36 = arith.truncf %35 : vector<2x128xf32> to vector<2x128xbf16>
    %37 = vector.shape_cast %36 : vector<2x128xbf16> to vector<1x2x128xbf16>
    %38 = vector.shape_cast %37 : vector<1x2x128xbf16> to vector<1x2x128xbf16>
    %39 = vector.broadcast %38 : vector<1x2x128xbf16> to vector<12x2x128xbf16>
    %c0_12 = arith.constant 0 : index
    %c0_13 = arith.constant 0 : index
    %c0_14 = arith.constant 0 : index
    %c0_15 = arith.constant 0 : index
    %40 = vector.load %arg5[%c0_12, %c0_13, %c0_14, %c0_15] : memref<1x12x32x128xbf16, #tpu.memory_space<vmem>>, vector<1x12x32x128xbf16>
    %41 = vector.shape_cast %40 : vector<1x12x32x128xbf16> to vector<12x32x128xbf16>
    "tpu.trace_start"() <{level = 10 : i32, message = "hrd,hed->hre"}> : () -> ()
    %cst_16 = arith.constant dense<0.000000e+00> : vector<12x2x32xf32>
    %42 = tpu.matmul %39, %41, %cst_16 {dimension_numbers = #tpu.dot_dimension_numbers<[2], [2], [1], [1], [0, 0, 0, 1, 1, 1], [0], [0]>} : vector<12x2x128xbf16>, vector<12x32x128xbf16>, vector<12x2x32xf32> -> vector<12x2x32xf32>
    "tpu.trace_stop"() : () -> ()
    %43 = arith.truncf %42 : vector<12x2x32xf32> to vector<12x2x32xbf16>
    %44 = vector.extract_strided_slice %43 {offsets = [0, 0, 0], sizes = [4, 2, 32], strides = [1, 1, 1]} : vector<12x2x32xbf16> to vector<4x2x32xbf16>
    %45 = vector.extract_strided_slice %43 {offsets = [4, 0, 0], sizes = [4, 2, 32], strides = [1, 1, 1]} : vector<12x2x32xbf16> to vector<4x2x32xbf16>
    %46 = vector.extract_strided_slice %43 {offsets = [8, 0, 0], sizes = [4, 2, 32], strides = [1, 1, 1]} : vector<12x2x32xbf16> to vector<4x2x32xbf16>
    "tpu.trace_start"() <{level = 10 : i32, message = "hqe,hke->hqk"}> : () -> ()
    %cst_17 = arith.constant dense<0.000000e+00> : vector<4x2x2xf32>
    %47 = tpu.matmul %44, %45, %cst_17 {dimension_numbers = #tpu.dot_dimension_numbers<[2], [2], [1], [1], [0, 0, 0, 1, 1, 1], [0], [0]>} : vector<4x2x32xbf16>, vector<4x2x32xbf16>, vector<4x2x2xf32> -> vector<4x2x2xf32>
    "tpu.trace_stop"() : () -> ()
    %cst_18 = arith.constant dense<0xFF800000> : vector<4x2xf32>
    %48 = vector.multi_reduction <maximumf>, %47, %cst_18 [2] : vector<4x2x2xf32> to vector<4x2xf32>
    %49 = vector.shape_cast %48 : vector<4x2xf32> to vector<4x2x1xf32>
    %50 = vector.broadcast %49 : vector<4x2x1xf32> to vector<4x2x2xf32>
    %51 = arith.subf %47, %50 : vector<4x2x2xf32>
    %52 = math.exp %51 : vector<4x2x2xf32>
    %cst_19 = arith.constant dense<0.000000e+00> : vector<4x2xf32>
    %53 = vector.multi_reduction <add>, %52, %cst_19 [2] : vector<4x2x2xf32> to vector<4x2xf32>
    %54 = vector.shape_cast %53 : vector<4x2xf32> to vector<4x2x1xf32>
    %55 = vector.broadcast %54 : vector<4x2x1xf32> to vector<4x2x2xf32>
    %56 = arith.divf %52, %55 : vector<4x2x2xf32>
    %57 = arith.truncf %56 : vector<4x2x2xf32> to vector<4x2x2xbf16>
    "tpu.trace_start"() <{level = 10 : i32, message = "hqk,hke->hqe"}> : () -> ()
    %cst_20 = arith.constant dense<0.000000e+00> : vector<4x2x32xf32>
    %58 = tpu.matmul %57, %46, %cst_20 {dimension_numbers = #tpu.dot_dimension_numbers<[2], [1], [1], [2], [0, 0, 0, 1, 1, 2], [0], [0]>} : vector<4x2x2xbf16>, vector<4x2x32xbf16>, vector<4x2x32xf32> -> vector<4x2x32xf32>
    "tpu.trace_stop"() : () -> ()
    %59 = arith.truncf %58 : vector<4x2x32xf32> to vector<4x2x32xbf16>
    %c0_21 = arith.constant 0 : index
    %c0_22 = arith.constant 0 : index
    %c0_23 = arith.constant 0 : index
    %c0_24 = arith.constant 0 : index
    %60 = vector.load %arg6[%c0_21, %c0_22, %c0_23, %c0_24] : memref<1x4x32x128xbf16, #tpu.memory_space<vmem>>, vector<1x4x32x128xbf16>
    %61 = vector.shape_cast %60 : vector<1x4x32x128xbf16> to vector<4x32x128xbf16>
    "tpu.trace_start"() <{level = 10 : i32, message = "hre,hed->hrd"}> : () -> ()
    %cst_25 = arith.constant dense<0.000000e+00> : vector<4x2x128xf32>
    %62 = tpu.matmul %59, %61, %cst_25 {dimension_numbers = #tpu.dot_dimension_numbers<[2], [1], [1], [2], [0, 0, 0, 1, 1, 2], [0], [0]>} : vector<4x2x32xbf16>, vector<4x32x128xbf16>, vector<4x2x128xf32> -> vector<4x2x128xf32>
    "tpu.trace_stop"() : () -> ()
    %cst_26 = arith.constant dense<0.000000e+00> : vector<2x128xf32>
    %63 = vector.multi_reduction <add>, %62, %cst_26 [0] : vector<4x2x128xf32> to vector<2x128xf32>
    %64 = arith.addf %3, %63 : vector<2x128xf32>
    %65 = vector.broadcast %10 : vector<1x128xf32> to vector<2x128xf32>
    %66 = arith.addf %64, %65 : vector<2x128xf32>
    %cst_27 = arith.constant dense<0.000000e+00> : vector<2xf32>
    %67 = vector.multi_reduction <add>, %66, %cst_27 [1] : vector<2x128xf32> to vector<2xf32>
    %68 = vector.shape_cast %67 : vector<2xf32> to vector<2x1xf32>
    %cst_28 = arith.constant 1.280000e+02 : f32
    %69 = vector.broadcast %cst_28 : f32 to vector<2x1xf32>
    %70 = arith.divf %68, %69 : vector<2x1xf32>
    %71 = vector.broadcast %70 : vector<2x1xf32> to vector<2x128xf32>
    %72 = arith.subf %66, %71 : vector<2x128xf32>
    %73 = arith.mulf %72, %72 : vector<2x128xf32>
    %cst_29 = arith.constant dense<0.000000e+00> : vector<2xf32>
    %74 = vector.multi_reduction <add>, %73, %cst_29 [1] : vector<2x128xf32> to vector<2xf32>
    %75 = vector.shape_cast %74 : vector<2xf32> to vector<2x1xf32>
    %cst_30 = arith.constant 1.280000e+02 : f32
    %76 = vector.broadcast %cst_30 : f32 to vector<2x1xf32>
    %77 = arith.divf %75, %76 : vector<2x1xf32>
    %78 = vector.broadcast %70 : vector<2x1xf32> to vector<2x128xf32>
    %79 = arith.subf %66, %78 : vector<2x128xf32>
    %cst_31 = arith.constant 9.99999997E-7 : f32
    %80 = vector.broadcast %cst_31 : f32 to vector<2x1xf32>
    %81 = arith.addf %77, %80 : vector<2x1xf32>
    %82 = math.rsqrt %81 : vector<2x1xf32>
    %83 = vector.broadcast %82 : vector<2x1xf32> to vector<2x128xf32>
    %84 = arith.mulf %79, %83 : vector<2x128xf32>
    %85 = vector.broadcast %8 : vector<1x128xf32> to vector<2x128xf32>
    %86 = arith.mulf %84, %85 : vector<2x128xf32>
    %87 = vector.broadcast %9 : vector<1x128xf32> to vector<2x128xf32>
    %88 = arith.addf %86, %87 : vector<2x128xf32>
    %89 = arith.truncf %88 : vector<2x128xf32> to vector<2x128xbf16>
    %c0_32 = arith.constant 0 : index
    %c0_33 = arith.constant 0 : index
    %c0_34 = arith.constant 0 : index
    %90 = vector.load %arg7[%c0_32, %c0_33, %c0_34] : memref<1x128x512xbf16, #tpu.memory_space<vmem>>, vector<1x128x512xbf16>
    %91 = vector.shape_cast %90 : vector<1x128x512xbf16> to vector<128x512xbf16>
    %cst_35 = arith.constant dense<0.000000e+00> : vector<2x512xf32>
    %92 = tpu.matmul %89, %91, %cst_35 {dimension_numbers = #tpu.dot_dimension_numbers<[1], [0], [0], [1], [0, 0, 1, 1], [], []>} : vector<2x128xbf16>, vector<128x512xbf16>, vector<2x512xf32> -> vector<2x512xf32>
    %93 = vector.broadcast %13 : vector<1x512xf32> to vector<2x512xf32>
    %94 = arith.addf %92, %93 : vector<2x512xf32>
    %cst_36 = arith.constant 5.000000e-01 : f32
    %95 = vector.broadcast %cst_36 : f32 to vector<2x512xf32>
    %96 = arith.mulf %95, %94 : vector<2x512xf32>
    %cst_37 = arith.constant 4.471500e-02 : f32
    %97 = vector.broadcast %cst_37 : f32 to vector<2x512xf32>
    %98 = arith.mulf %97, %94 : vector<2x512xf32>
    %99 = arith.mulf %98, %94 : vector<2x512xf32>
    %100 = arith.mulf %99, %94 : vector<2x512xf32>
    %101 = arith.addf %94, %100 : vector<2x512xf32>
    %cst_38 = arith.constant 0.797884583 : f32
    %102 = vector.broadcast %cst_38 : f32 to vector<2x512xf32>
    %103 = arith.mulf %102, %101 : vector<2x512xf32>
    %104 = math.tanh %103 : vector<2x512xf32>
    %cst_39 = arith.constant 1.000000e+00 : f32
    %105 = vector.broadcast %cst_39 : f32 to vector<2x512xf32>
    %106 = arith.addf %105, %104 : vector<2x512xf32>
    %107 = arith.mulf %96, %106 : vector<2x512xf32>
    %108 = arith.truncf %107 : vector<2x512xf32> to vector<2x512xbf16>
    %c0_40 = arith.constant 0 : index
    %c0_41 = arith.constant 0 : index
    %c0_42 = arith.constant 0 : index
    %109 = vector.load %arg8[%c0_40, %c0_41, %c0_42] : memref<1x512x128xbf16, #tpu.memory_space<vmem>>, vector<1x512x128xbf16>
    %110 = vector.shape_cast %109 : vector<1x512x128xbf16> to vector<512x128xbf16>
    %cst_43 = arith.constant dense<0.000000e+00> : vector<2x128xf32>
    %111 = tpu.matmul %108, %110, %cst_43 {dimension_numbers = #tpu.dot_dimension_numbers<[1], [0], [0], [1], [0, 0, 1, 1], [], []>} : vector<2x512xbf16>, vector<512x128xbf16>, vector<2x128xf32> -> vector<2x128xf32>
    %112 = vector.broadcast %11 : vector<1x128xf32> to vector<2x128xf32>
    %113 = arith.addf %111, %112 : vector<2x128xf32>
    %114 = arith.addf %66, %113 : vector<2x128xf32>
    %c0_44 = arith.constant 0 : index
    %c0_45 = arith.constant 0 : index
    %115 = vector.load %arg13[%c0_44, %c0_45] : memref<2x128xf32, #tpu.memory_space<vmem>>, vector<2x128xf32>
    tpu.vector_store %arg13[%c0_44, %c0_45], %114 {strides = array<i32>} : memref<2x128xf32, #tpu.memory_space<vmem>>, vector<2x128xf32>,
    %c1_i32 = arith.constant 1 : i32
    %116 = arith.cmpi eq, %arg1, %c1_i32 : i32
    %117 = arith.extui %116 : i1 to i32
    %c0_i32_46 = arith.constant 0 : i32
    %118 = arith.cmpi ne, %117, %c0_i32_46 : i32
    scf.if %118 {
      %c0_47 = arith.constant 0 : index
      %c0_48 = arith.constant 0 : index
      %119 = vector.load %arg9[%c0_47, %c0_48] : memref<2x128xf32, #tpu.memory_space<vmem>>, vector<2x128xf32>
      %120 = vector.extract_strided_slice %119 {offsets = [0, 0], sizes = [1, 128], strides = [1, 1]} : vector<2x128xf32> to vector<1x128xf32>
      %121 = vector.extract_strided_slice %119 {offsets = [1, 0], sizes = [1, 128], strides = [1, 1]} : vector<2x128xf32> to vector<1x128xf32>
      %cst_49 = arith.constant dense<0.000000e+00> : vector<2xf32>
      %122 = vector.multi_reduction <add>, %114, %cst_49 [1] : vector<2x128xf32> to vector<2xf32>
      %123 = vector.shape_cast %122 : vector<2xf32> to vector<2x1xf32>
      %cst_50 = arith.constant 1.280000e+02 : f32
      %124 = vector.broadcast %cst_50 : f32 to vector<2x1xf32>
      %125 = arith.divf %123, %124 : vector<2x1xf32>
      %126 = vector.broadcast %125 : vector<2x1xf32> to vector<2x128xf32>
      %127 = arith.subf %114, %126 : vector<2x128xf32>
      %128 = arith.mulf %127, %127 : vector<2x128xf32>
      %cst_51 = arith.constant dense<0.000000e+00> : vector<2xf32>
      %129 = vector.multi_reduction <add>, %128, %cst_51 [1] : vector<2x128xf32> to vector<2xf32>
      %130 = vector.shape_cast %129 : vector<2xf32> to vector<2x1xf32>
      %cst_52 = arith.constant 1.280000e+02 : f32
      %131 = vector.broadcast %cst_52 : f32 to vector<2x1xf32>
      %132 = arith.divf %130, %131 : vector<2x1xf32>
      %133 = vector.broadcast %125 : vector<2x1xf32> to vector<2x128xf32>
      %134 = arith.subf %114, %133 : vector<2x128xf32>
      %cst_53 = arith.constant 9.99999997E-7 : f32
      %135 = vector.broadcast %cst_53 : f32 to vector<2x1xf32>
      %136 = arith.addf %132, %135 : vector<2x1xf32>
      %137 = math.rsqrt %136 : vector<2x1xf32>
      %138 = vector.broadcast %137 : vector<2x1xf32> to vector<2x128xf32>
      %139 = arith.mulf %134, %138 : vector<2x128xf32>
      %140 = vector.broadcast %120 : vector<1x128xf32> to vector<2x128xf32>
      %141 = arith.mulf %139, %140 : vector<2x128xf32>
      %142 = vector.broadcast %121 : vector<1x128xf32> to vector<2x128xf32>
      %143 = arith.addf %141, %142 : vector<2x128xf32>
      %144 = arith.truncf %143 : vector<2x128xf32> to vector<2x128xbf16>
      %c0_54 = arith.constant 0 : index
      %c0_55 = arith.constant 0 : index
      %145 = vector.load %arg10[%c0_54, %c0_55] : memref<128x128xbf16, #tpu.memory_space<vmem>>, vector<128x128xbf16>
      %cst_56 = arith.constant dense<0.000000e+00> : vector<2x128xf32>
      %146 = tpu.matmul %144, %145, %cst_56 {dimension_numbers = #tpu.dot_dimension_numbers<[1], [0], [0], [1], [0, 0, 1, 1], [], []>} : vector<2x128xbf16>, vector<128x128xbf16>, vector<2x128xf32> -> vector<2x128xf32>
      %c0_57 = arith.constant 0 : index
      %c0_58 = arith.constant 0 : index
      %147 = vector.load %arg11[%c0_57, %c0_58] : memref<1x128xf32, #tpu.memory_space<vmem>>, vector<1x128xf32>
      %148 = vector.broadcast %147 : vector<1x128xf32> to vector<2x128xf32>
      %149 = arith.addf %146, %148 : vector<2x128xf32>
      %c0_59 = arith.constant 0 : index
      %c0_60 = arith.constant 0 : index
      %c0_61 = arith.constant 0 : index
      %150 = vector.load %arg12[%c0_59, %c0_60, %c0_61] : memref<1x2x128xf32, #tpu.memory_space<vmem>>, vector<1x2x128xf32>
      %151 = vector.shape_cast %150 : vector<1x2x128xf32> to vector<2x128xf32>
      %152 = vector.shape_cast %149 : vector<2x128xf32> to vector<1x2x128xf32>
      tpu.vector_store %arg12[%c0_59, %c0_60, %c0_61], %152 {strides = array<i32>} : memref<1x2x128xf32, #tpu.memory_space<vmem>>, vector<1x2x128xf32>,
    } else {
    }
    return
  }
  func.func @transform_0(%arg0: i32, %arg1: i32) -> (i32, i32, i32) {
    %c0_i32 = arith.constant 0 : i32
    %c0_i32_0 = arith.constant 0 : i32
    %c0_i32_1 = arith.constant 0 : i32
    return %arg0, %c0_i32, %c0_i32_0 : i32, i32, i32
  }
  func.func @transform_1(%arg0: i32, %arg1: i32) -> (i32, i32, i32) {
    %c0_i32 = arith.constant 0 : i32
    %c0_i32_0 = arith.constant 0 : i32
    %c0_i32_1 = arith.constant 0 : i32
    return %arg1, %c0_i32, %c0_i32_0 : i32, i32, i32
  }
  func.func @transform_2(%arg0: i32, %arg1: i32) -> (i32, i32, i32) {
    %c0_i32 = arith.constant 0 : i32
    %c0_i32_0 = arith.constant 0 : i32
    %c0_i32_1 = arith.constant 0 : i32
    return %arg1, %c0_i32, %c0_i32_0 : i32, i32, i32
  }
  func.func @transform_3(%arg0: i32, %arg1: i32) -> (i32, i32, i32, i32) {
    %c0_i32 = arith.constant 0 : i32
    %c0_i32_0 = arith.constant 0 : i32
    %c0_i32_1 = arith.constant 0 : i32
    %c0_i32_2 = arith.constant 0 : i32
    return %arg1, %c0_i32, %c0_i32_0, %c0_i32_1 : i32, i32, i32, i32
  }
  func.func @transform_4(%arg0: i32, %arg1: i32) -> (i32, i32, i32, i32) {
    %c0_i32 = arith.constant 0 : i32
    %c0_i32_0 = arith.constant 0 : i32
    %c0_i32_1 = arith.constant 0 : i32
    %c0_i32_2 = arith.constant 0 : i32
    return %arg1, %c0_i32, %c0_i32_0, %c0_i32_1 : i32, i32, i32, i32
  }
  func.func @transform_5(%arg0: i32, %arg1: i32) -> (i32, i32, i32) {
    %c0_i32 = arith.constant 0 : i32
    %c0_i32_0 = arith.constant 0 : i32
    %c0_i32_1 = arith.constant 0 : i32
    return %arg1, %c0_i32, %c0_i32_0 : i32, i32, i32
  }
  func.func @transform_6(%arg0: i32, %arg1: i32) -> (i32, i32, i32) {
    %c0_i32 = arith.constant 0 : i32
    %c0_i32_0 = arith.constant 0 : i32
    %c0_i32_1 = arith.constant 0 : i32
    return %arg1, %c0_i32, %c0_i32_0 : i32, i32, i32
  }
  func.func @transform_7(%arg0: i32, %arg1: i32) -> (i32, i32) {
    %c0_i32 = arith.constant 0 : i32
    %c0_i32_0 = arith.constant 0 : i32
    %c0_i32_1 = arith.constant 0 : i32
    return %c0_i32, %c0_i32_0 : i32, i32
  }
  func.func @transform_8(%arg0: i32, %arg1: i32) -> (i32, i32) {
    %c0_i32 = arith.constant 0 : i32
    %c0_i32_0 = arith.constant 0 : i32
    %c0_i32_1 = arith.constant 0 : i32
    return %c0_i32, %c0_i32_0 : i32, i32
  }
  func.func @transform_9(%arg0: i32, %arg1: i32) -> (i32, i32) {
    %c0_i32 = arith.constant 0 : i32
    %c0_i32_0 = arith.constant 0 : i32
    %c0_i32_1 = arith.constant 0 : i32
    return %c0_i32, %c0_i32_0 : i32, i32
  }
  func.func @transform_10(%arg0: i32, %arg1: i32) -> (i32, i32, i32) {
    %c0_i32 = arith.constant 0 : i32
    %c0_i32_0 = arith.constant 0 : i32
    %c0_i32_1 = arith.constant 0 : i32
    return %arg0, %c0_i32, %c0_i32_0 : i32, i32, i32
  }
}

module attributes {stable_mosaic.version = 11 : i64} {
  func.func @_loss_kernel(%arg0: i32, %arg1: memref<16x512xf32, #tpu.memory_space<vmem>>, %arg2: memref<16x512xf32, #tpu.memory_space<vmem>>, %arg3: memref<16x1xf32, #tpu.memory_space<vmem>>, %arg4: memref<1x1xf32, #tpu.memory_space<vmem>>, %arg5: memref<1x512xf32, #tpu.memory_space<vmem>>, %arg6: memref<1x1xf32, #tpu.memory_space<vmem>>) attributes {dimension_semantics = [#tpu.dimension_semantics<arbitrary>], iteration_bounds = array<i64: 1>, scalar_prefetch = 0 : i64, scratch_operands = 2 : i64, tpu.core_type = #tpu.core_type<tc>, window_params = [{transform_indices = @transform_0, window_bounds = array<i64: 16, 512>}, {transform_indices = @transform_1, window_bounds = array<i64: 16, 512>}, {transform_indices = @transform_2, window_bounds = array<i64: 16, 1>}, {pipeline_mode = #tpu.pipeline_mode<synchronous>, transform_indices = @transform_3, window_bounds = array<i64: 1, 1>}]} {
    %c0_i32 = arith.constant 0 : i32
    %0 = arith.cmpi eq, %arg0, %c0_i32 : i32
    %1 = arith.extui %0 : i1 to i32
    %c0_i32_0 = arith.constant 0 : i32
    %2 = arith.cmpi ne, %1, %c0_i32_0 : i32
    scf.if %2 {
      %cst_17 = arith.constant 0.000000e+00 : f32
      %23 = vector.broadcast %cst_17 : f32 to vector<1x512xf32>
      %c0_18 = arith.constant 0 : index
      %c0_19 = arith.constant 0 : index
      %24 = vector.load %arg5[%c0_18, %c0_19] : memref<1x512xf32, #tpu.memory_space<vmem>>, vector<1x512xf32>
      tpu.vector_store %arg5[%c0_18, %c0_19], %23 {strides = array<i32>} : memref<1x512xf32, #tpu.memory_space<vmem>>, vector<1x512xf32>,
      %cst_20 = arith.constant 0.000000e+00 : f32
      %25 = vector.broadcast %cst_20 : f32 to vector<1x1xf32>
      %c0_21 = arith.constant 0 : index
      %c0_22 = arith.constant 0 : index
      %26 = vector.load %arg6[%c0_21, %c0_22] : memref<1x1xf32, #tpu.memory_space<vmem>>, vector<1x1xf32>
      tpu.vector_store %arg6[%c0_21, %c0_22], %25 {strides = array<i32>} : memref<1x1xf32, #tpu.memory_space<vmem>>, vector<1x1xf32>,
    } else {
    }
    %c0 = arith.constant 0 : index
    %c0_1 = arith.constant 0 : index
    %3 = vector.load %arg1[%c0, %c0_1] : memref<16x512xf32, #tpu.memory_space<vmem>>, vector<16x512xf32>
    %c0_2 = arith.constant 0 : index
    %c0_3 = arith.constant 0 : index
    %4 = vector.load %arg2[%c0_2, %c0_3] : memref<16x512xf32, #tpu.memory_space<vmem>>, vector<16x512xf32>
    %5 = arith.subf %3, %4 : vector<16x512xf32>
    %c0_4 = arith.constant 0 : index
    %c0_5 = arith.constant 0 : index
    %6 = vector.load %arg3[%c0_4, %c0_5] : memref<16x1xf32, #tpu.memory_space<vmem>>, vector<16x1xf32>
    %c0_6 = arith.constant 0 : index
    %c0_7 = arith.constant 0 : index
    %7 = vector.load %arg5[%c0_6, %c0_7] : memref<1x512xf32, #tpu.memory_space<vmem>>, vector<1x512xf32>
    %8 = arith.mulf %5, %5 : vector<16x512xf32>
    %9 = vector.broadcast %6 : vector<16x1xf32> to vector<16x512xf32>
    %10 = arith.mulf %8, %9 : vector<16x512xf32>
    %cst = arith.constant dense<0.000000e+00> : vector<512xf32>
    %11 = vector.multi_reduction <add>, %10, %cst [0] : vector<16x512xf32> to vector<512xf32>
    %12 = vector.shape_cast %11 : vector<512xf32> to vector<1x512xf32>
    %13 = arith.addf %7, %12 : vector<1x512xf32>
    %c0_8 = arith.constant 0 : index
    %c0_9 = arith.constant 0 : index
    %14 = vector.load %arg5[%c0_8, %c0_9] : memref<1x512xf32, #tpu.memory_space<vmem>>, vector<1x512xf32>
    tpu.vector_store %arg5[%c0_8, %c0_9], %13 {strides = array<i32>} : memref<1x512xf32, #tpu.memory_space<vmem>>, vector<1x512xf32>,
    %c0_10 = arith.constant 0 : index
    %c0_11 = arith.constant 0 : index
    %15 = vector.load %arg6[%c0_10, %c0_11] : memref<1x1xf32, #tpu.memory_space<vmem>>, vector<1x1xf32>
    %cst_12 = arith.constant dense<0.000000e+00> : vector<1xf32>
    %16 = vector.multi_reduction <add>, %6, %cst_12 [0] : vector<16x1xf32> to vector<1xf32>
    %17 = vector.shape_cast %16 : vector<1xf32> to vector<1x1xf32>
    %18 = arith.addf %15, %17 : vector<1x1xf32>
    %c0_13 = arith.constant 0 : index
    %c0_14 = arith.constant 0 : index
    %19 = vector.load %arg6[%c0_13, %c0_14] : memref<1x1xf32, #tpu.memory_space<vmem>>, vector<1x1xf32>
    tpu.vector_store %arg6[%c0_13, %c0_14], %18 {strides = array<i32>} : memref<1x1xf32, #tpu.memory_space<vmem>>, vector<1x1xf32>,
    %c0_i32_15 = arith.constant 0 : i32
    %20 = arith.cmpi eq, %arg0, %c0_i32_15 : i32
    %21 = arith.extui %20 : i1 to i32
    %c0_i32_16 = arith.constant 0 : i32
    %22 = arith.cmpi ne, %21, %c0_i32_16 : i32
    scf.if %22 {
      %c0_17 = arith.constant 0 : index
      %c0_18 = arith.constant 0 : index
      %23 = vector.load %arg5[%c0_17, %c0_18] : memref<1x512xf32, #tpu.memory_space<vmem>>, vector<1x512xf32>
      %cst_19 = arith.constant dense<0.000000e+00> : vector<1xf32>
      %24 = vector.multi_reduction <add>, %23, %cst_19 [1] : vector<1x512xf32> to vector<1xf32>
      %25 = vector.shape_cast %24 : vector<1xf32> to vector<1x1xf32>
      %c0_20 = arith.constant 0 : index
      %c0_21 = arith.constant 0 : index
      %26 = vector.load %arg6[%c0_20, %c0_21] : memref<1x1xf32, #tpu.memory_space<vmem>>, vector<1x1xf32>
      %cst_22 = arith.constant 5.120000e+02 : f32
      %27 = vector.broadcast %cst_22 : f32 to vector<1x1xf32>
      %28 = arith.mulf %26, %27 : vector<1x1xf32>
      %29 = arith.divf %25, %28 : vector<1x1xf32>
      %c0_23 = arith.constant 0 : index
      %c0_24 = arith.constant 0 : index
      %30 = vector.load %arg4[%c0_23, %c0_24] : memref<1x1xf32, #tpu.memory_space<vmem>>, vector<1x1xf32>
      tpu.vector_store %arg4[%c0_23, %c0_24], %29 {strides = array<i32>} : memref<1x1xf32, #tpu.memory_space<vmem>>, vector<1x1xf32>,
    } else {
    }
    return
  }
  func.func @transform_0(%arg0: i32) -> (i32, i32) {
    %c0_i32 = arith.constant 0 : i32
    %c0_i32_0 = arith.constant 0 : i32
    return %arg0, %c0_i32 : i32, i32
  }
  func.func @transform_1(%arg0: i32) -> (i32, i32) {
    %c0_i32 = arith.constant 0 : i32
    %c0_i32_0 = arith.constant 0 : i32
    return %arg0, %c0_i32 : i32, i32
  }
  func.func @transform_2(%arg0: i32) -> (i32, i32) {
    %c0_i32 = arith.constant 0 : i32
    %c0_i32_0 = arith.constant 0 : i32
    return %arg0, %c0_i32 : i32, i32
  }
  func.func @transform_3(%arg0: i32) -> (i32, i32) {
    %c0_i32 = arith.constant 0 : i32
    %c0_i32_0 = arith.constant 0 : i32
    %c0_i32_1 = arith.constant 0 : i32
    return %c0_i32, %c0_i32_0 : i32, i32
  }
}

module attributes {stable_mosaic.version = 11 : i64} {
  func.func @_stack_kernel(%arg0: i32, %arg1: i32, %arg2: memref<1x8x128xf32, #tpu.memory_space<vmem>>, %arg3: memref<1x6x128xf32, #tpu.memory_space<vmem>>, %arg4: memref<1x1x512xf32, #tpu.memory_space<vmem>>, %arg5: memref<1x12x32x128xbf16, #tpu.memory_space<vmem>>, %arg6: memref<1x4x32x128xbf16, #tpu.memory_space<vmem>>, %arg7: memref<1x128x512xbf16, #tpu.memory_space<vmem>>, %arg8: memref<1x512x128xbf16, #tpu.memory_space<vmem>>, %arg9: memref<2x128xf32, #tpu.memory_space<vmem>>, %arg10: memref<128x512xbf16, #tpu.memory_space<vmem>>, %arg11: memref<1x512xf32, #tpu.memory_space<vmem>>, %arg12: memref<1x8x512xf32, #tpu.memory_space<vmem>>, %arg13: memref<8x128xf32, #tpu.memory_space<vmem>>) attributes {dimension_semantics = [#tpu.dimension_semantics<parallel>, #tpu.dimension_semantics<arbitrary>], iteration_bounds = array<i64: 2, 2>, scalar_prefetch = 0 : i64, scratch_operands = 1 : i64, tpu.core_type = #tpu.core_type<tc>, window_params = [{transform_indices = @transform_0, window_bounds = array<i64: 1, 8, 128>}, {transform_indices = @transform_1, window_bounds = array<i64: 1, 6, 128>}, {transform_indices = @transform_2, window_bounds = array<i64: 1, 1, 512>}, {transform_indices = @transform_3, window_bounds = array<i64: 1, 12, 32, 128>}, {transform_indices = @transform_4, window_bounds = array<i64: 1, 4, 32, 128>}, {transform_indices = @transform_5, window_bounds = array<i64: 1, 128, 512>}, {transform_indices = @transform_6, window_bounds = array<i64: 1, 512, 128>}, {pipeline_mode = #tpu.pipeline_mode<synchronous>, transform_indices = @transform_7, window_bounds = array<i64: 2, 128>}, {pipeline_mode = #tpu.pipeline_mode<synchronous>, transform_indices = @transform_8, window_bounds = array<i64: 128, 512>}, {pipeline_mode = #tpu.pipeline_mode<synchronous>, transform_indices = @transform_9, window_bounds = array<i64: 1, 512>}, {transform_indices = @transform_10, window_bounds = array<i64: 1, 8, 512>}]} {
    %c0_i32 = arith.constant 0 : i32
    %0 = arith.cmpi eq, %arg1, %c0_i32 : i32
    %1 = arith.extui %0 : i1 to i32
    %c0_i32_0 = arith.constant 0 : i32
    %2 = arith.cmpi ne, %1, %c0_i32_0 : i32
    scf.if %2 {
      %c0_47 = arith.constant 0 : index
      %c0_48 = arith.constant 0 : index
      %c0_49 = arith.constant 0 : index
      %119 = vector.load %arg2[%c0_47, %c0_48, %c0_49] : memref<1x8x128xf32, #tpu.memory_space<vmem>>, vector<1x8x128xf32>
      %120 = vector.shape_cast %119 : vector<1x8x128xf32> to vector<8x128xf32>
      %c0_50 = arith.constant 0 : index
      %c0_51 = arith.constant 0 : index
      %121 = vector.load %arg13[%c0_50, %c0_51] : memref<8x128xf32, #tpu.memory_space<vmem>>, vector<8x128xf32>
      tpu.vector_store %arg13[%c0_50, %c0_51], %120 {strides = array<i32>} : memref<8x128xf32, #tpu.memory_space<vmem>>, vector<8x128xf32>,
    } else {
    }
    %c0 = arith.constant 0 : index
    %c0_1 = arith.constant 0 : index
    %3 = vector.load %arg13[%c0, %c0_1] : memref<8x128xf32, #tpu.memory_space<vmem>>, vector<8x128xf32>
    %c0_2 = arith.constant 0 : index
    %c0_3 = arith.constant 0 : index
    %c0_4 = arith.constant 0 : index
    %4 = vector.load %arg3[%c0_2, %c0_3, %c0_4] : memref<1x6x128xf32, #tpu.memory_space<vmem>>, vector<1x6x128xf32>
    %5 = vector.shape_cast %4 : vector<1x6x128xf32> to vector<6x128xf32>
    %6 = vector.extract_strided_slice %5 {offsets = [0, 0], sizes = [1, 128], strides = [1, 1]} : vector<6x128xf32> to vector<1x128xf32>
    %7 = vector.extract_strided_slice %5 {offsets = [1, 0], sizes = [1, 128], strides = [1, 1]} : vector<6x128xf32> to vector<1x128xf32>
    %8 = vector.extract_strided_slice %5 {offsets = [2, 0], sizes = [1, 128], strides = [1, 1]} : vector<6x128xf32> to vector<1x128xf32>
    %9 = vector.extract_strided_slice %5 {offsets = [3, 0], sizes = [1, 128], strides = [1, 1]} : vector<6x128xf32> to vector<1x128xf32>
    %10 = vector.extract_strided_slice %5 {offsets = [4, 0], sizes = [1, 128], strides = [1, 1]} : vector<6x128xf32> to vector<1x128xf32>
    %11 = vector.extract_strided_slice %5 {offsets = [5, 0], sizes = [1, 128], strides = [1, 1]} : vector<6x128xf32> to vector<1x128xf32>
    %c0_5 = arith.constant 0 : index
    %c0_6 = arith.constant 0 : index
    %c0_7 = arith.constant 0 : index
    %12 = vector.load %arg4[%c0_5, %c0_6, %c0_7] : memref<1x1x512xf32, #tpu.memory_space<vmem>>, vector<1x1x512xf32>
    %13 = vector.shape_cast %12 : vector<1x1x512xf32> to vector<1x512xf32>
    %cst = arith.constant dense<0.000000e+00> : vector<8xf32>
    %14 = vector.multi_reduction <add>, %3, %cst [1] : vector<8x128xf32> to vector<8xf32>
    %15 = vector.shape_cast %14 : vector<8xf32> to vector<8x1xf32>
    %cst_8 = arith.constant 1.280000e+02 : f32
    %16 = vector.broadcast %cst_8 : f32 to vector<8x1xf32>
    %17 = arith.divf %15, %16 : vector<8x1xf32>
    %18 = vector.broadcast %17 : vector<8x1xf32> to vector<8x128xf32>
    %19 = arith.subf %3, %18 : vector<8x128xf32>
    %20 = arith.mulf %19, %19 : vector<8x128xf32>
    %cst_9 = arith.constant dense<0.000000e+00> : vector<8xf32>
    %21 = vector.multi_reduction <add>, %20, %cst_9 [1] : vector<8x128xf32> to vector<8xf32>
    %22 = vector.shape_cast %21 : vector<8xf32> to vector<8x1xf32>
    %cst_10 = arith.constant 1.280000e+02 : f32
    %23 = vector.broadcast %cst_10 : f32 to vector<8x1xf32>
    %24 = arith.divf %22, %23 : vector<8x1xf32>
    %25 = vector.broadcast %17 : vector<8x1xf32> to vector<8x128xf32>
    %26 = arith.subf %3, %25 : vector<8x128xf32>
    %cst_11 = arith.constant 9.99999997E-7 : f32
    %27 = vector.broadcast %cst_11 : f32 to vector<8x1xf32>
    %28 = arith.addf %24, %27 : vector<8x1xf32>
    %29 = math.rsqrt %28 : vector<8x1xf32>
    %30 = vector.broadcast %29 : vector<8x1xf32> to vector<8x128xf32>
    %31 = arith.mulf %26, %30 : vector<8x128xf32>
    %32 = vector.broadcast %6 : vector<1x128xf32> to vector<8x128xf32>
    %33 = arith.mulf %31, %32 : vector<8x128xf32>
    %34 = vector.broadcast %7 : vector<1x128xf32> to vector<8x128xf32>
    %35 = arith.addf %33, %34 : vector<8x128xf32>
    %36 = arith.truncf %35 : vector<8x128xf32> to vector<8x128xbf16>
    %37 = vector.shape_cast %36 : vector<8x128xbf16> to vector<1x8x128xbf16>
    %38 = vector.shape_cast %37 : vector<1x8x128xbf16> to vector<1x8x128xbf16>
    %39 = vector.broadcast %38 : vector<1x8x128xbf16> to vector<12x8x128xbf16>
    %c0_12 = arith.constant 0 : index
    %c0_13 = arith.constant 0 : index
    %c0_14 = arith.constant 0 : index
    %c0_15 = arith.constant 0 : index
    %40 = vector.load %arg5[%c0_12, %c0_13, %c0_14, %c0_15] : memref<1x12x32x128xbf16, #tpu.memory_space<vmem>>, vector<1x12x32x128xbf16>
    %41 = vector.shape_cast %40 : vector<1x12x32x128xbf16> to vector<12x32x128xbf16>
    "tpu.trace_start"() <{level = 10 : i32, message = "hrd,hed->hre"}> : () -> ()
    %cst_16 = arith.constant dense<0.000000e+00> : vector<12x8x32xf32>
    %42 = tpu.matmul %39, %41, %cst_16 {dimension_numbers = #tpu.dot_dimension_numbers<[2], [2], [1], [1], [0, 0, 0, 1, 1, 1], [0], [0]>} : vector<12x8x128xbf16>, vector<12x32x128xbf16>, vector<12x8x32xf32> -> vector<12x8x32xf32>
    "tpu.trace_stop"() : () -> ()
    %43 = arith.truncf %42 : vector<12x8x32xf32> to vector<12x8x32xbf16>
    %44 = vector.extract_strided_slice %43 {offsets = [0, 0, 0], sizes = [4, 8, 32], strides = [1, 1, 1]} : vector<12x8x32xbf16> to vector<4x8x32xbf16>
    %45 = vector.extract_strided_slice %43 {offsets = [4, 0, 0], sizes = [4, 8, 32], strides = [1, 1, 1]} : vector<12x8x32xbf16> to vector<4x8x32xbf16>
    %46 = vector.extract_strided_slice %43 {offsets = [8, 0, 0], sizes = [4, 8, 32], strides = [1, 1, 1]} : vector<12x8x32xbf16> to vector<4x8x32xbf16>
    "tpu.trace_start"() <{level = 10 : i32, message = "hqe,hke->hqk"}> : () -> ()
    %cst_17 = arith.constant dense<0.000000e+00> : vector<4x8x8xf32>
    %47 = tpu.matmul %44, %45, %cst_17 {dimension_numbers = #tpu.dot_dimension_numbers<[2], [2], [1], [1], [0, 0, 0, 1, 1, 1], [0], [0]>} : vector<4x8x32xbf16>, vector<4x8x32xbf16>, vector<4x8x8xf32> -> vector<4x8x8xf32>
    "tpu.trace_stop"() : () -> ()
    %cst_18 = arith.constant dense<0xFF800000> : vector<4x8xf32>
    %48 = vector.multi_reduction <maximumf>, %47, %cst_18 [2] : vector<4x8x8xf32> to vector<4x8xf32>
    %49 = vector.shape_cast %48 : vector<4x8xf32> to vector<4x8x1xf32>
    %50 = vector.broadcast %49 : vector<4x8x1xf32> to vector<4x8x8xf32>
    %51 = arith.subf %47, %50 : vector<4x8x8xf32>
    %52 = math.exp %51 : vector<4x8x8xf32>
    %cst_19 = arith.constant dense<0.000000e+00> : vector<4x8xf32>
    %53 = vector.multi_reduction <add>, %52, %cst_19 [2] : vector<4x8x8xf32> to vector<4x8xf32>
    %54 = vector.shape_cast %53 : vector<4x8xf32> to vector<4x8x1xf32>
    %55 = vector.broadcast %54 : vector<4x8x1xf32> to vector<4x8x8xf32>
    %56 = arith.divf %52, %55 : vector<4x8x8xf32>
    %57 = arith.truncf %56 : vector<4x8x8xf32> to vector<4x8x8xbf16>
    "tpu.trace_start"() <{level = 10 : i32, message = "hqk,hke->hqe"}> : () -> ()
    %cst_20 = arith.constant dense<0.000000e+00> : vector<4x8x32xf32>
    %58 = tpu.matmul %57, %46, %cst_20 {dimension_numbers = #tpu.dot_dimension_numbers<[2], [1], [1], [2], [0, 0, 0, 1, 1, 2], [0], [0]>} : vector<4x8x8xbf16>, vector<4x8x32xbf16>, vector<4x8x32xf32> -> vector<4x8x32xf32>
    "tpu.trace_stop"() : () -> ()
    %59 = arith.truncf %58 : vector<4x8x32xf32> to vector<4x8x32xbf16>
    %c0_21 = arith.constant 0 : index
    %c0_22 = arith.constant 0 : index
    %c0_23 = arith.constant 0 : index
    %c0_24 = arith.constant 0 : index
    %60 = vector.load %arg6[%c0_21, %c0_22, %c0_23, %c0_24] : memref<1x4x32x128xbf16, #tpu.memory_space<vmem>>, vector<1x4x32x128xbf16>
    %61 = vector.shape_cast %60 : vector<1x4x32x128xbf16> to vector<4x32x128xbf16>
    "tpu.trace_start"() <{level = 10 : i32, message = "hre,hed->hrd"}> : () -> ()
    %cst_25 = arith.constant dense<0.000000e+00> : vector<4x8x128xf32>
    %62 = tpu.matmul %59, %61, %cst_25 {dimension_numbers = #tpu.dot_dimension_numbers<[2], [1], [1], [2], [0, 0, 0, 1, 1, 2], [0], [0]>} : vector<4x8x32xbf16>, vector<4x32x128xbf16>, vector<4x8x128xf32> -> vector<4x8x128xf32>
    "tpu.trace_stop"() : () -> ()
    %cst_26 = arith.constant dense<0.000000e+00> : vector<8x128xf32>
    %63 = vector.multi_reduction <add>, %62, %cst_26 [0] : vector<4x8x128xf32> to vector<8x128xf32>
    %64 = arith.addf %3, %63 : vector<8x128xf32>
    %65 = vector.broadcast %10 : vector<1x128xf32> to vector<8x128xf32>
    %66 = arith.addf %64, %65 : vector<8x128xf32>
    %cst_27 = arith.constant dense<0.000000e+00> : vector<8xf32>
    %67 = vector.multi_reduction <add>, %66, %cst_27 [1] : vector<8x128xf32> to vector<8xf32>
    %68 = vector.shape_cast %67 : vector<8xf32> to vector<8x1xf32>
    %cst_28 = arith.constant 1.280000e+02 : f32
    %69 = vector.broadcast %cst_28 : f32 to vector<8x1xf32>
    %70 = arith.divf %68, %69 : vector<8x1xf32>
    %71 = vector.broadcast %70 : vector<8x1xf32> to vector<8x128xf32>
    %72 = arith.subf %66, %71 : vector<8x128xf32>
    %73 = arith.mulf %72, %72 : vector<8x128xf32>
    %cst_29 = arith.constant dense<0.000000e+00> : vector<8xf32>
    %74 = vector.multi_reduction <add>, %73, %cst_29 [1] : vector<8x128xf32> to vector<8xf32>
    %75 = vector.shape_cast %74 : vector<8xf32> to vector<8x1xf32>
    %cst_30 = arith.constant 1.280000e+02 : f32
    %76 = vector.broadcast %cst_30 : f32 to vector<8x1xf32>
    %77 = arith.divf %75, %76 : vector<8x1xf32>
    %78 = vector.broadcast %70 : vector<8x1xf32> to vector<8x128xf32>
    %79 = arith.subf %66, %78 : vector<8x128xf32>
    %cst_31 = arith.constant 9.99999997E-7 : f32
    %80 = vector.broadcast %cst_31 : f32 to vector<8x1xf32>
    %81 = arith.addf %77, %80 : vector<8x1xf32>
    %82 = math.rsqrt %81 : vector<8x1xf32>
    %83 = vector.broadcast %82 : vector<8x1xf32> to vector<8x128xf32>
    %84 = arith.mulf %79, %83 : vector<8x128xf32>
    %85 = vector.broadcast %8 : vector<1x128xf32> to vector<8x128xf32>
    %86 = arith.mulf %84, %85 : vector<8x128xf32>
    %87 = vector.broadcast %9 : vector<1x128xf32> to vector<8x128xf32>
    %88 = arith.addf %86, %87 : vector<8x128xf32>
    %89 = arith.truncf %88 : vector<8x128xf32> to vector<8x128xbf16>
    %c0_32 = arith.constant 0 : index
    %c0_33 = arith.constant 0 : index
    %c0_34 = arith.constant 0 : index
    %90 = vector.load %arg7[%c0_32, %c0_33, %c0_34] : memref<1x128x512xbf16, #tpu.memory_space<vmem>>, vector<1x128x512xbf16>
    %91 = vector.shape_cast %90 : vector<1x128x512xbf16> to vector<128x512xbf16>
    %cst_35 = arith.constant dense<0.000000e+00> : vector<8x512xf32>
    %92 = tpu.matmul %89, %91, %cst_35 {dimension_numbers = #tpu.dot_dimension_numbers<[1], [0], [0], [1], [0, 0, 1, 1], [], []>} : vector<8x128xbf16>, vector<128x512xbf16>, vector<8x512xf32> -> vector<8x512xf32>
    %93 = vector.broadcast %13 : vector<1x512xf32> to vector<8x512xf32>
    %94 = arith.addf %92, %93 : vector<8x512xf32>
    %cst_36 = arith.constant 5.000000e-01 : f32
    %95 = vector.broadcast %cst_36 : f32 to vector<8x512xf32>
    %96 = arith.mulf %95, %94 : vector<8x512xf32>
    %cst_37 = arith.constant 4.471500e-02 : f32
    %97 = vector.broadcast %cst_37 : f32 to vector<8x512xf32>
    %98 = arith.mulf %97, %94 : vector<8x512xf32>
    %99 = arith.mulf %98, %94 : vector<8x512xf32>
    %100 = arith.mulf %99, %94 : vector<8x512xf32>
    %101 = arith.addf %94, %100 : vector<8x512xf32>
    %cst_38 = arith.constant 0.797884583 : f32
    %102 = vector.broadcast %cst_38 : f32 to vector<8x512xf32>
    %103 = arith.mulf %102, %101 : vector<8x512xf32>
    %104 = math.tanh %103 : vector<8x512xf32>
    %cst_39 = arith.constant 1.000000e+00 : f32
    %105 = vector.broadcast %cst_39 : f32 to vector<8x512xf32>
    %106 = arith.addf %105, %104 : vector<8x512xf32>
    %107 = arith.mulf %96, %106 : vector<8x512xf32>
    %108 = arith.truncf %107 : vector<8x512xf32> to vector<8x512xbf16>
    %c0_40 = arith.constant 0 : index
    %c0_41 = arith.constant 0 : index
    %c0_42 = arith.constant 0 : index
    %109 = vector.load %arg8[%c0_40, %c0_41, %c0_42] : memref<1x512x128xbf16, #tpu.memory_space<vmem>>, vector<1x512x128xbf16>
    %110 = vector.shape_cast %109 : vector<1x512x128xbf16> to vector<512x128xbf16>
    %cst_43 = arith.constant dense<0.000000e+00> : vector<8x128xf32>
    %111 = tpu.matmul %108, %110, %cst_43 {dimension_numbers = #tpu.dot_dimension_numbers<[1], [0], [0], [1], [0, 0, 1, 1], [], []>} : vector<8x512xbf16>, vector<512x128xbf16>, vector<8x128xf32> -> vector<8x128xf32>
    %112 = vector.broadcast %11 : vector<1x128xf32> to vector<8x128xf32>
    %113 = arith.addf %111, %112 : vector<8x128xf32>
    %114 = arith.addf %66, %113 : vector<8x128xf32>
    %c0_44 = arith.constant 0 : index
    %c0_45 = arith.constant 0 : index
    %115 = vector.load %arg13[%c0_44, %c0_45] : memref<8x128xf32, #tpu.memory_space<vmem>>, vector<8x128xf32>
    tpu.vector_store %arg13[%c0_44, %c0_45], %114 {strides = array<i32>} : memref<8x128xf32, #tpu.memory_space<vmem>>, vector<8x128xf32>,
    %c1_i32 = arith.constant 1 : i32
    %116 = arith.cmpi eq, %arg1, %c1_i32 : i32
    %117 = arith.extui %116 : i1 to i32
    %c0_i32_46 = arith.constant 0 : i32
    %118 = arith.cmpi ne, %117, %c0_i32_46 : i32
    scf.if %118 {
      %c0_47 = arith.constant 0 : index
      %c0_48 = arith.constant 0 : index
      %119 = vector.load %arg9[%c0_47, %c0_48] : memref<2x128xf32, #tpu.memory_space<vmem>>, vector<2x128xf32>
      %120 = vector.extract_strided_slice %119 {offsets = [0, 0], sizes = [1, 128], strides = [1, 1]} : vector<2x128xf32> to vector<1x128xf32>
      %121 = vector.extract_strided_slice %119 {offsets = [1, 0], sizes = [1, 128], strides = [1, 1]} : vector<2x128xf32> to vector<1x128xf32>
      %cst_49 = arith.constant dense<0.000000e+00> : vector<8xf32>
      %122 = vector.multi_reduction <add>, %114, %cst_49 [1] : vector<8x128xf32> to vector<8xf32>
      %123 = vector.shape_cast %122 : vector<8xf32> to vector<8x1xf32>
      %cst_50 = arith.constant 1.280000e+02 : f32
      %124 = vector.broadcast %cst_50 : f32 to vector<8x1xf32>
      %125 = arith.divf %123, %124 : vector<8x1xf32>
      %126 = vector.broadcast %125 : vector<8x1xf32> to vector<8x128xf32>
      %127 = arith.subf %114, %126 : vector<8x128xf32>
      %128 = arith.mulf %127, %127 : vector<8x128xf32>
      %cst_51 = arith.constant dense<0.000000e+00> : vector<8xf32>
      %129 = vector.multi_reduction <add>, %128, %cst_51 [1] : vector<8x128xf32> to vector<8xf32>
      %130 = vector.shape_cast %129 : vector<8xf32> to vector<8x1xf32>
      %cst_52 = arith.constant 1.280000e+02 : f32
      %131 = vector.broadcast %cst_52 : f32 to vector<8x1xf32>
      %132 = arith.divf %130, %131 : vector<8x1xf32>
      %133 = vector.broadcast %125 : vector<8x1xf32> to vector<8x128xf32>
      %134 = arith.subf %114, %133 : vector<8x128xf32>
      %cst_53 = arith.constant 9.99999997E-7 : f32
      %135 = vector.broadcast %cst_53 : f32 to vector<8x1xf32>
      %136 = arith.addf %132, %135 : vector<8x1xf32>
      %137 = math.rsqrt %136 : vector<8x1xf32>
      %138 = vector.broadcast %137 : vector<8x1xf32> to vector<8x128xf32>
      %139 = arith.mulf %134, %138 : vector<8x128xf32>
      %140 = vector.broadcast %120 : vector<1x128xf32> to vector<8x128xf32>
      %141 = arith.mulf %139, %140 : vector<8x128xf32>
      %142 = vector.broadcast %121 : vector<1x128xf32> to vector<8x128xf32>
      %143 = arith.addf %141, %142 : vector<8x128xf32>
      %144 = arith.truncf %143 : vector<8x128xf32> to vector<8x128xbf16>
      %c0_54 = arith.constant 0 : index
      %c0_55 = arith.constant 0 : index
      %145 = vector.load %arg10[%c0_54, %c0_55] : memref<128x512xbf16, #tpu.memory_space<vmem>>, vector<128x512xbf16>
      %cst_56 = arith.constant dense<0.000000e+00> : vector<8x512xf32>
      %146 = tpu.matmul %144, %145, %cst_56 {dimension_numbers = #tpu.dot_dimension_numbers<[1], [0], [0], [1], [0, 0, 1, 1], [], []>} : vector<8x128xbf16>, vector<128x512xbf16>, vector<8x512xf32> -> vector<8x512xf32>
      %c0_57 = arith.constant 0 : index
      %c0_58 = arith.constant 0 : index
      %147 = vector.load %arg11[%c0_57, %c0_58] : memref<1x512xf32, #tpu.memory_space<vmem>>, vector<1x512xf32>
      %148 = vector.broadcast %147 : vector<1x512xf32> to vector<8x512xf32>
      %149 = arith.addf %146, %148 : vector<8x512xf32>
      %c0_59 = arith.constant 0 : index
      %c0_60 = arith.constant 0 : index
      %c0_61 = arith.constant 0 : index
      %150 = vector.load %arg12[%c0_59, %c0_60, %c0_61] : memref<1x8x512xf32, #tpu.memory_space<vmem>>, vector<1x8x512xf32>
      %151 = vector.shape_cast %150 : vector<1x8x512xf32> to vector<8x512xf32>
      %152 = vector.shape_cast %149 : vector<8x512xf32> to vector<1x8x512xf32>
      tpu.vector_store %arg12[%c0_59, %c0_60, %c0_61], %152 {strides = array<i32>} : memref<1x8x512xf32, #tpu.memory_space<vmem>>, vector<1x8x512xf32>,
    } else {
    }
    return
  }
  func.func @transform_0(%arg0: i32, %arg1: i32) -> (i32, i32, i32) {
    %c0_i32 = arith.constant 0 : i32
    %c0_i32_0 = arith.constant 0 : i32
    %c0_i32_1 = arith.constant 0 : i32
    return %arg0, %c0_i32, %c0_i32_0 : i32, i32, i32
  }
  func.func @transform_1(%arg0: i32, %arg1: i32) -> (i32, i32, i32) {
    %c0_i32 = arith.constant 0 : i32
    %c0_i32_0 = arith.constant 0 : i32
    %c0_i32_1 = arith.constant 0 : i32
    return %arg1, %c0_i32, %c0_i32_0 : i32, i32, i32
  }
  func.func @transform_2(%arg0: i32, %arg1: i32) -> (i32, i32, i32) {
    %c0_i32 = arith.constant 0 : i32
    %c0_i32_0 = arith.constant 0 : i32
    %c0_i32_1 = arith.constant 0 : i32
    return %arg1, %c0_i32, %c0_i32_0 : i32, i32, i32
  }
  func.func @transform_3(%arg0: i32, %arg1: i32) -> (i32, i32, i32, i32) {
    %c0_i32 = arith.constant 0 : i32
    %c0_i32_0 = arith.constant 0 : i32
    %c0_i32_1 = arith.constant 0 : i32
    %c0_i32_2 = arith.constant 0 : i32
    return %arg1, %c0_i32, %c0_i32_0, %c0_i32_1 : i32, i32, i32, i32
  }
  func.func @transform_4(%arg0: i32, %arg1: i32) -> (i32, i32, i32, i32) {
    %c0_i32 = arith.constant 0 : i32
    %c0_i32_0 = arith.constant 0 : i32
    %c0_i32_1 = arith.constant 0 : i32
    %c0_i32_2 = arith.constant 0 : i32
    return %arg1, %c0_i32, %c0_i32_0, %c0_i32_1 : i32, i32, i32, i32
  }
  func.func @transform_5(%arg0: i32, %arg1: i32) -> (i32, i32, i32) {
    %c0_i32 = arith.constant 0 : i32
    %c0_i32_0 = arith.constant 0 : i32
    %c0_i32_1 = arith.constant 0 : i32
    return %arg1, %c0_i32, %c0_i32_0 : i32, i32, i32
  }
  func.func @transform_6(%arg0: i32, %arg1: i32) -> (i32, i32, i32) {
    %c0_i32 = arith.constant 0 : i32
    %c0_i32_0 = arith.constant 0 : i32
    %c0_i32_1 = arith.constant 0 : i32
    return %arg1, %c0_i32, %c0_i32_0 : i32, i32, i32
  }
  func.func @transform_7(%arg0: i32, %arg1: i32) -> (i32, i32) {
    %c0_i32 = arith.constant 0 : i32
    %c0_i32_0 = arith.constant 0 : i32
    %c0_i32_1 = arith.constant 0 : i32
    return %c0_i32, %c0_i32_0 : i32, i32
  }
  func.func @transform_8(%arg0: i32, %arg1: i32) -> (i32, i32) {
    %c0_i32 = arith.constant 0 : i32
    %c0_i32_0 = arith.constant 0 : i32
    %c0_i32_1 = arith.constant 0 : i32
    return %c0_i32, %c0_i32_0 : i32, i32
  }
  func.func @transform_9(%arg0: i32, %arg1: i32) -> (i32, i32) {
    %c0_i32 = arith.constant 0 : i32
    %c0_i32_0 = arith.constant 0 : i32
    %c0_i32_1 = arith.constant 0 : i32
    return %c0_i32, %c0_i32_0 : i32, i32
  }
  func.func @transform_10(%arg0: i32, %arg1: i32) -> (i32, i32, i32) {
    %c0_i32 = arith.constant 0 : i32
    %c0_i32_0 = arith.constant 0 : i32
    %c0_i32_1 = arith.constant 0 : i32
    return %arg0, %c0_i32, %c0_i32_0 : i32, i32, i32
  }
}

</mosaic_0001>

<bundles_post_ra>
// kernel: _lambda_.4
= control target key start
LH: loop header
LB: loop body
LE: loop exit
PB: predicated region body
PF: predicated region fallthrough
CT: control target
= control target key end

     0   :  { %8 = vsyncpa [#allocation3], 0  ;;  %s308_s12 = smov [#allocation2]   ;;  %s376_s0 = inlined_call_operand.vmem [shape: f32[16,512], index: 0, kind: input, shape index: {}]   ;;  %s377_s1 = inlined_call_operand.hbm [shape: bf16[256,128], index: 1, kind: input, shape index: {}]   ;;  %s378_s2 = inlined_call_operand.vmem [shape: f32[1,128], index: 2, kind: input, shape index: {}]   ;;  %s379_s3 = inlined_call_operand.vmem [shape: f32[16,128], index: 3, kind: output, shape index: {}]  }
   0x1   :  { %s16_s13 = sshll.u32 %s308_s12, 4  ;;  %s284_s16 = scalar_lea.hbm %s377_s1, 2048  ;;  %s17_s13 = int_to_ptr.vmem [resolvable:$true] %s16_s13 }
   0x2   :  { %p285_p0 = scmp.ne.s32.totalorder %s377_s1, %s284_s16  ;;  %p288_p1 = scmp.lt.u32.totalorder %s284_s16, %s377_s1 }
   0x4   :  { %p290_p2 = pnand %p288_p1, %p285_p0 }
   0x6   :  { %293 = shalt.err (!%p290_p2)
}
   0x7   :  { %s294_s21 = scalar_lea.vmem %s17_s13, 2048  ;;  %p299_p4 = scmp.lt.s32.totalorder %s17_s13, %s17_s13 }
   0x8   :  { %p295_p3 = scmp.ne.s32.totalorder %s17_s13, %s294_s21  ;;  %p300_p5 = scmp.lt.s32.totalorder %s294_s21, %s294_s21 }
   0xa   :  { %p301_p6 = por %p300_p5, %p299_p4 }
   0xc   :  { %p302_p7 = pnand %p301_p6, %p295_p3 }
   0xe   :  { %305 = shalt.err (!%p302_p7)
}
   0xf   :  { %s309_s22 = smov 64   ;;  %s310_s23 = smov 4  }
  0x10   :  { %22 = dma.hbm_to_vmem [thread:$0]  %s377_s1, 2048, %s17_s13, [#allocation3], %s309_s22, %s309_s22, %s310_s23  }
  0x11   :  { %306 = dma.done.wait [#allocation3], 2048  }
  0x12   :  { %307 = vsyncadd [#allocation3], 4294965248  ;;  %v268_v0 = vld [vmem:[#allocation2 + $0x40] sm:$0xff]   ;;  %v270_v2 = vld [vmem:[#allocation2 + $0x48] sm:$0xff]  }
  0x13   :  { %v269_v1 = vld [vmem:[#allocation2] sm:$0xff]   ;;  %243 = vmatprep.subr.bf16.mxu0 %v268_v0  ;;  %v271_v3 = vld [vmem:[#allocation2 + $0x8] sm:$0xff]   ;;  %v272_v4 = vld [vmem:[#allocation2 + $0x50] sm:$0xff]  }
  0x14   :  { %244 = vmatpush3.bf16.msra.mxu0 %v269_v1  ;;  %v273_v5 = vld [vmem:[#allocation2 + $0x10] sm:$0xff]   ;;  %v274_v6 = vld [vmem:[#allocation2 + $0x58] sm:$0xff]   ;;  %v276_v8 = vld [vmem:[#allocation2 + $0x60] sm:$0xff]  }
  0x15   :  { %245 = vmatprep.subr.bf16.mxu0 %v270_v2  ;;  %v275_v7 = vld [vmem:[#allocation2 + $0x18] sm:$0xff]   ;;  %v277_v9 = vld [vmem:[#allocation2 + $0x20] sm:$0xff]   ;;  %v278_v10 = vld [vmem:[#allocation2 + $0x68] sm:$0xff]  }
  0x16   :  { %v30_v11 = vld [vmem:[%s376_s0 + $0x8] sm:$0xff]  ;;  %v32_v12 = vld [vmem:[%s376_s0 + $0x18] sm:$0xff]  ;;  %v280_v18 = vld [vmem:[#allocation2 + $0x70] sm:$0xff]  }
  0x17   :  { %v34_v13 = vld [vmem:[%s376_s0 + $0x28] sm:$0xff]  ;;  %v36_v14 = vld [vmem:[%s376_s0 + $0x38] sm:$0xff]  ;;  %v38_v15 = vadd.f32 %v32_v12, %v30_v11  ;;  %v281_v20 = vld [vmem:[#allocation2 + $0x30] sm:$0xff]  }
  0x18   :  { %246 = vmatpush3.bf16.msra.mxu0 %v271_v3  ;;  %v40_v16 = vadd.f32 %v36_v14, %v34_v13  ;;  %v279_v17 = vld [vmem:[#allocation2 + $0x28] sm:$0xff]   ;;  %v29_v21 = vld [vmem:[%s376_s0] sm:$0xff]  ;;  %v31_v22 = vld [vmem:[%s376_s0 + $0x10] sm:$0xff] }
  0x19   :  { %247 = vmatprep.subr.bf16.mxu0 %v272_v4  ;;  %v33_v23 = vld [vmem:[%s376_s0 + $0x20] sm:$0xff]  ;;  %v35_v24 = vld [vmem:[%s376_s0 + $0x30] sm:$0xff]  ;;  %v282_v25 = vld [vmem:[#allocation2 + $0x78] sm:$0xff]   ;;  %v37_v26 = vadd.f32 %v31_v22, %v29_v21 }
  0x1a   :  { %v42_v19 = vpack.c.bf16 %v40_v16, %v38_v15  ;;  %v39_v27 = vadd.f32 %v35_v24, %v33_v23  ;;  %v283_v28 = vld [vmem:[#allocation2 + $0x38] sm:$0xff]   ;;  %v226_v31 = vld [vmem:[%s378_s2] ss:$0 sm:$0xff] }
  0x1c   :  { %248 = vmatpush3.bf16.msra.mxu0 %v273_v5  ;;  %210 = vmatprep.mubr.bf16.mxu0 %v42_v19  ;;  %v41_v29 = vpack.c.bf16 %v39_v27, %v37_v26 }
  0x1d   :  { %249 = vmatprep.subr.bf16.mxu0 %v274_v6 }
  0x20   :  { %250 = vmatpush3.bf16.msra.mxu0 %v275_v7 }
  0x21   :  { %251 = vmatprep.subr.bf16.mxu0 %v276_v8 }
  0x24   :  { %252 = vmatpush3.bf16.msra.mxu0 %v277_v9 }
  0x25   :  { %253 = vmatprep.subr.bf16.mxu0 %v278_v10 }
  0x28   :  { %254 = vmatpush3.bf16.msra.mxu0 %v279_v17 }
  0x29   :  { %255 = vmatprep.subr.bf16.mxu0 %v280_v18 }
  0x2c   :  { %256 = vmatpush3.bf16.msra.mxu0 %v281_v20 }
  0x2d   :  { %257 = vmatprep.subr.bf16.mxu0 %v282_v25 }
  0x30   :  { %258 = vmatpush3.bf16.msra.mxu0 %v283_v28 }
  0x33   :  { %211 = vmatmul.mubr.bf16.vlgmr.msra.gmra.mrb[0].mxu0 %v41_v29 }
 0x106   :  { %v259_v30 = vpop.f32.mrb[0].mxu0 }
 0x107   :  { %v260_v32 = vpop.f32.mrb[1].mxu0 }
 0x108   :  { %v261_v33 = vadd.f32 %v260_v32, %v259_v30  ;;  %v262_v34 = vpop.f32.mrb[2].mxu0 }
 0x109   :  { %v263_v35 = vpop.f32.mrb[3].mxu0 }
 0x10a   :  { %v213_v36 = vadd.f32 %v261_v33, %v226_v31  ;;  %v264_v37 = vadd.f32 %v263_v35, %v262_v34 }
 0x10c   :  { %219 = vst [vmem:[%s379_s3] sm:$0xff] %v213_v36  ;;  %v216_v38 = vadd.f32 %v264_v37, %v226_v31 }
 0x10e   :  { %220 = vst [vmem:[%s379_s3 + $0x8] sm:$0xff] %v216_v38 }
 0x10f   :  { %225 = vsyncpa [#allocation3], 1 }

// kernel: _lambda_.7
= control target key start
LH: loop header
LB: loop body
LE: loop exit
PB: predicated region body
PF: predicated region fallthrough
CT: control target
= control target key end

     0   :  { %v241_v1 = vmov 0   ;;  %v19_v3 = vlaneseq  ;;  %s344_s0 = inlined_call_operand.vmem [shape: f32[16,512], index: 0, kind: input, shape index: {}]   ;;  %s345_s1 = inlined_call_operand.vmem [shape: f32[16,512], index: 1, kind: input, shape index: {}]   ;;  %s346_s2 = inlined_call_operand.vmem [shape: f32[16,1], index: 2, kind: input, shape index: {}]   ;;  %s347_s3 = inlined_call_operand.hbm [shape: f32[1,1], index: 3, kind: output, shape index: {}]  }
   0x1   :  { %v50_v0 = vld [vmem:[%s346_s2] sm:$0xff]  ;;  %214 = vset.pattern.permute.xlu0 %v241_v1  ;;  %v51_v2 = vld [vmem:[%s346_s2 + $0x8] sm:$0xff] }
   0x2   :  { %63 = vperm.xlu0 %214, %v50_v0  }
   0x6   :  { %68 = vperm.xlu0 %214, %v51_v2  }
   0x7   :  { %8 = vsyncpa [#allocation5], 0  ;;  %vm272_vm0 = vcmp.lt.s32.totalorder %v19_v3, 512  ;;  %v242_v5 = vmov 0.0   ;;  %vm143_vm1 = vcmask 7168   ;;  %vm24_vm2 = vcmask 0  }
   0x8   :  { %23 = vst.msk [vmem:[#allocation2] sm:$0xf] %vm272_vm0, %v242_v5  ;;  %v144_v6 = vsel %vm143_vm1, %v50_v0, 0.0  ;;  %v145_v7 = vsel %vm143_vm1, %v51_v2, 0.0  ;;  %v26_v17 = vld [vmem:[%s344_s0] sm:$0xff]  ;;  %v27_v18 = vld [vmem:[%s344_s0 + $0x8] sm:$0xff] }
   0x9   :  { %v146_v8 = vadd.f32 %v145_v7, %v144_v6  ;;  %25 = vst.msk [vmem:[#allocation3] sm:$0x1] %vm24_vm2, %v242_v5  ;;  %v28_v19 = vld [vmem:[%s344_s0 + $0x10] sm:$0xff]  ;;  %v29_v20 = vld [vmem:[%s344_s0 + $0x18] sm:$0xff]  ;;  %v34_v21 = vld [vmem:[%s345_s1] sm:$0xff]  ;;  %vm181_vm3 = vcmask 1040384  }
   0xa   :  { %v35_v22 = vld [vmem:[%s345_s1 + $0x8] sm:$0xff]  ;;  %v36_v23 = vld [vmem:[%s345_s1 + $0x10] sm:$0xff]  ;;  %v37_v24 = vld [vmem:[%s345_s1 + $0x18] sm:$0xff]  ;;  %v42_v33 = vsub.f32 %v26_v17, %v34_v21  ;;  %v243_v5 = vmov 1966171168  }
   0xb   :  { %v147_v9 = vrot.slane %v146_v8, 4  ;;  %v30_v25 = vld [vmem:[%s344_s0 + $0x20] sm:$0xff]  ;;  %v31_v26 = vld [vmem:[%s344_s0 + $0x28] sm:$0xff]  ;;  %v32_v27 = vld [vmem:[%s344_s0 + $0x30] sm:$0xff]  ;;  %v43_v34 = vsub.f32 %v27_v18, %v35_v22  ;;  %v44_v35 = vsub.f32 %v28_v19, %v36_v23  ;;  %v45_v36 = vsub.f32 %v29_v20, %v37_v24 }
   0xc   :  { %v33_v28 = vld [vmem:[%s344_s0 + $0x38] sm:$0xff]  ;;  %v38_v29 = vld [vmem:[%s345_s1 + $0x20] sm:$0xff]  ;;  %v39_v30 = vld [vmem:[%s345_s1 + $0x28] sm:$0xff]  ;;  %v53_v42 = vmul.f32 %v42_v33, %v42_v33  ;;  %v114_v6 = vunpack.c.l.s4 %v243_v5  ;;  %s244_s0 = smov [#allocation4]  }
   0xd   :  { %v148_v10 = vadd.f32 %v147_v9, %v146_v8  ;;  %v40_v31 = vld [vmem:[%s345_s1 + $0x30] sm:$0xff]  ;;  %v41_v32 = vld [vmem:[%s345_s1 + $0x38] sm:$0xff]  ;;  %v46_v37 = vsub.f32 %v30_v25, %v38_v29  ;;  %v47_v38 = vsub.f32 %v31_v26, %v39_v30  ;;  %v54_v43 = vmul.f32 %v43_v34, %v43_v34  ;;  %s202_s1 = sshll.u32 %s244_s0, 4  ;;  %s203_s1 = int_to_ptr.vmem [resolvable:$true] %s202_s1 }
   0xe   :  { %v48_v39 = vsub.f32 %v32_v27, %v40_v31  ;;  %v49_v40 = vsub.f32 %v33_v28, %v41_v32  ;;  %v55_v44 = vmul.f32 %v44_v35, %v44_v35  ;;  %v56_v45 = vmul.f32 %v45_v36, %v45_v36  ;;  %s217_s19 = scalar_lea.vmem %s203_s1, 16  ;;  %s221_s20 = scalar_lea.vmem %s203_s1, 32 }
   0xf   :  { %v149_v11 = vrot.slane %v148_v10, 2  ;;  %v57_v46 = vmul.f32 %v46_v37, %v46_v37  ;;  %v58_v47 = vmul.f32 %v47_v38, %v47_v38  ;;  %v52_v35 = vld [vmem:[#allocation2] sm:$0xf]  ;;  %p218_p0 = scmp.ne.s32.totalorder %s203_s1, %s217_s19  ;;  %p222_p1 = scmp.lt.s32.totalorder %s203_s1, %s203_s1 }
  0x10   :  { %v142_v15 = vld [vmem:[#allocation3] sm:$0x1]  ;;  %v59_v48 = vmul.f32 %v48_v39, %v48_v39  ;;  %v60_v49 = vmul.f32 %v49_v40, %v49_v40  ;;  %p223_p2 = scmp.lt.s32.totalorder %s221_s20, %s217_s19 }
  0x11   :  { %v150_v12 = vadd.f32 %v149_v11, %v148_v10 }
  0x12   :  { %p224_p3 = por %p223_p2, %p222_p1 }
  0x13   :  { %v151_v13 = vrot.slane %v150_v12, 1 }
  0x14   :  { %p225_p4 = pnand %p224_p3, %p218_p0 }
  0x15   :  { %v152_v14 = vadd.f32 %v151_v13, %v150_v12 }
  0x17   :  { %v153_v16 = vadd.f32 %v152_v14, %v142_v15  ;;  %v115_v15 = vunpack.c.0.s8 %v114_v6 }
  0x19   :  { %155 = vst.msk [vmem:[#allocation3] sm:$0x1] %vm24_vm2, %v153_v16  ;;  %v117_v16 = vshrl.u32 %v19_v3, 7 }
  0x1b   :  { %v118_v25 = vsub.s32 %v115_v15, %v117_v16  ;;  %v163_v37 = vsub.s32 0, %v117_v16  ;;  %v167_v38 = vsub.s32 1, %v117_v16  ;;  %v171_v39 = vsub.s32 2, %v117_v16 }
  0x1c   :  { %v175_v40 = vsub.s32 3, %v117_v16 }
  0x20   :  { %v191_v4 = vld [vmem:[#allocation3] sm:$0x1] }
  0x81   :  { %v64_v41 = vpop.permute.xlu0 %63 }
  0x82   :  { %v71_v50 = vmul.f32 %v64_v41, %v53_v42  ;;  %v72_v51 = vmul.f32 %v64_v41, %v54_v43  ;;  %v73_v52 = vmul.f32 %v64_v41, %v55_v44  ;;  %v74_v53 = vmul.f32 %v64_v41, %v56_v45 }
  0x85   :  { %v69_v54 = vpop.permute.xlu0 %68 }
  0x86   :  { %v75_v55 = vmul.f32 %v69_v54, %v57_v46  ;;  %v76_v56 = vmul.f32 %v69_v54, %v58_v47  ;;  %v77_v57 = vmul.f32 %v69_v54, %v59_v48  ;;  %v78_v58 = vmul.f32 %v69_v54, %v60_v49 }
  0x88   :  { %v79_v59 = vadd.f32 %v75_v55, %v71_v50  ;;  %v86_v60 = vadd.f32 %v76_v56, %v72_v51  ;;  %v93_v61 = vadd.f32 %v77_v57, %v73_v52  ;;  %v100_v62 = vadd.f32 %v78_v58, %v74_v53 }
  0x89   :  { %v192_v53 = vmul.f32 512.0, %v191_v4 }
  0x8a   :  { %v80_v63 = vrot.slane %v79_v59, 4  ;;  %v87_v0 = vrot.slane %v86_v60, 4  ;;  %v94_v1 = vrot.slane %v93_v61, 4  ;;  %v101_v2 = vrot.slane %v100_v62, 4 }
  0x8b   :  { %215 = vrcp.f32 %v192_v53 }
  0x8c   :  { %v81_v7 = vadd.f32 %v80_v63, %v79_v59  ;;  %v88_v8 = vadd.f32 %v87_v0, %v86_v60  ;;  %v95_v9 = vadd.f32 %v94_v1, %v93_v61  ;;  %v102_v10 = vadd.f32 %v101_v2, %v100_v62 }
  0x8e   :  { %v82_v11 = vrot.slane %v81_v7, 2  ;;  %v89_v12 = vrot.slane %v88_v8, 2  ;;  %v96_v13 = vrot.slane %v95_v9, 2  ;;  %v103_v14 = vrot.slane %v102_v10, 2 }
  0x90   :  { %v83_v17 = vadd.f32 %v82_v11, %v81_v7  ;;  %v90_v18 = vadd.f32 %v89_v12, %v88_v8  ;;  %v97_v19 = vadd.f32 %v96_v13, %v95_v9  ;;  %v104_v20 = vadd.f32 %v103_v14, %v102_v10 }
  0x92   :  { %v84_v21 = vrot.slane %v83_v17, 1  ;;  %v91_v22 = vrot.slane %v90_v18, 1  ;;  %v98_v23 = vrot.slane %v97_v19, 1  ;;  %v105_v24 = vrot.slane %v104_v20, 1 }
  0x94   :  { %v85_v26 = vadd.f32 %v84_v21, %v83_v17  ;;  %v92_v27 = vadd.f32 %v91_v22, %v90_v18  ;;  %v99_v28 = vadd.f32 %v98_v23, %v97_v19  ;;  %v106_v29 = vadd.f32 %v105_v24, %v104_v20 }
  0x95   :  { %v216_v54 = vpop.eup %215 }
  0x96   :  { %v111_v30 = vcombine.low %v85_v26, %v92_v27  ;;  %v112_v31 = vcombine.low %v99_v28, %v106_v29 }
  0x98   :  { %v119_v32 = vrot.slane %v111_v30, %v118_v25  ;;  %v126_v33 = vrot.slane %v112_v31, %v118_v25 }
  0x9a   :  { %v127_v34 = vcombine.low %v119_v32, %v126_v33 }
  0x9c   :  { %v134_v3 = vrot.slane %v127_v34, %v118_v25 }
  0x9e   :  { %v136_v36 = vadd.f32 %v134_v3, %v52_v35 }
  0xa0   :  { %141 = vst.msk [vmem:[#allocation2] sm:$0xf] %vm272_vm0, %v136_v36 }
  0xa7   :  { %v159_v41 = vld [vmem:[#allocation2] sm:$0xf] }
  0xa8   :  { %v164_v42 = vrot.slane %v159_v41, %v163_v37  ;;  %v168_v43 = vrot.slane %v159_v41, %v167_v38  ;;  %v172_v44 = vrot.slane %v159_v41, %v171_v39  ;;  %v176_v45 = vrot.slane %v159_v41, %v175_v40 }
  0xaa   :  { %v182_v46 = vsel %vm181_vm3, %v164_v42, 0.0  ;;  %v183_v47 = vsel %vm181_vm3, %v168_v43, 0.0  ;;  %v185_v49 = vsel %vm181_vm3, %v172_v44, 0.0  ;;  %v187_v51 = vsel %vm181_vm3, %v176_v45, 0.0 }
  0xab   :  { %v184_v48 = vadd.f32 %v183_v47, %v182_v46 }
  0xad   :  { %v186_v50 = vadd.f32 %v185_v49, %v184_v48 }
  0xaf   :  { %v188_v52 = vadd.f32 %v187_v51, %v186_v50 }
  0xb1   :  { %189 = vadd.xlane.f32.xlu1 %v188_v52 }
 0x13e   :  { %v190_v55 = vpop.xlane.xlu1 %189 }
 0x13f   :  { %v194_v56 = vmul.f32 %v216_v54, %v190_v55 }
 0x141   :  { %195 = vst.msk [vmem:[#allocation4] sm:$0x1] %vm24_vm2, %v194_v56 }
 0x142   :  { %228 = shalt.err (!%p225_p4)
}
 0x143   :  { %s229_s23 = scalar_lea.hbm %s347_s3, 16 }
 0x144   :  { %p230_p5 = scmp.ne.s32.totalorder %s347_s3, %s229_s23  ;;  %p233_p6 = scmp.lt.u32.totalorder %s229_s23, %s347_s3 }
 0x146   :  { %p235_p7 = pnand %p233_p6, %p230_p5 }
 0x148   :  { %238 = shalt.err (!%p235_p7)
}
 0x149   :  { %205 = dma.vmem_to_hbm [thread:$0]  %s203_s1, 16, %s347_s3, [#allocation5]  }
 0x14a   :  { %239 = dma.done.wait [#allocation5], 16  }
 0x14b   :  { %240 = vsyncadd [#allocation5], 4294967280 }
 0x14c   :  { %209 = vsyncpa [#allocation5], 1 }

// kernel: _lambda_.5
= control target key start
LH: loop header
LB: loop body
LE: loop exit
PB: predicated region body
PF: predicated region fallthrough
CT: control target
= control target key end

     0   :  { %s4708_s0 = inlined_call_operand.vmem [shape: f32[2,2,128], index: 0, kind: input, shape index: {}]   ;;  %s4709_s1 = inlined_call_operand.vmem [shape: f32[2,6,128], index: 1, kind: input, shape index: {}]   ;;  %s4710_s2 = inlined_call_operand.hbm [shape: f32[2,1,512], index: 2, kind: input, shape index: {}]   ;;  %s4711_s3 = inlined_call_operand.hbm [shape: bf16[2,12,32,128], index: 3, kind: input, shape index: {}]   ;;  %s4712_s4 = inlined_call_operand.hbm [shape: bf16[2,4,32,128], index: 4, kind: input, shape index: {}]   ;;  %s4713_s5 = inlined_call_operand.vmem [shape: bf16[2,128,512], index: 5, kind: input, shape index: {}]   ;;  %s4714_s6 = inlined_call_operand.vmem [shape: bf16[2,512,128], index: 6, kind: input, shape index: {}]   ;;  %s4715_s7 = inlined_call_operand.hbm [shape: f32[2,128], index: 7, kind: input, shape index: {}]   ;;  %s4716_s8 = inlined_call_operand.hbm [shape: bf16[128,128], index: 8, kind: input, shape index: {}]   ;;  %s4717_s9 = inlined_call_operand.hbm [shape: f32[1,128], index: 9, kind: input, shape index: {}]   ;;  %s4718_s10 = inlined_call_operand.vmem [shape: f32[2,2,128], index: 10, kind: output, shape index: {}]  }
   0x1   :  { %4738 = sst [smem:[#allocation24_spill]] %s4708_s0 }
   0x2   :  { %4739 = sst [smem:[#allocation25_spill]] %s4709_s1 }
   0x3   :  { %4740 = sst [smem:[#allocation26_spill]] %s4710_s2 }
   0x4   :  { %4741 = sst [smem:[#allocation27_spill]] %s4711_s3 }
   0x5   :  { %4742 = sst [smem:[#allocation28_spill]] %s4713_s5 }
   0x6   :  { %4743 = sst [smem:[#allocation29_spill]] %s4714_s6 }
   0x7   :  { %4744 = sst [smem:[#allocation30_spill]] %s4715_s7 }
   0x8   :  { %4745 = sst [smem:[#allocation31_spill]] %s4718_s10 }
   0x9   :  { %15 = vsyncpa [#allocation4], 0 }
   0xa   :  { %17 = vsyncpa [#allocation4 + $0x1], 0 }
   0xb   :  { %18 = vsyncpa [#allocation6], 0 }
   0xc   :  { %20 = vsyncpa [#allocation6 + $0x1], 0 }
   0xd   :  { %21 = vsyncpa [#allocation9], 0 }
   0xe   :  { %22 = vsyncpa [#allocation12], 0  ;;  %s4071_s13 = smov 0   ;;  %s4073_s14 = smov 0  }
   0xf   :  { %s4075_s15 = smov 0   ;;  %s4077_s16 = smov 0  }
  0x10   :  { %s4079_s17 = smov 0   ;;  %s4081_s18 = smov 0  }
  0x11   :  { %s4083_s19 = smov 0   ;;  %s4085_s20 = smov 0  }
  0x12 LB: > { %4746 = sst [smem:[#allocation17_spill]] %s3981_s15  ;;  %s4719_s21 = sadd.s32 4294967295, %s4001_s20   ;;  %s4001_s20 = sphi %s4085_s20, %s28_s20   ;;  %s3997_s19 = sphi %s4083_s19, %s4788_s19   ;;  %s3993_s18 = sphi %s4081_s18, %s4792_s18   ;;  %s3989_s17 = sphi %s4079_s17, %s4786_s17   ;;  %s3985_s16 = sphi %s4077_s16, %s4791_s16   ;;  %s3981_s15 = sphi %s4075_s15, %s4785_s15   ;;  %s3977_s14 = sphi %s4073_s14, %s4790_s14   ;;  %s3973_s13 = sphi %s4071_s13, %s4789_s13  }
  0x13   : > { %4747 = sst [smem:[#allocation18_spill]] %s3985_s16  ;;  %p106_p0 = scmp.ne.s32.totalorder %s3981_s15, %s3977_s14 }
  0x14   : > { %4748 = sst [smem:[#allocation19_spill]] %s3989_s17  ;;  %p107_p1 = scmp.eq.s32.totalorder %s4001_s20, 0 }
  0x15   : > { %4749 = sst [smem:[#allocation20_spill]] %s3997_s19  ;;  %p112_p2 = scmp.ne.s32.totalorder %s3977_s14, %s3973_s13 }
  0x16   : > { %p4117_p3 = scmp.eq.s32.totalorder %s4719_s21, 0  ;;  %p4121_p4 = por %p107_p1, %p106_p0 }
  0x17   : > { %p3012_p5 = scmp.ge.s32.totalorder %s4001_s20, 1  ;;  %p316_p7 = scmp.lt.s32.totalorder %s4001_s20, 5 }
  0x18   : > { %s4750_s23 = scalar_select %p4117_p3, 1, 0 }
  0x19   : > { %s4751_s24 = scalar_select %p4121_p4, 1, 0 }
  0x1a   : > { %p4128_p6 = por %p4117_p3, %p112_p2  ;;  %p4133_p8 = pnand %p3012_p5, %p316_p7 }
  0x1b   : > { %s4003_s27 = smov [#allocation8]   ;;  %s37_s30 = sadd.s32 1, %s3993_s18 }
  0x1c   : > { %s4752_s25 = scalar_select %p4128_p6, 1, 0 }
  0x1d   : > { %s4753_s26 = scalar_select %p4133_p8, 1, 0 }
  0x1e   : > { %s329_s28 = sshll.u32 %s4003_s27, 4  ;;  %p3496_p9 = pneg %p4133_p8  ;;  %s330_s28 = int_to_ptr.vmem [resolvable:$true] %s329_s28 }
  0x1f   : > { %s40_s11 = sadd.s32 1, %s3997_s19  ;;  %p4147_p11 = scmp.ge.s32.totalorder %s37_s30, 2 }
  0x20   : > { %p4141_p10 = pnand %p3496_p9, %p4117_p3  ;;  %s4756_s7 = sld [smem:[#allocation30_spill]] }
  0x21   : > { %s4755_s12 = scalar_select %p4147_p11, 1, 0 }
  0x22   : > { %s4754_s29 = scalar_select %p4141_p10, 1, 0 }
  0x23   : > { %p4159_p13 = pneg %p4141_p10 }
  0x25   : > { %s4757_s6 = scalar_select %p4159_p13, 1, 0 }
  0x26   : > { %s3749_s22 = scalar_lea.hbm %s4756_s7, 32 }
  0x27   : > { %p3750_p12 = scmp.ne.s32.totalorder %s4756_s7, %s3749_s22  ;;  %p3756_p2 = scmp.lt.u32.totalorder %s3749_s22, %s4756_s7 }
  0x29   : > { %p3752_p0 = pnand %p4159_p13, %p3750_p12 }
  0x2b   : > { %p3753_p1 = pneg %p3752_p0 }
  0x2d   : > { %p3758_p5 = pnand %p3756_p2, %p3753_p1 }
  0x2f   : > { %3761 = shalt.err (!%p3758_p5)
}
  0x30   : > { %s3762_s21 = scalar_lea.vmem %s330_s28, 32  ;;  %p3770_p6 = scmp.lt.s32.totalorder %s330_s28, %s330_s28 }
  0x31   : > { %p3763_p7 = scmp.ne.s32.totalorder %s330_s28, %s3762_s21  ;;  %p3771_p8 = scmp.lt.s32.totalorder %s3762_s21, %s3762_s21 }
  0x33   : > { %p3765_p9 = pnand %p3763_p7, %p4159_p13  ;;  %p3772_p4 = por %p3771_p8, %p3770_p6 }
  0x35   : > { %p3766_p3 = pneg %p3765_p9 }
  0x37   : > { %p3773_p11 = pnand %p3772_p4, %p3766_p3 }
  0x39   : > { %3776 = shalt.err (!%p3773_p11)
}
  0x3a   : > { %3499 = dma.hbm_to_vmem [thread:$0]  (!%p4141_p10), %s4756_s7, 32, %s330_s28, [#allocation9]  }
  0x3b   : > { %p4758_p6 = scmp.ne.s32.totalorder %s4755_s12, 0  ;;  %p3519_p8 = scmp.lt.s32.totalorder %s4001_s20, 4 }
  0x3c   : > { %s4761_s5 = sadd.s32 1, %s3981_s15  ;;  %s4193_s27 = sand.u32 1, %s3981_s15  }
  0x3d   : > { %s4794_s30 = smov (%p4758_p6, %s37_s30), 0  ;;  %s4796_s11 = smov (!%p4758_p6, %s40_s11), %s3997_s19 }
  0x3e   : > { %4759 = sst [smem:[#allocation21_spill]] %s4794_s30  ;;  %s96_s1 = ssub.s32 %s3993_s18, %s4794_s30 }
  0x3f   : > { %p42_p3 = scmp.ge.s32.totalorder %s4796_s11, 2  ;;  %p97_p4 = scmp.eq.s32.totalorder %s96_s1, 0 }
  0x40   : > { %p4763_p11 = scmp.ne.s32.totalorder %s4751_s24, 0  ;;  %s397_s12 = sand.u32 1, %s4001_s20  }
  0x41   : > { %s4798_s11 = smov (%p42_p3, %s4796_s11), 0  ;;  %s3475_s21 = smul.u32 192, %s4193_s27 }
  0x42   : > { %4760 = sst [smem:[#allocation22_spill]] %s4798_s11  ;;  %p4197_p12 = pnand %p3519_p8, %p4763_p11 }
  0x43   : > { %s4190_s22 = scalar_select %p97_p4, %s3981_s15, %s4761_s5  }
  0x44   : > { %s4764_s28 = scalar_select %p4197_p12, 1, 0 }
  0x45   : > { %4762 = sst [smem:[#allocation23_spill]] %s4190_s22  ;;  %s3476_s10 = smul.u32 3072, %s3993_s18 }
  0x46   : > { %s401_s13 = scalar_lea.vmem [#allocation5], %s3475_s21  ;;  %s4765_s3 = sld [smem:[#allocation27_spill]] }
  0x47   : > { %s408_s1 = sshll.u32 %s401_s13, 4  ;;  %s4211_s24 = scalar_lea.sflag [#allocation6], %s397_s12  ;;  %s4209_s1 = int_to_ptr.vmem [resolvable:$true] %s408_s1 }
  0x48   : > { %p4217_p1 = pneg %p4197_p12 }
  0x4a   : > { %s4766_s19 = scalar_select %p4217_p1, 1, 0 }
  0x4c   : > { %s4207_s11 = scalar_lea.hbm %s4765_s3, %s3476_s10  ;;  %s3782_s21 = scalar_lea.hbm %s4765_s3, 6144 }
  0x4d   : > { %s3777_s5 = scalar_lea.hbm %s4207_s11, 3072  ;;  %p3783_p7 = scmp.lt.u32.totalorder %s4207_s11, %s4765_s3 }
  0x4e   : > { %p3778_p0 = scmp.ne.s32.totalorder %s4207_s11, %s3777_s5  ;;  %p3784_p9 = scmp.lt.u32.totalorder %s3782_s21, %s3777_s5 }
  0x4f   : > { %p3786_p3 = scmp.lt.u32.totalorder %s3777_s5, %s4207_s11 }
  0x50   : > { %p3780_p2 = pnand %p4217_p1, %p3778_p0  ;;  %p3785_p6 = por %p3784_p9, %p3783_p7 }
  0x52   : > { %p3781_p5 = pneg %p3780_p2  ;;  %p3787_p4 = por %p3786_p3, %p3785_p6 }
  0x54   : > { %p3788_p8 = pnand %p3787_p4, %p3781_p5 }
  0x56   : > { %3791 = shalt.err (!%p3788_p8)
}
  0x57   : > { %s3792_s12 = scalar_lea.vmem %s4209_s1, 3072  ;;  %s4004_s7 = smov [#allocation5]  }
  0x58   : > { %p3793_p11 = scmp.ne.s32.totalorder %s4209_s1, %s3792_s12  ;;  %s3797_s30 = sshll.u32 %s4004_s7, 4  ;;  %s3798_s30 = int_to_ptr.vmem [resolvable:$false] %s3797_s30 }
  0x59   : > { %s3799_s10 = scalar_lea.vmem %s3798_s30, 6144  ;;  %p3800_p10 = scmp.lt.s32.totalorder %s4209_s1, %s3798_s30 }
  0x5a   : > { %p3795_p0 = pnand %p3793_p11, %p4217_p1  ;;  %p3801_p13 = scmp.lt.s32.totalorder %s3799_s10, %s3792_s12 }
  0x5c   : > { %p3796_p2 = pneg %p3795_p0  ;;  %p3802_p7 = por %p3801_p13, %p3800_p10 }
  0x5e   : > { %p3803_p9 = pnand %p3802_p7, %p3796_p2 }
  0x60   : > { %3806 = shalt.err (!%p3803_p9)
}
  0x61   : > { %s4005_s5 = smov 64   ;;  %s4006_s21 = smov 4  }
  0x62   : > { %3512 = dma.hbm_to_vmem [thread:$0]  (!%p4197_p12), %s4207_s11, 3072, %s4209_s1, %s4211_s24, %s4005_s5, %s4005_s5, %s4006_s21  }
  0x63   : > { %s4007_s13 = smov [#allocation10]   ;;  %s4008_s30 = smov [#allocation11]  }
  0x64   : > { %s339_s7 = sshll.u32 %s4007_s13, 4  ;;  %s353_s12 = sshll.u32 %s4008_s30, 4  ;;  %s340_s7 = int_to_ptr.vmem [resolvable:$true] %s339_s7  ;;  %s354_s12 = int_to_ptr.vmem [resolvable:$true] %s353_s12 }
  0x65   : > { %s3807_s22 = scalar_lea.hbm %s4716_s8, 1024  ;;  %p4767_p13 = scmp.ne.s32.totalorder %s4757_s6, 0 }
  0x66   : > { %p3808_p10 = scmp.ne.s32.totalorder %s4716_s8, %s3807_s22  ;;  %p3814_p3 = scmp.lt.u32.totalorder %s3807_s22, %s4716_s8 }
  0x68   : > { %p3810_p5 = pnand %p3808_p10, %p4767_p13 }
  0x6a   : > { %p3811_p6 = pneg %p3810_p5 }
  0x6c   : > { %p3816_p4 = pnand %p3814_p3, %p3811_p6 }
  0x6e   : > { %3819 = shalt.err (!%p3816_p4)
}
  0x6f   : > { %s3820_s11 = scalar_lea.vmem %s340_s7, 1024  ;;  %p3828_p2 = scmp.lt.s32.totalorder %s340_s7, %s340_s7 }
  0x70   : > { %p3821_p8 = scmp.ne.s32.totalorder %s340_s7, %s3820_s11  ;;  %p3829_p7 = scmp.lt.s32.totalorder %s3820_s11, %s3820_s11 }
  0x72   : > { %p3823_p11 = pnand %p3821_p8, %p4767_p13  ;;  %p3830_p9 = por %p3829_p7, %p3828_p2 }
  0x74   : > { %p3824_p0 = pneg %p3823_p11 }
  0x76   : > { %p3831_p12 = pnand %p3830_p9, %p3824_p0 }
  0x78   : > { %3834 = shalt.err (!%p3831_p12)
}
  0x79   : > { %p4768_p10 = scmp.ne.s32.totalorder %s4754_s29, 0  ;;  %s3835_s17 = scalar_lea.hbm %s4717_s9, 16 }
  0x7a   : > { %p3836_p5 = scmp.ne.s32.totalorder %s4717_s9, %s3835_s17  ;;  %p3842_p3 = scmp.lt.u32.totalorder %s3835_s17, %s4717_s9 }
  0x7b   : > { %3502 = dma.hbm_to_vmem [thread:$0]  (!%p4768_p10), %s4716_s8, 1024, %s340_s7, [#allocation9], %s4005_s5, %s4005_s5, %s4006_s21  }
  0x7c   : > { %p3838_p12 = pnand %p3836_p5, %p4767_p13 }
  0x7e   : > { %p3839_p6 = pneg %p3838_p12 }
  0x80   : > { %p3844_p4 = pnand %p3842_p3, %p3839_p6 }
  0x82   : > { %3847 = shalt.err (!%p3844_p4)
}
  0x83   : > { %s3848_s10 = scalar_lea.vmem %s354_s12, 16  ;;  %s3855_s7 = scalar_lea.vmem %s354_s12, 32 }
  0x84   : > { %p3849_p8 = scmp.ne.s32.totalorder %s354_s12, %s3848_s10  ;;  %p3856_p2 = scmp.lt.s32.totalorder %s354_s12, %s354_s12 }
  0x85   : > { %p3857_p7 = scmp.lt.s32.totalorder %s3855_s7, %s3848_s10 }
  0x86   : > { %p3851_p11 = pnand %p3849_p8, %p4767_p13 }
  0x87   : > { %p3858_p9 = por %p3857_p7, %p3856_p2 }
  0x88   : > { %p3852_p0 = pneg %p3851_p11 }
  0x8a   : > { %p3859_p1 = pnand %p3858_p9, %p3852_p0 }
  0x8c   : > { %3862 = shalt.err (!%p3859_p1)
}
  0x8d   : > { %3505 = dma.hbm_to_vmem [thread:$0]  (!%p4768_p10), %s4717_s9, 16, %s354_s12, [#allocation12]  }
  0x8e   : > { %s3017_s6 = sshll.u32 %s4193_s27, 2  ;;  %s3158_s3 = sshll.u32 %s3993_s18, 6 }
  0x8f   : > { %s4769_s2 = sld [smem:[#allocation26_spill]]  ;;  %s382_s29 = scalar_lea.vmem [#allocation3], %s3017_s6 }
  0x90   : > { %s390_s22 = sshll.u32 %s382_s29, 4  ;;  %s3021_s1 = sshll.u32 %s4193_s27, 6  ;;  %s391_s22 = int_to_ptr.vmem [resolvable:$true] %s390_s22 }
  0x91   : > { %s379_s13 = scalar_lea.sflag [#allocation4], %s4193_s27  ;;  %p4770_p13 = scmp.ne.s32.totalorder %s4766_s19, 0 }
  0x95   : > { %s4288_s17 = scalar_lea.hbm %s4769_s2, %s3158_s3  ;;  %s3868_s7 = scalar_lea.hbm %s4769_s2, 128 }
  0x96   : > { %s3863_s30 = scalar_lea.hbm %s4288_s17, 64  ;;  %p3869_p12 = scmp.lt.u32.totalorder %s4288_s17, %s4769_s2 }
  0x97   : > { %p3864_p1 = scmp.ne.s32.totalorder %s4288_s17, %s3863_s30  ;;  %p3870_p6 = scmp.lt.u32.totalorder %s3868_s7, %s3863_s30 }
  0x98   : > { %p3872_p4 = scmp.lt.u32.totalorder %s3863_s30, %s4288_s17 }
  0x99   : > { %p3866_p10 = pnand %p3864_p1, %p4770_p13  ;;  %p3871_p3 = por %p3870_p6, %p3869_p12 }
  0x9b   : > { %p3867_p5 = pneg %p3866_p10  ;;  %p3873_p8 = por %p3872_p4, %p3871_p3 }
  0x9d   : > { %p3874_p11 = pnand %p3873_p8, %p3867_p5 }
  0x9f   : > { %3877 = shalt.err (!%p3874_p11)
}
  0xa0   : > { %s3878_s6 = scalar_lea.vmem %s391_s22, 64  ;;  %s4009_s3 = smov [#allocation3]  }
  0xa1   : > { %p3879_p0 = scmp.ne.s32.totalorder %s391_s22, %s3878_s6  ;;  %s3883_s15 = sshll.u32 %s4009_s3, 4  ;;  %s3884_s15 = int_to_ptr.vmem [resolvable:$false] %s3883_s15 }
  0xa2   : > { %s3885_s16 = scalar_lea.vmem %s3884_s15, 128  ;;  %p3886_p9 = scmp.lt.s32.totalorder %s391_s22, %s3884_s15 }
  0xa3   : > { %p3881_p2 = pnand %p3879_p0, %p4770_p13  ;;  %p3887_p1 = scmp.lt.s32.totalorder %s3885_s16, %s3878_s6 }
  0xa5   : > { %p3882_p7 = pneg %p3881_p2  ;;  %p3888_p10 = por %p3887_p1, %p3886_p9 }
  0xa7   : > { %p3889_p6 = pnand %p3888_p10, %p3882_p7 }
  0xa9   : > { %3892 = shalt.err (!%p3889_p6)
}
  0xaa   : > { %p4771_p12 = scmp.ne.s32.totalorder %s4764_s28, 0  ;;  %s3159_s29 = sshll.u32 %s3993_s18, 10 }
  0xab   : > { %s422_s30 = scalar_lea.vmem [#allocation7], %s3021_s1  ;;  %s4315_s11 = scalar_lea.hbm %s4712_s4, %s3159_s29 }
  0xac   : > { %3509 = dma.hbm_to_vmem [thread:$0]  (!%p4771_p12), %s4288_s17, 64, %s391_s22, %s379_s13  }
  0xad   : > { %s429_s12 = sshll.u32 %s422_s30, 4  ;;  %s3893_s0 = scalar_lea.hbm %s4315_s11, 1024  ;;  %s4317_s12 = int_to_ptr.vmem [resolvable:$true] %s429_s12 }
  0xae   : > { %p3894_p5 = scmp.ne.s32.totalorder %s4315_s11, %s3893_s0  ;;  %s3898_s22 = scalar_lea.hbm %s4712_s4, 2048 }
  0xaf   : > { %p3899_p8 = scmp.lt.u32.totalorder %s4315_s11, %s4712_s4  ;;  %p3900_p11 = scmp.lt.u32.totalorder %s3898_s22, %s3893_s0 }
  0xb0   : > { %p3896_p3 = pnand %p3894_p5, %p4770_p13  ;;  %p3902_p2 = scmp.lt.u32.totalorder %s3893_s0, %s4315_s11 }
  0xb1   : > { %p3901_p0 = por %p3900_p11, %p3899_p8 }
  0xb2   : > { %p3897_p4 = pneg %p3896_p3 }
  0xb3   : > { %p3903_p7 = por %p3902_p2, %p3901_p0 }
  0xb5   : > { %p3904_p9 = pnand %p3903_p7, %p3897_p4 }
  0xb7   : > { %3907 = shalt.err (!%p3904_p9)
}
  0xb8   : > { %s3908_s6 = scalar_lea.vmem %s4317_s12, 1024  ;;  %s4010_s3 = smov [#allocation7]  }
  0xb9   : > { %p3909_p1 = scmp.ne.s32.totalorder %s4317_s12, %s3908_s6  ;;  %s3913_s15 = sshll.u32 %s4010_s3, 4  ;;  %s3914_s15 = int_to_ptr.vmem [resolvable:$false] %s3913_s15 }
  0xba   : > { %s3915_s16 = scalar_lea.vmem %s3914_s15, 2048  ;;  %p3916_p5 = scmp.lt.s32.totalorder %s4317_s12, %s3914_s15 }
  0xbb   : > { %p3911_p10 = pnand %p3909_p1, %p4770_p13  ;;  %p3917_p3 = scmp.lt.s32.totalorder %s3915_s16, %s3908_s6 }
  0xbd   : > { %p3912_p6 = pneg %p3911_p10  ;;  %p3918_p8 = por %p3917_p3, %p3916_p5 }
  0xbf   : > { %p3919_p11 = pnand %p3918_p8, %p3912_p6 }
  0xc1   : > { %3922 = shalt.err (!%p3919_p11)
}
  0xc2   : > { %3515 = dma.hbm_to_vmem [thread:$0]  (!%p4771_p12), %s4315_s11, 1024, %s4317_s12, %s4211_s24, %s4005_s5, %s4005_s5, %s4006_s21  }
  0xc3   : > { %p4772_p13 = scmp.ne.s32.totalorder %s4753_s26, 0 }
  0xc4   : > { %s459_s19 = sand.u32 (!%p4772_p13), 1, %s3977_s14   ;;  %p4773_p4 = scmp.ne.s32.totalorder (!%p4772_p13), %s4752_s25, 0 }
  0xc5   : > { %457 = sbr.rel (%p4772_p13) target bundleno = 3093 (0xc15), region = 60  ;;  %s3025_s29 = sshll.u32 (!%p4772_p13), %s459_s19, 2 }
  0xc6   : > { %s460_s30 = scalar_lea.sflag (!%p4772_p13), [#allocation4], %s459_s19  ;;  %s4347_s10 = scalar_lea.vmem (!%p4772_p13), [#allocation3], %s3025_s29 }
  0xcc   : > { %3956 = dma.done.wait (%p4773_p4), %s460_s30, 64  }
  0xcd   : > { %3958 = vsyncadd (%p4773_p4), %s460_s30, 4294967232  ;;  %s4774_s28 = sadd.s32 4294967295, %s4001_s20   ;;  %s3477_s24 = smul.u32 192, %s459_s19 }
  0xce   : > { %s468_s7 = sand.u32 1, %s4774_s28  }
  0xcf   : > { %s469_s5 = scalar_lea.sflag [#allocation6], %s468_s7  ;;  %s4355_s26 = scalar_lea.vmem [#allocation5], %s3477_s24 }
  0xd0   : > { %3960 = dma.done.wait (%p4773_p4), %s469_s5, 4096  }
  0xd1   : > { %3962 = vsyncadd (%p4773_p4), %s469_s5, 4294963200  ;;  %s3026_s21 = sshll.u32 %s459_s19, 6  ;;  %p4775_p12 = scmp.ne.s32.totalorder %s4750_s23, 0 }
  0xd2   : > { %s4361_s12 = scalar_lea.vmem [#allocation7], %s3026_s21 }
  0xd3   : > { %3964 = dma.done.wait (%p4775_p12), [#allocation9], 1056  }
  0xd4   : > { %3966 = vsyncadd (%p4775_p12), [#allocation9], 4294966240 }
  0xd5   : > { %3968 = dma.done.wait (%p4775_p12), [#allocation12], 16  }
  0xd6   : > { %3970 = vsyncadd (%p4775_p12), [#allocation12], 4294967280  ;;  %s4776_s11 = sld [smem:[#allocation19_spill]]  ;;  %s4777_s0 = sld [smem:[#allocation18_spill]] }
  0xd7   : > { %s4778_s1 = sld [smem:[#allocation24_spill]]  ;;  %s4779_s16 = sld [smem:[#allocation25_spill]] }
  0xd8   : > { %s4780_s28 = sld [smem:[#allocation28_spill]]  ;;  %s4781_s21 = sld [smem:[#allocation29_spill]] }
  0xd9   : > { %s4782_s22 = sld [smem:[#allocation31_spill]] }
  0xdc   : > { %p557_p0 = scmp.lt.s32.totalorder %s4776_s11, 1  ;;  %p561_p2 = scmp.lt.s32.totalorder %s4777_s0, 1 }
  0xdd   : > { %p3037_p7 = scmp.ne.s32.totalorder %s4777_s0, 0 }
  0xde   : > { %s4800_s11 = smov (!%p557_p0, %s4776_s11), 1 }
  0xdf   : > { %s562_s25 = scalar_select %p561_p2, %s4777_s0, 1 }
  0xe0   : > { %s3030_s17 = sshll.u32 %s4800_s11, 1  ;;  %583 = sbr.rel (%p3037_p7) target bundleno = 231 (0xe7), region = 88 }
  0xe1   : > { %s560_s13 = scalar_lea.vmem %s4778_s1, %s3030_s17  ;;  %s3031_s6 = sshll.u32 %s562_s25, 3 }
  0xe2   : > { %s4381_s19 = scalar_lea.vmem %s4779_s16, %s3031_s6  ;;  %s3160_s23 = sshll.u32 %s562_s25, 8  ;;  %v584_v0 = vld [vmem:[%s560_s13] sm:$0x3] (!%p3037_p7) }
  0xe3   : > { %s4386_s7 = scalar_lea.vmem %s4780_s28, %s3160_s23  ;;  %s4391_s11 = scalar_lea.vmem %s4781_s21, %s3160_s23  ;;  %585 = vst [vmem:[#allocation2] sm:$0x3] (!%p3037_p7), %v584_v0 }
  0xe4   : > { %s4396_s1 = scalar_lea.vmem %s4782_s22, %s3030_s17 }
  0xe7 PF: > { %vm589_vm0 = vcmask 1041408   ;;  %v3597_v8 = vld [vmem:[%s4355_s26] sm:$0xff]   ;;  %v3598_v9 = vld [vmem:[%s4355_s26 + $0x10] sm:$0xff]   ;;  %v4011_v10 = vmov 0.0   ;;  %v3599_v11 = vld [vmem:[%s4355_s26 + $0x8] sm:$0xff]   ;;  %vm4012_vm1 = vmmov 0   ;;  %v604_v15 = vlaneseq }
  0xe8   : > { %3279 = vmatprep.subr.bf16.mxu0 %v4011_v10  ;;  %3287 = vmatprep.subr.bf16.mxu1 %v4011_v10  ;;  %v3600_v12 = vld [vmem:[%s4355_s26 + $0x18] sm:$0xff]   ;;  %v3601_v27 = vld [vmem:[%s4355_s26 + $0x20] sm:$0xff]   ;;  %v3602_v28 = vld [vmem:[%s4355_s26 + $0x30] sm:$0xff]   ;;  %vm1299_vm2 = vcmask 261120   ;;  %vm1537_vm3 = vcmask 1040384   ;;  %vm1484_vm4 = vcmask 9216  }
  0xe9   : > { %3280 = vmatpush3.bf16.xpose.msra.mxu0 %v3597_v8  ;;  %3288 = vmatpush3.bf16.xpose.msra.mxu1 %v3598_v9  ;;  %v4415_v17 = vshrl.u32 %v604_v15, 7  ;;  %v4421_v19 = vld [vmem:[%s4381_s19] sm:$0x3f]  ;;  %v3603_v30 = vld [vmem:[%s4355_s26 + $0x28] sm:$0xff]   ;;  %v3605_v32 = vld [vmem:[%s4355_s26 + $0x40] sm:$0xff]   ;;  %vm1533_vm5 = vcmask 15360  }
  0xea   : > { %v586_v1 = vld [vmem:[#allocation2] sm:$0x3]  ;;  %3281 = vmatprep.subr.bf16.mxu0 %v4011_v10  ;;  %3289 = vmatprep.subr.bf16.mxu1 %v4011_v10  ;;  %v3604_v31 = vld [vmem:[%s4355_s26 + $0x38] sm:$0xff]   ;;  %v3607_v34 = vld [vmem:[%s4355_s26 + $0x48] sm:$0xff]   ;;  %s4783_s2 = sld [smem:[#allocation18_spill]] }
  0xeb   : > { %v590_v2 = vsel %vm589_vm0, %v586_v1, 0.0  ;;  %3283 = vmatprep.mubr.msk.bf16.mxu0 %vm4012_vm1, %v4011_v10  ;;  %3291 = vmatprep.mubr.msk.bf16.mxu1 %vm4012_vm1, %v4011_v10  ;;  %v4418_v18 = vsub.s32 0, %v4415_v17  ;;  %v4424_v20 = vsub.s32 1, %v4415_v17  ;;  %v3606_v33 = vld [vmem:[%s4355_s26 + $0x50] sm:$0xff]   ;;  %v3608_v35 = vld [vmem:[%s4355_s26 + $0x58] sm:$0xff]   ;;  %v3609_v36 = vld [vmem:[%s4355_s26 + $0x60] sm:$0xff]  }
  0xec   : > { %591 = vadd.xlane.f32.xlu0 %v590_v2  ;;  %v3610_v37 = vld [vmem:[%s4355_s26 + $0x70] sm:$0xff]   ;;  %v3611_v38 = vld [vmem:[%s4355_s26 + $0x68] sm:$0xff]   ;;  %v3612_v39 = vld [vmem:[%s4355_s26 + $0x78] sm:$0xff]  }
  0xed   : > { %v607_v21 = vrot.slane %v4421_v19, %v4418_v18  ;;  %v612_v23 = vrot.slane %v4421_v19, %v4424_v20  ;;  %v3613_v40 = vld [vmem:[%s4355_s26 + $0x80] sm:$0xff]   ;;  %v3614_v41 = vld [vmem:[%s4355_s26 + $0x90] sm:$0xff]   ;;  %v3615_v42 = vld [vmem:[%s4355_s26 + $0x88] sm:$0xff]  }
  0xee   : > { %v3616_v43 = vld [vmem:[%s4355_s26 + $0x98] sm:$0xff]   ;;  %v3617_v44 = vld [vmem:[%s4355_s26 + $0xa0] sm:$0xff]   ;;  %v3618_v45 = vld [vmem:[%s4355_s26 + $0xb0] sm:$0xff]  }
  0xef   : > { %v3619_v46 = vld [vmem:[%s4355_s26 + $0xa8] sm:$0xff]   ;;  %v3620_v47 = vld [vmem:[%s4355_s26 + $0xb8] sm:$0xff]  }
  0xf0   : > { %p3146_p9 = scmp.ne.s32.totalorder %s4783_s2, 1 }
  0xf1   : > { %3282 = vmatpush3.bf16.xpose.msra.mxu0 %v3599_v11  ;;  %3290 = vmatpush3.bf16.xpose.msra.mxu1 %v3600_v12  ;;  %vm4015_vm6 = vmmov (!%p3146_p9), 0  }
  0xf2   : > { %3295 = vmatprep.subr.bf16.mxu0 %v4011_v10  ;;  %3303 = vmatprep.subr.bf16.mxu1 %v4011_v10 }
 0x179   : > { %v592_v3 = vpop.xlane.xlu0 %591 }
 0x17a   : > { %v594_v4 = vmul.f32 0.0078125, %v592_v3 }
 0x17c   : > { %v595_v5 = vsub.f32 %v586_v1, %v594_v4 }
 0x17e   : > { %v596_v6 = vmul.f32 %v595_v5, %v595_v5 }
 0x180   : > { %v597_v7 = vsel %vm589_vm0, %v596_v6, 0.0 }
 0x181   : > { %598 = vadd.xlane.f32.xlu0 %v597_v7 }
 0x20e   : > { %v599_v13 = vpop.xlane.xlu0 %598 }
 0x20f   : > { %v600_v14 = vmul.f32 0.0078125, %v599_v13 }
 0x211   : > { %v601_v16 = vadd.f32 1e-06, %v600_v14 }
 0x213   : > { %3709 = vrsqrt.f32 %v601_v16 }
 0x21d   : > { %v3710_v22 = vpop.eup %3709 }
 0x21e   : > { %v603_v24 = vmul.f32 %v3710_v22, %v595_v5 }
 0x220   : > { %v608_v25 = vmul.f32 %v607_v21, %v603_v24 }
 0x222   : > { %v613_v26 = vadd.f32 %v612_v23, %v608_v25 }
 0x224   : > { %v4432_v29 = vpack.c.bf16 %v613_v26, %v613_v26 }
 0x226   : > { %3284 = vmatmul.mubr.bf16.vlgmr.msra.gmra.mrb[0].mxu0 %v4432_v29  ;;  %3292 = vmatmul.mubr.bf16.vlgmr.msra.gmra.mrb[0].mxu1 %v4432_v29 }
 0x227   : > { %3296 = vmatpush3.bf16.xpose.msra.mxu0 %v3601_v27  ;;  %3304 = vmatpush3.bf16.xpose.msra.mxu1 %v3602_v28 }
 0x228   : > { %3297 = vmatprep.subr.bf16.mxu0 %v4011_v10  ;;  %3305 = vmatprep.subr.bf16.mxu1 %v4011_v10 }
 0x229   : > { %3299 = vmatprep.mubr.msk.bf16.mxu0 %vm4012_vm1, %v4011_v10  ;;  %3307 = vmatprep.mubr.msk.bf16.mxu1 %vm4012_vm1, %v4011_v10 }
 0x22f   : > { %3298 = vmatpush3.bf16.xpose.msra.mxu0 %v3603_v30  ;;  %3306 = vmatpush3.bf16.xpose.msra.mxu1 %v3604_v31 }
 0x230   : > { %3311 = vmatprep.subr.bf16.mxu0 %v4011_v10  ;;  %3319 = vmatprep.subr.bf16.mxu1 %v4011_v10 }
 0x236   : > { %3300 = vmatmul.mubr.bf16.vlgmr.msra.gmra.mrb[4].mxu0 %v4432_v29  ;;  %3308 = vmatmul.mubr.bf16.vlgmr.msra.gmra.mrb[4].mxu1 %v4432_v29 }
 0x237   : > { %3312 = vmatpush3.bf16.xpose.msra.mxu0 %v3605_v32  ;;  %3320 = vmatpush3.bf16.xpose.msra.mxu1 %v3606_v33 }
 0x238   : > { %3313 = vmatprep.subr.bf16.mxu0 %v4011_v10  ;;  %3321 = vmatprep.subr.bf16.mxu1 %v4011_v10 }
 0x239   : > { %3315 = vmatprep.mubr.msk.bf16.mxu0 %vm4012_vm1, %v4011_v10  ;;  %3323 = vmatprep.mubr.msk.bf16.mxu1 %vm4012_vm1, %v4011_v10 }
 0x23f   : > { %3314 = vmatpush3.bf16.xpose.msra.mxu0 %v3607_v34  ;;  %3322 = vmatpush3.bf16.xpose.msra.mxu1 %v3608_v35 }
 0x240   : > { %3327 = vmatprep.subr.bf16.mxu0 %v4011_v10  ;;  %3335 = vmatprep.subr.bf16.mxu1 %v4011_v10 }
 0x246   : > { %3316 = vmatmul.mubr.bf16.vlgmr.msra.gmra.mrb[8].mxu0 %v4432_v29  ;;  %3324 = vmatmul.mubr.bf16.vlgmr.msra.gmra.mrb[8].mxu1 %v4432_v29 }
 0x247   : > { %3328 = vmatpush3.bf16.xpose.msra.mxu0 %v3609_v36  ;;  %3336 = vmatpush3.bf16.xpose.msra.mxu1 %v3610_v37 }
 0x248   : > { %3329 = vmatprep.subr.bf16.mxu0 %v4011_v10  ;;  %3337 = vmatprep.subr.bf16.mxu1 %v4011_v10 }
 0x249   : > { %3331 = vmatprep.mubr.msk.bf16.mxu0 %vm4012_vm1, %v4011_v10  ;;  %3339 = vmatprep.mubr.msk.bf16.mxu1 %vm4012_vm1, %v4011_v10 }
 0x24f   : > { %3330 = vmatpush3.bf16.xpose.msra.mxu0 %v3611_v38  ;;  %3338 = vmatpush3.bf16.xpose.msra.mxu1 %v3612_v39 }
 0x250   : > { %3343 = vmatprep.subr.bf16.mxu0 %v4011_v10  ;;  %3351 = vmatprep.subr.bf16.mxu1 %v4011_v10 }
 0x256   : > { %3332 = vmatmul.mubr.bf16.vlgmr.msra.gmra.mrb[12].mxu0 %v4432_v29  ;;  %3340 = vmatmul.mubr.bf16.vlgmr.msra.gmra.mrb[12].mxu1 %v4432_v29 }
 0x257   : > { %3344 = vmatpush3.bf16.xpose.msra.mxu0 %v3613_v40  ;;  %3352 = vmatpush3.bf16.xpose.msra.mxu1 %v3614_v41 }
 0x258   : > { %3345 = vmatprep.subr.bf16.mxu0 %v4011_v10  ;;  %3353 = vmatprep.subr.bf16.mxu1 %v4011_v10 }
 0x259   : > { %3347 = vmatprep.mubr.msk.bf16.mxu0 %vm4012_vm1, %v4011_v10  ;;  %3355 = vmatprep.mubr.msk.bf16.mxu1 %vm4012_vm1, %v4011_v10 }
 0x25f   : > { %3346 = vmatpush3.bf16.xpose.msra.mxu0 %v3615_v42  ;;  %3354 = vmatpush3.bf16.xpose.msra.mxu1 %v3616_v43 }
 0x260   : > { %3359 = vmatprep.subr.bf16.mxu0 %v4011_v10  ;;  %3367 = vmatprep.subr.bf16.mxu1 %v4011_v10 }
 0x266   : > { %3348 = vmatmul.mubr.bf16.vlgmr.msra.gmra.mrb[16].mxu0 %v4432_v29  ;;  %3356 = vmatmul.mubr.bf16.vlgmr.msra.gmra.mrb[16].mxu1 %v4432_v29 }
 0x267   : > { %3360 = vmatpush3.bf16.xpose.msra.mxu0 %v3617_v44  ;;  %3368 = vmatpush3.bf16.xpose.msra.mxu1 %v3618_v45 }
 0x268   : > { %3361 = vmatprep.subr.bf16.mxu0 %v4011_v10  ;;  %3369 = vmatprep.subr.bf16.mxu1 %v4011_v10 }
 0x269   : > { %3363 = vmatprep.mubr.msk.bf16.mxu0 %vm4012_vm1, %v4011_v10  ;;  %3371 = vmatprep.mubr.msk.bf16.mxu1 %vm4012_vm1, %v4011_v10 }
 0x26f   : > { %3362 = vmatpush3.bf16.xpose.msra.mxu0 %v3619_v46  ;;  %3370 = vmatpush3.bf16.xpose.msra.mxu1 %v3620_v47 }
 0x270   : > { %3375 = vmatprep.subr.bf16.mxu0 %v4011_v10  ;;  %3381 = vmatprep.subr.bf16.mxu1 %v4011_v10 }
 0x276   : > { %3364 = vmatmul.mubr.bf16.vlgmr.msra.gmra.mrb[20].mxu0 %v4432_v29  ;;  %3372 = vmatmul.mubr.bf16.vlgmr.msra.gmra.mrb[20].mxu1 %v4432_v29 }
 0x277   : > { %3377 = vmatprep.mubr.msk.bf16.mxu0 %vm4012_vm1, %v4011_v10  ;;  %3383 = vmatprep.mubr.msk.bf16.mxu1 %vm4012_vm1, %v4011_v10 }
 0x2f9   : > { %v709_v48 = vpop.f32.mrb[0].mxu0  ;;  %v761_v49 = vpop.f32.mrb[0].mxu1 }
 0x2fa   : > { %v3285_v50 = vpop.f32.mrb[1].mxu0  ;;  %v3293_v51 = vpop.f32.mrb[1].mxu1  ;;  %v1287_v13 = vpack.c.bf16 %v709_v48, %v709_v48  ;;  %v1288_v14 = vpack.c.bf16 %v761_v49, %v761_v49 }
 0x2fb   : > { %v712_v52 = vpop.f32.mrb[2].mxu0  ;;  %v764_v53 = vpop.f32.mrb[2].mxu1 }
 0x2fc   : > { %v3286_v54 = vpop.f32.mrb[3].mxu0  ;;  %v3294_v55 = vpop.f32.mrb[3].mxu1 }
 0x309   : > { %v813_v56 = vpop.f32.mrb[4].mxu0  ;;  %v865_v57 = vpop.f32.mrb[4].mxu1 }
 0x30a   : > { %v3301_v58 = vpop.f32.mrb[5].mxu0  ;;  %v3309_v59 = vpop.f32.mrb[5].mxu1  ;;  %v1289_v31 = vpack.c.bf16 %v813_v56, %v813_v56  ;;  %v1290_v32 = vpack.c.bf16 %v865_v57, %v865_v57 }
 0x30b   : > { %v816_v60 = vpop.f32.mrb[6].mxu0  ;;  %v868_v61 = vpop.f32.mrb[6].mxu1 }
 0x30c   : > { %v3302_v62 = vpop.f32.mrb[7].mxu0  ;;  %v3310_v63 = vpop.f32.mrb[7].mxu1 }
 0x319   : > { %v917_v0 = vpop.f32.mrb[8].mxu0  ;;  %v969_v1 = vpop.f32.mrb[8].mxu1 }
 0x31a   : > { %v1291_v2 = vpack.c.bf16 %v917_v0, %v917_v0  ;;  %v1292_v3 = vpack.c.bf16 %v969_v1, %v969_v1  ;;  %v3317_v4 = vpop.f32.mrb[9].mxu0  ;;  %v3325_v5 = vpop.f32.mrb[9].mxu1 }
 0x31b   : > { %v920_v6 = vpop.f32.mrb[10].mxu0  ;;  %v972_v7 = vpop.f32.mrb[10].mxu1 }
 0x31c   : > { %v1304_v8 = vsel %vm1299_vm2, %v1291_v2, 0  ;;  %v1350_v9 = vsel %vm1299_vm2, %v1292_v3, 0  ;;  %v3318_v11 = vpop.f32.mrb[11].mxu0  ;;  %v3326_v12 = vpop.f32.mrb[11].mxu1 }
 0x31d   : > { %3376 = vmatpush3.bf16.xpose.msra.mxu0 %v1304_v8  ;;  %3382 = vmatpush3.bf16.xpose.msra.mxu1 %v1350_v9 }
 0x31e   : > { %3387 = vmatprep.subr.bf16.mxu0 %v4011_v10  ;;  %3393 = vmatprep.subr.bf16.mxu1 %v4011_v10 }
 0x324   : > { %3378 = vmatmul.mubr.msk.bf16.vlgmr.msra.gmra.mrb[24].mxu0 %vm1299_vm2, %v1287_v13  ;;  %3384 = vmatmul.mubr.msk.bf16.vlgmr.msra.gmra.mrb[24].mxu1 %vm1299_vm2, %v1288_v14 }
 0x325   : > { %3389 = vmatprep.mubr.msk.bf16.mxu0 %vm4012_vm1, %v4011_v10  ;;  %3395 = vmatprep.mubr.msk.bf16.mxu1 %vm4012_vm1, %v4011_v10 }
 0x329   : > { %v1021_v15 = vpop.f32.mrb[12].mxu0  ;;  %v1073_v16 = vpop.f32.mrb[12].mxu1 }
 0x32a   : > { %v1293_v21 = vpack.c.bf16 %v1021_v15, %v1021_v15  ;;  %v1294_v22 = vpack.c.bf16 %v1073_v16, %v1073_v16  ;;  %v3333_v23 = vpop.f32.mrb[13].mxu0  ;;  %v3341_v24 = vpop.f32.mrb[13].mxu1 }
 0x32b   : > { %v1024_v25 = vpop.f32.mrb[14].mxu0  ;;  %v1076_v26 = vpop.f32.mrb[14].mxu1 }
 0x32c   : > { %v1396_v27 = vsel %vm1299_vm2, %v1293_v21, 0  ;;  %v1442_v28 = vsel %vm1299_vm2, %v1294_v22, 0  ;;  %v3334_v29 = vpop.f32.mrb[15].mxu0  ;;  %v3342_v30 = vpop.f32.mrb[15].mxu1 }
 0x32d   : > { %3388 = vmatpush3.bf16.xpose.msra.mxu0 %v1396_v27  ;;  %3394 = vmatpush3.bf16.xpose.msra.mxu1 %v1442_v28 }
 0x32e   : > { %3399 = vmatprep.subr.bf16.mxu0 %v4011_v10  ;;  %3405 = vmatprep.subr.bf16.mxu1 %v4011_v10 }
 0x334   : > { %3390 = vmatmul.mubr.msk.bf16.vlgmr.msra.gmra.mrb[28].mxu0 %vm1299_vm2, %v1289_v31  ;;  %3396 = vmatmul.mubr.msk.bf16.vlgmr.msra.gmra.mrb[28].mxu1 %vm1299_vm2, %v1290_v32 }
 0x335   : > { %3401 = vmatprep.mubr.msk.bf16.mxu0 %vm4012_vm1, %v4011_v10  ;;  %3407 = vmatprep.mubr.msk.bf16.mxu1 %vm4012_vm1, %v4011_v10 }
 0x339   : > { %v1125_v33 = vpop.f32.mrb[16].mxu0  ;;  %v1177_v34 = vpop.f32.mrb[16].mxu1 }
 0x33a   : > { %v1295_v35 = vpack.c.bf16 %v1125_v33, %v1125_v33  ;;  %v1296_v36 = vpack.c.bf16 %v1177_v34, %v1177_v34  ;;  %v3349_v37 = vpop.f32.mrb[17].mxu0  ;;  %v3357_v38 = vpop.f32.mrb[17].mxu1 }
 0x33b   : > { %v1128_v39 = vpop.f32.mrb[18].mxu0  ;;  %v1180_v40 = vpop.f32.mrb[18].mxu1 }
 0x33c   : > { %v1539_v41 = vsel %vm1537_vm3, %v1295_v35, 0  ;;  %v1585_v42 = vsel %vm1537_vm3, %v1296_v36, 0  ;;  %v3350_v43 = vpop.f32.mrb[19].mxu0  ;;  %v3358_v44 = vpop.f32.mrb[19].mxu1 }
 0x33d   : > { %3400 = vmatpush3.bf16.msra.mxu0 %v1539_v41  ;;  %3406 = vmatpush3.bf16.msra.mxu1 %v1585_v42 }
 0x33e   : > { %3411 = vmatprep.subr.bf16.mxu0 %v4011_v10  ;;  %3417 = vmatprep.subr.bf16.mxu1 %v4011_v10 }
 0x349   : > { %v1229_v45 = vpop.f32.mrb[20].mxu0  ;;  %v1281_v46 = vpop.f32.mrb[20].mxu1 }
 0x34a   : > { %v1297_v47 = vpack.c.bf16 %v1229_v45, %v1229_v45  ;;  %v1298_v48 = vpack.c.bf16 %v1281_v46, %v1281_v46  ;;  %v3365_v49 = vpop.f32.mrb[21].mxu0  ;;  %v3373_v50 = vpop.f32.mrb[21].mxu1 }
 0x34b   : > { %v1232_v51 = vpop.f32.mrb[22].mxu0  ;;  %v1284_v52 = vpop.f32.mrb[22].mxu1 }
 0x34c   : > { %v4533_v53 = vsel %vm1537_vm3, %v1297_v47, 0  ;;  %v4536_v54 = vsel %vm1537_vm3, %v1298_v48, 0  ;;  %v3366_v55 = vpop.f32.mrb[23].mxu0  ;;  %v3374_v56 = vpop.f32.mrb[23].mxu1 }
 0x34d   : > { %v3623_v56 = vld [vmem:[%s4361_s12 + $0x10] sm:$0xff]  }
 0x3f7   : > { %v1340_v57 = vpop.f32.mrb[24].mxu0  ;;  %v1386_v58 = vpop.f32.mrb[24].mxu1 }
 0x3f8   : > { %v3379_v59 = vpop.f32.mrb[25].mxu0  ;;  %v3385_v60 = vpop.f32.mrb[25].mxu1  ;;  %v1485_v61 = vsel %vm1484_vm4, %v1340_v57, -inf  ;;  %v1488_v2 = vsel %vm1484_vm4, %v1386_v58, -inf }
 0x3f9   : > { %v1389_v62 = vpop.f32.mrb[26].mxu1  ;;  %1486 = vmax.xlane.f32.xlu1 %v1485_v61  ;;  %v1343_v63 = vpop.f32.mrb[26].mxu0  ;;  %v3625_v59 = vld [vmem:[%s4361_s12 + $0x20] sm:$0xff]  }
 0x3fa   : > { %v3380_v0 = vpop.f32.mrb[27].mxu0  ;;  %v3386_v1 = vpop.f32.mrb[27].mxu1 }
 0x3fb   : > { %v3626_v1 = vld [vmem:[%s4361_s12 + $0x30] sm:$0xff]  }
 0x3fd   : > { %1489 = vmax.xlane.f32.xlu1 %v1488_v2  ;;  %v3627_v2 = vld [vmem:[%s4361_s12 + $0x28] sm:$0xff]  }
 0x407   : > { %v1432_v3 = vpop.f32.mrb[28].mxu0  ;;  %v1478_v4 = vpop.f32.mrb[28].mxu1 }
 0x408   : > { %v3391_v5 = vpop.f32.mrb[29].mxu0  ;;  %v3397_v6 = vpop.f32.mrb[29].mxu1  ;;  %v1494_v7 = vsel %vm1484_vm4, %v1478_v4, -inf  ;;  %v1491_v8 = vsel %vm1484_vm4, %v1432_v3, -inf }
 0x409   : > { %v1481_v9 = vpop.f32.mrb[30].mxu1  ;;  %1495 = vmax.xlane.f32.xlu1 %v1494_v7  ;;  %1492 = vmax.xlane.f32.xlu0 %v1491_v8  ;;  %v1435_v11 = vpop.f32.mrb[30].mxu0  ;;  %v3628_v7 = vld [vmem:[%s4361_s12 + $0x38] sm:$0xff]  }
 0x40a   : > { %v3392_v12 = vpop.f32.mrb[31].mxu0  ;;  %v3398_v13 = vpop.f32.mrb[31].mxu1 }
 0x486   : > { %v1487_v14 = vpop.xlane.xlu1 %1486 }
 0x487   : > { %v1497_v15 = vsub.f32 %v1340_v57, %v1487_v14  ;;  %v3624_v57 = vld [vmem:[%s4361_s12 + $0x18] sm:$0xff]  }
 0x489   : > { %v1501_v16 = vmul.f32 1.442695, %v1497_v15 }
 0x48a   : > { %v1490_v21 = vpop.xlane.xlu1 %1489 }
 0x48b   : > { %3711 = vpow2.f32 %v1501_v16  ;;  %v1498_v22 = vsub.f32 %v1386_v58, %v1490_v21 }
 0x48d   : > { %v1503_v23 = vmul.f32 1.442695, %v1498_v22 }
 0x48f   : > { %3713 = vpow2.f32 %v1503_v23 }
 0x495   : > { %v3712_v24 = vpop.eup %3711 }
 0x496   : > { %v1496_v25 = vpop.xlane.xlu1 %1495  ;;  %v1493_v26 = vpop.xlane.xlu0 %1492  ;;  %v1509_v27 = vsel %vm1484_vm4, %v3712_v24, 0.0 }
 0x497   : > { %v1500_v28 = vsub.f32 %v1478_v4, %v1496_v25  ;;  %v1499_v29 = vsub.f32 %v1432_v3, %v1493_v26  ;;  %1510 = vadd.xlane.f32.xlu0 %v1509_v27 }
 0x499   : > { %v3714_v30 = vpop.eup %3713  ;;  %v1507_v31 = vmul.f32 1.442695, %v1500_v28  ;;  %v1505_v32 = vmul.f32 1.442695, %v1499_v29 }
 0x49a   : > { %v1512_v33 = vsel %vm1484_vm4, %v3714_v30, 0.0 }
 0x49b   : > { %3715 = vpow2.f32 %v1507_v31  ;;  %1513 = vadd.xlane.f32.xlu1 %v1512_v33 }
 0x49c   : > { %3717 = vpow2.f32 %v1505_v32 }
 0x4a5   : > { %v3716_v34 = vpop.eup %3715 }
 0x4a6   : > { %v3718_v35 = vpop.eup %3717  ;;  %v1518_v36 = vsel %vm1484_vm4, %v3716_v34, 0.0 }
 0x4a7   : > { %1519 = vadd.xlane.f32.xlu1 %v1518_v36  ;;  %v1515_v37 = vsel %vm1484_vm4, %v3718_v35, 0.0  ;;  %v1969_v36 = vsub.s32 4, %v4415_v17 }
 0x4a8   : > { %1516 = vadd.xlane.f32.xlu0 %v1515_v37 }
 0x524   : > { %v1511_v38 = vpop.xlane.xlu0 %1510 }
 0x525   : > { %3719 = vrcp.f32 %v1511_v38 }
 0x528   : > { %v1514_v39 = vpop.xlane.xlu1 %1513 }
 0x529   : > { %3721 = vrcp.f32 %v1514_v39 }
 0x52f   : > { %v3720_v40 = vpop.eup %3719 }
 0x530   : > { %v1522_v41 = vmul.f32 %v3720_v40, %v3712_v24 }
 0x532   : > { %v1529_v42 = vpack.c.bf16 %v1522_v41, %v1522_v41 }
 0x533   : > { %v3722_v43 = vpop.eup %3721 }
 0x534   : > { %v1524_v44 = vmul.f32 %v3722_v43, %v3714_v30  ;;  %v1520_v45 = vpop.xlane.xlu1 %1519  ;;  %3402 = vmatmul.mubr.msk.bf16.vlgmr.msra.gmra.mrb[32].mxu0 %vm1533_vm5, %v1529_v42 }
 0x535   : > { %3723 = vrcp.f32 %v1520_v45  ;;  %3412 = vmatpush3.bf16.msra.mxu0 %v4533_v53  ;;  %v1517_v46 = vpop.xlane.xlu0 %1516  ;;  %3413 = vmatprep.mubr.msk.bf16.mxu0 %vm4012_vm1, %v4011_v10  ;;  %v3621_v53 = vld [vmem:[%s4361_s12] sm:$0xff]  }
 0x536   : > { %3725 = vrcp.f32 %v1517_v46  ;;  %v1530_v47 = vpack.c.bf16 %v1524_v44, %v1524_v44  ;;  %3423 = vmatprep.subr.bf16.mxu0 %v4011_v10  ;;  %v1970_v46 = vrot.slane %v4421_v19, %v1969_v36 }
 0x538   : > { %3408 = vmatmul.mubr.msk.bf16.vlgmr.msra.gmra.mrb[32].mxu1 %vm1533_vm5, %v1530_v47  ;;  %v3737_v47 = vld [vmem:[#allocation2] sm:$0x3] }
 0x539   : > { %3418 = vmatpush3.bf16.msra.mxu1 %v4536_v54  ;;  %3419 = vmatprep.mubr.msk.bf16.mxu1 %vm4012_vm1, %v4011_v10  ;;  %v3622_v54 = vld [vmem:[%s4361_s12 + $0x8] sm:$0xff]  }
 0x53a   : > { %3431 = vmatprep.subr.bf16.mxu1 %v4011_v10 }
 0x53f   : > { %v3724_v48 = vpop.eup %3723 }
 0x540   : > { %v3726_v49 = vpop.eup %3725  ;;  %v1528_v50 = vmul.f32 %v3724_v48, %v3716_v34 }
 0x541   : > { %v1526_v51 = vmul.f32 %v3726_v49, %v3718_v35 }
 0x542   : > { %v1532_v52 = vpack.c.bf16 %v1528_v50, %v1528_v50 }
 0x543   : > { %v1531_v55 = vpack.c.bf16 %v1526_v51, %v1526_v51  ;;  %v3629_v51 = vld [vmem:[%s4386_s7] ss:$16 sps:$4 sm:$0xff]  }
 0x544   : > { %3420 = vmatmul.mubr.msk.bf16.vlgmr.msra.gmra.mrb[36].mxu1 %vm1533_vm5, %v1532_v52  ;;  %v3631_v52 = vld [vmem:[%s4386_s7 + $0x4] ss:$16 sps:$4 sm:$0xff]  }
 0x545   : > { %3414 = vmatmul.mubr.msk.bf16.vlgmr.msra.gmra.mrb[36].mxu0 %vm1533_vm5, %v1531_v55  ;;  %3435 = vmatprep.mubr.msk.bf16.mxu1 %vm4012_vm1, %v4011_v10  ;;  %v3634_v55 = vld [vmem:[%s4386_s7 + $0xc] ss:$16 sps:$4 sm:$0xff]  }
 0x546   : > { %3424 = vmatpush3.bf16.msra.mxu0 %v3621_v53  ;;  %3427 = vmatprep.mubr.msk.bf16.mxu0 %vm4012_vm1, %v4011_v10  ;;  %v3632_v53 = vld [vmem:[%s4386_s7 + $0x8] ss:$16 sps:$4 sm:$0xff]  }
 0x547   : > { %3425 = vmatprep.subr.bf16.mxu0 %v4011_v10  ;;  %3432 = vmatpush3.bf16.msra.mxu1 %v3623_v56  ;;  %v3640_v56 = vld [vmem:[%s4386_s7 + $0x2c] ss:$16 sps:$4 sm:$0xff]  }
 0x548   : > { %3433 = vmatprep.subr.bf16.mxu1 %v4011_v10 }
 0x54a   : > { %3426 = vmatpush3.bf16.msra.mxu0 %v3622_v54  ;;  %v3637_v54 = vld [vmem:[%s4386_s7 + $0x24] ss:$16 sps:$4 sm:$0xff]  }
 0x54b   : > { %3439 = vmatprep.subr.bf16.mxu0 %v4011_v10  ;;  %3434 = vmatpush3.bf16.msra.mxu1 %v3624_v57  ;;  %v3635_v57 = vld [vmem:[%s4386_s7 + $0x20] ss:$16 sps:$4 sm:$0xff]  }
 0x54c   : > { %3447 = vmatprep.subr.bf16.mxu1 %v4011_v10 }
 0x607   : > { %v1575_v58 = vpop.f32.mrb[32].mxu0 }
 0x608   : > { %v1719_v60 = vpack.c.bf16 %v1575_v58, %v1575_v58  ;;  %v3403_v61 = vpop.f32.mrb[33].mxu0  ;;  %v3638_v58 = vld [vmem:[%s4386_s7 + $0x28] ss:$16 sps:$4 sm:$0xff]  }
 0x609   : > { %v1578_v62 = vpop.f32.mrb[34].mxu0  ;;  %v3641_v61 = vld [vmem:[%s4386_s7 + $0x40] ss:$16 sps:$4 sm:$0xff]  }
 0x60a   : > { %v3404_v63 = vpop.f32.mrb[35].mxu0  ;;  %3428 = vmatmul.mubr.msk.bf16.vlgmr.msra.gmra.mrb[40].mxu0 %vm1299_vm2, %v1719_v60  ;;  %v3646_v60 = vld [vmem:[%s4386_s7 + $0x4c] ss:$16 sps:$4 sm:$0xff]   ;;  %v3644_v62 = vld [vmem:[%s4386_s7 + $0x48] ss:$16 sps:$4 sm:$0xff]  }
 0x60b   : > { %v1621_v0 = vpop.f32.mrb[32].mxu1  ;;  %3440 = vmatpush3.bf16.msra.mxu0 %v3625_v59  ;;  %3443 = vmatprep.mubr.msk.bf16.mxu0 %vm4012_vm1, %v4011_v10  ;;  %v3643_v59 = vld [vmem:[%s4386_s7 + $0x44] ss:$16 sps:$4 sm:$0xff]  }
 0x60c   : > { %v1720_v3 = vpack.c.bf16 %v1621_v0, %v1621_v0  ;;  %v3409_v4 = vpop.f32.mrb[33].mxu1  ;;  %3441 = vmatprep.subr.bf16.mxu0 %v4011_v10 }
 0x60d   : > { %v1624_v5 = vpop.f32.mrb[34].mxu1  ;;  %v3649_v4 = vld [vmem:[%s4386_s7 + $0x64] ss:$16 sps:$4 sm:$0xff]  }
 0x60e   : > { %v3410_v6 = vpop.f32.mrb[35].mxu1  ;;  %3436 = vmatmul.mubr.msk.bf16.vlgmr.msra.gmra.mrb[40].mxu1 %vm1299_vm2, %v1720_v3  ;;  %v3652_v5 = vld [vmem:[%s4386_s7 + $0x6c] ss:$16 sps:$4 sm:$0xff]  }
 0x60f   : > { %3448 = vmatpush3.bf16.msra.mxu1 %v3626_v1  ;;  %3442 = vmatpush3.bf16.msra.mxu0 %v3627_v2  ;;  %v3647_v6 = vld [vmem:[%s4386_s7 + $0x60] ss:$16 sps:$4 sm:$0xff]  }
 0x610   : > { %3449 = vmatprep.subr.bf16.mxu1 %v4011_v10  ;;  %3451 = vmatprep.mubr.msk.bf16.mxu1 %vm4012_vm1, %v4011_v10 }
 0x611   : > { %2209 = vmatprep.subr.bf16.mxu0 %v3631_v52  ;;  %v3688_v52 = vld [vmem:[%s4391_s11 + $0x90] sm:$0xff]  }
 0x613   : > { %3450 = vmatpush3.bf16.msra.mxu1 %v3628_v7  ;;  %v3650_v7 = vld [vmem:[%s4386_s7 + $0x68] ss:$16 sps:$4 sm:$0xff]  }
 0x614   : > { %2250 = vmatprep.subr.bf16.mxu1 %v3634_v55  ;;  %v3690_v55 = vld [vmem:[%s4391_s11 + $0xd8] sm:$0xff]  }
 0x617   : > { %v1713_v8 = vpop.f32.mrb[36].mxu1 }
 0x618   : > { %v1667_v9 = vpop.f32.mrb[36].mxu0  ;;  %v1722_v11 = vpack.c.bf16 %v1713_v8, %v1713_v8  ;;  %v3421_v12 = vpop.f32.mrb[37].mxu1  ;;  %v3655_v8 = vld [vmem:[%s4386_s7 + $0x84] ss:$16 sps:$4 sm:$0xff]  }
 0x619   : > { %v1721_v13 = vpack.c.bf16 %v1667_v9, %v1667_v9  ;;  %v3415_v14 = vpop.f32.mrb[37].mxu0  ;;  %v1716_v15 = vpop.f32.mrb[38].mxu1  ;;  %v3658_v9 = vld [vmem:[%s4386_s7 + $0x8c] ss:$16 sps:$4 sm:$0xff]   ;;  %v3656_v12 = vld [vmem:[%s4386_s7 + $0x88] ss:$16 sps:$4 sm:$0xff]  }
 0x61a   : > { %v1670_v16 = vpop.f32.mrb[38].mxu0  ;;  %v3422_v21 = vpop.f32.mrb[39].mxu1  ;;  %3452 = vmatmul.mubr.msk.bf16.vlgmr.msra.gmra.mrb[44].mxu1 %vm1299_vm2, %v1722_v11  ;;  %v3653_v11 = vld [vmem:[%s4386_s7 + $0x80] ss:$16 sps:$4 sm:$0xff]   ;;  %v3664_v14 = vld [vmem:[%s4386_s7 + $0xac] ss:$16 sps:$4 sm:$0xff]  }
 0x61b   : > { %v3416_v22 = vpop.f32.mrb[39].mxu0  ;;  %3444 = vmatmul.mubr.msk.bf16.vlgmr.msra.gmra.mrb[44].mxu0 %vm1299_vm2, %v1721_v13  ;;  %2251 = vmatpush1.bf16.msra.mxu1 %v3632_v53  ;;  %v3661_v13 = vld [vmem:[%s4386_s7 + $0xa4] ss:$16 sps:$4 sm:$0xff]   ;;  %v3659_v15 = vld [vmem:[%s4386_s7 + $0xa0] ss:$16 sps:$4 sm:$0xff]   ;;  %v3689_v53 = vld [vmem:[%s4391_s11 + $0x58] sm:$0xff]  }
 0x61c   : > { %2210 = vmatpush1.bf16.msra.mxu0 %v3629_v51  ;;  %2252 = vmatprep.subr.bf16.mxu1 %v3640_v56  ;;  %v3662_v16 = vld [vmem:[%s4386_s7 + $0xa8] ss:$16 sps:$4 sm:$0xff]   ;;  %v3667_v21 = vld [vmem:[%s4386_s7 + $0xc4] ss:$16 sps:$4 sm:$0xff]   ;;  %v3670_v22 = vld [vmem:[%s4386_s7 + $0xcc] ss:$16 sps:$4 sm:$0xff]  }
 0x61d   : > { %2211 = vmatprep.subr.bf16.mxu0 %v3637_v54  ;;  %v3687_v51 = vld [vmem:[%s4391_s11 + $0x10] sm:$0xff]   ;;  %v3691_v54 = vld [vmem:[%s4391_s11 + $0x18] sm:$0xff]  }
 0x61e   : > { %v3692_v56 = vld [vmem:[%s4391_s11 + $0x98] sm:$0xff]  }
 0x61f   : > { %2253 = vmatpush1.bf16.msra.mxu1 %v3638_v58  ;;  %v3694_v58 = vld [vmem:[%s4391_s11 + $0xe0] sm:$0xff]  }
 0x620   : > { %2212 = vmatpush1.bf16.msra.mxu0 %v3635_v57  ;;  %2254 = vmatprep.subr.bf16.mxu1 %v3646_v60  ;;  %v3693_v57 = vld [vmem:[%s4391_s11 + $0x60] sm:$0xff]  }
 0x621   : > { %2213 = vmatprep.subr.bf16.mxu0 %v3643_v59  ;;  %v3695_v59 = vld [vmem:[%s4391_s11 + $0x20] sm:$0xff]  }
 0x622   : > { %v3696_v60 = vld [vmem:[%s4391_s11 + $0xa0] sm:$0xff]  }
 0x623   : > { %2255 = vmatpush1.bf16.msra.mxu1 %v3644_v62  ;;  %v3698_v62 = vld [vmem:[%s4391_s11 + $0xe8] sm:$0xff]  }
 0x624   : > { %2214 = vmatpush1.bf16.msra.mxu0 %v3641_v61  ;;  %2256 = vmatprep.subr.bf16.mxu1 %v3652_v5  ;;  %v3697_v61 = vld [vmem:[%s4391_s11 + $0x68] sm:$0xff]   ;;  %v3705_v5 = vld [vmem:[%s4391_s11 + $0x78] sm:$0xff]  }
 0x625   : > { %2215 = vmatprep.subr.bf16.mxu0 %v3649_v4  ;;  %v3704_v4 = vld [vmem:[%s4391_s11 + $0xb0] sm:$0xff]  }
 0x627   : > { %2257 = vmatpush1.bf16.msra.mxu1 %v3650_v7  ;;  %v3707_v7 = vld [vmem:[%s4391_s11 + $0x38] sm:$0xff]  }
 0x628   : > { %2216 = vmatpush1.bf16.msra.mxu0 %v3647_v6  ;;  %2258 = vmatprep.subr.bf16.mxu1 %v3658_v9  ;;  %v3706_v6 = vld [vmem:[%s4391_s11 + $0xf8] sm:$0xff]   ;;  %v588_v9 = vld [vmem:[%s4347_s10] sm:$0xf] }
 0x629   : > { %2217 = vmatprep.subr.bf16.mxu0 %v3655_v8  ;;  %v3708_v8 = vld [vmem:[%s4391_s11 + $0xb8] sm:$0xff]  }
 0x62b   : > { %2259 = vmatpush1.bf16.msra.mxu1 %v3656_v12 }
 0x62c   : > { %2218 = vmatpush1.bf16.msra.mxu0 %v3653_v11  ;;  %2260 = vmatprep.subr.bf16.mxu1 %v3664_v14  ;;  %v2032_v11 = vrot.slane %v588_v9, %v4418_v18 }
 0x62d   : > { %2219 = vmatprep.subr.bf16.mxu0 %v3661_v13  ;;  %v2036_v13 = vrot.slane %v588_v9, %v4424_v20 }
 0x62f   : > { %2261 = vmatpush1.bf16.msra.mxu1 %v3662_v16 }
 0x630   : > { %2220 = vmatpush1.bf16.msra.mxu0 %v3659_v15  ;;  %2262 = vmatprep.subr.bf16.mxu1 %v3670_v22 }
 0x631   : > { %2221 = vmatprep.subr.bf16.mxu0 %v3667_v21 }
 0x6dd   : > { %v1788_v23 = vpop.f32.mrb[40].mxu0 }
 0x6de   : > { %v3429_v24 = vpop.f32.mrb[41].mxu0  ;;  %v1959_v27 = vsel %vm589_vm0, %v1788_v23, 0.0  ;;  %v3665_v23 = vld [vmem:[%s4386_s7 + $0xc0] ss:$16 sps:$4 sm:$0xff]  }
 0x6df   : > { %v1791_v25 = vpop.f32.mrb[42].mxu0  ;;  %v3668_v24 = vld [vmem:[%s4386_s7 + $0xc8] ss:$16 sps:$4 sm:$0xff]   ;;  %2222 = vmatpush1.bf16.msra.mxu0 %v3665_v23 }
 0x6e0   : > { %v3430_v26 = vpop.f32.mrb[43].mxu0  ;;  %v3671_v25 = vld [vmem:[%s4386_s7 + $0xe0] ss:$16 sps:$4 sm:$0xff]   ;;  %2263 = vmatpush1.bf16.msra.mxu1 %v3668_v24 }
 0x6e1   : > { %v1843_v10 = vpop.f32.mrb[40].mxu1  ;;  %v3673_v26 = vld [vmem:[%s4386_s7 + $0xe4] ss:$16 sps:$4 sm:$0xff]  }
 0x6e2   : > { %v1960_v28 = vsel %vm589_vm0, %v1843_v10, 0.0  ;;  %v3437_v29 = vpop.f32.mrb[41].mxu1  ;;  %v3674_v10 = vld [vmem:[%s4386_s7 + $0xe8] ss:$16 sps:$4 sm:$0xff]   ;;  %2223 = vmatprep.subr.bf16.mxu0 %v3673_v26 }
 0x6e3   : > { %v1961_v30 = vadd.f32 %v1960_v28, %v1959_v27  ;;  %v1846_v31 = vpop.f32.mrb[42].mxu1  ;;  %v3676_v27 = vld [vmem:[%s4386_s7 + $0xec] ss:$16 sps:$4 sm:$0xff]   ;;  %v4013_v28 = vmov 0   ;;  %2224 = vmatpush1.bf16.msra.mxu0 %v3671_v25 }
 0x6e4   : > { %v3438_v32 = vpop.f32.mrb[43].mxu1  ;;  %2241 = vmatprep.mubr.bf16.mxu0 %v4013_v28  ;;  %2264 = vmatprep.subr.bf16.mxu1 %v3676_v27 }
 0x6e5   : > { %2282 = vmatprep.mubr.bf16.mxu1 %v4013_v28  ;;  %2265 = vmatpush1.bf16.msra.mxu1 %v3674_v10  ;;  %v1987_v32 = vsub.s32 2, %v4415_v17 }
 0x6e7   : > { %v2040_v12 = vrot.slane %v588_v9, %v1987_v32 }
 0x6ed   : > { %v1953_v33 = vpop.f32.mrb[44].mxu1 }
 0x6ee   : > { %v1898_v34 = vpop.f32.mrb[44].mxu0  ;;  %v3453_v35 = vpop.f32.mrb[45].mxu1  ;;  %v1964_v43 = vsel %vm589_vm0, %v1953_v33, 0.0  ;;  %v1992_v33 = vsub.s32 3, %v4415_v17 }
 0x6ef   : > { %v1962_v37 = vsel %vm589_vm0, %v1898_v34, 0.0  ;;  %v3445_v38 = vpop.f32.mrb[45].mxu0  ;;  %v1956_v39 = vpop.f32.mrb[46].mxu1  ;;  %v1988_v34 = vrot.slane %v4421_v19, %v1987_v32 }
 0x6f0   : > { %v1963_v40 = vadd.f32 %v1962_v37, %v1961_v30  ;;  %v1901_v41 = vpop.f32.mrb[46].mxu0  ;;  %v3454_v42 = vpop.f32.mrb[47].mxu1  ;;  %v1993_v37 = vrot.slane %v4421_v19, %v1992_v33  ;;  %v3681_v19 = vld [vmem:[%s4391_s11 + $0x48] sm:$0xff]   ;;  %v2044_v14 = vrot.slane %v588_v9, %v1992_v33 }
 0x6f1   : > { %v3446_v44 = vpop.f32.mrb[47].mxu0  ;;  %v3677_v41 = vld [vmem:[%s4391_s11 + $0x40] sm:$0xff]  }
 0x6f2   : > { %v1965_v45 = vadd.f32 %v1964_v43, %v1963_v40  ;;  %v3678_v42 = vld [vmem:[%s4391_s11 + $0xc0] sm:$0xff]   ;;  %3226 = vmatprep.subr.bf16.mxu0 %v3677_v41 }
 0x6f3   : > { %v3679_v43 = vld [vmem:[%s4391_s11] sm:$0xff]   ;;  %3248 = vmatprep.subr.bf16.mxu1 %v3678_v42 }
 0x6f4   : > { %v1966_v48 = vadd.f32 %v3737_v47, %v1965_v45  ;;  %v3680_v44 = vld [vmem:[%s4391_s11 + $0x80] sm:$0xff]   ;;  %v3682_v45 = vld [vmem:[%s4391_s11 + $0xc8] sm:$0xff]  }
 0x6f5   : > { %v3684_v47 = vld [vmem:[%s4391_s11 + $0x88] sm:$0xff]  }
 0x6f6   : > { %v4590_v49 = vadd.f32 %v1970_v46, %v1966_v48  ;;  %v3683_v46 = vld [vmem:[%s4391_s11 + $0x8] sm:$0xff]   ;;  %v3685_v48 = vld [vmem:[%s4391_s11 + $0x50] sm:$0xff]  }
 0x6f8   : > { %v1972_v50 = vsel %vm589_vm0, %v4590_v49, 0.0 }
 0x6f9   : > { %1973 = vadd.xlane.f32.xlu0 %v1972_v50  ;;  %v3686_v50 = vld [vmem:[%s4391_s11 + $0xd0] sm:$0xff]  }
 0x786   : > { %v1974_v63 = vpop.xlane.xlu0 %1973 }
 0x787   : > { %v1975_v0 = vmul.f32 0.0078125, %v1974_v63  ;;  %v3699_v63 = vld [vmem:[%s4391_s11 + $0x28] sm:$0xff]  }
 0x789   : > { %v1976_v1 = vsub.f32 %v4590_v49, %v1975_v0  ;;  %v3700_v0 = vld [vmem:[%s4391_s11 + $0xa8] sm:$0xff]  }
 0x78b   : > { %v1977_v2 = vmul.f32 %v1976_v1, %v1976_v1 }
 0x78d   : > { %v1978_v3 = vsel %vm589_vm0, %v1977_v2, 0.0  ;;  %v3702_v2 = vld [vmem:[%s4391_s11 + $0xf0] sm:$0xff]  }
 0x78e   : > { %1979 = vadd.xlane.f32.xlu1 %v1978_v3  ;;  %v3703_v3 = vld [vmem:[%s4391_s11 + $0x30] sm:$0xff]  }
 0x81b   : > { %v1980_v29 = vpop.xlane.xlu1 %1979 }
 0x81c   : > { %v1981_v30 = vmul.f32 0.0078125, %v1980_v29 }
 0x81e   : > { %v1982_v31 = vadd.f32 1e-06, %v1981_v30 }
 0x820   : > { %3727 = vrsqrt.f32 %v1982_v31 }
 0x82a   : > { %v3728_v35 = vpop.eup %3727 }
 0x82b   : > { %v1984_v36 = vmul.f32 %v3728_v35, %v1976_v1  ;;  %v3701_v1 = vld [vmem:[%s4391_s11 + $0x70] sm:$0xff]  }
 0x82d   : > { %v1989_v38 = vmul.f32 %v1988_v34, %v1984_v36 }
 0x82f   : > { %v1994_v39 = vadd.f32 %v1993_v37, %v1989_v38 }
 0x831   : > { %v1995_v40 = vpack.c.bf16 %v1994_v39, %v1994_v39 }
 0x833   : > { %2242 = vmatmul.mubr.bf16.vlgmr.msra.gmra.mrb[48].mxu0 %v1995_v40  ;;  %2283 = vmatmul.mubr.bf16.vlgmr.msra.gmra.mrb[48].mxu1 %v1995_v40 }
 0x834   : > { %3227 = vmatpush3.bf16.msra.mxu0 %v3679_v43  ;;  %3249 = vmatpush3.bf16.msra.mxu1 %v3680_v44 }
 0x835   : > { %3228 = vmatprep.subr.bf16.mxu0 %v3681_v19  ;;  %3250 = vmatprep.subr.bf16.mxu1 %v3682_v45 }
 0x838   : > { %3229 = vmatpush3.bf16.msra.mxu0 %v3683_v46  ;;  %3251 = vmatpush3.bf16.msra.mxu1 %v3684_v47 }
 0x839   : > { %3230 = vmatprep.subr.bf16.mxu0 %v3685_v48  ;;  %3252 = vmatprep.subr.bf16.mxu1 %v3686_v50 }
 0x83c   : > { %3231 = vmatpush3.bf16.msra.mxu0 %v3687_v51  ;;  %3253 = vmatpush3.bf16.msra.mxu1 %v3688_v52 }
 0x83d   : > { %3232 = vmatprep.subr.bf16.mxu0 %v3689_v53  ;;  %3254 = vmatprep.subr.bf16.mxu1 %v3690_v55 }
 0x840   : > { %3233 = vmatpush3.bf16.msra.mxu0 %v3691_v54  ;;  %3255 = vmatpush3.bf16.msra.mxu1 %v3692_v56 }
 0x841   : > { %3234 = vmatprep.subr.bf16.mxu0 %v3693_v57  ;;  %3256 = vmatprep.subr.bf16.mxu1 %v3694_v58 }
 0x844   : > { %3235 = vmatpush3.bf16.msra.mxu0 %v3695_v59  ;;  %3257 = vmatpush3.bf16.msra.mxu1 %v3696_v60 }
 0x845   : > { %3236 = vmatprep.subr.bf16.mxu0 %v3697_v61  ;;  %3258 = vmatprep.subr.bf16.mxu1 %v3698_v62 }
 0x848   : > { %3237 = vmatpush3.bf16.msra.mxu0 %v3699_v63  ;;  %3259 = vmatpush3.bf16.msra.mxu1 %v3700_v0 }
 0x849   : > { %3238 = vmatprep.subr.bf16.mxu0 %v3701_v1  ;;  %3260 = vmatprep.subr.bf16.mxu1 %v3702_v2 }
 0x84c   : > { %3239 = vmatpush3.bf16.msra.mxu0 %v3703_v3  ;;  %3261 = vmatpush3.bf16.msra.mxu1 %v3704_v4 }
 0x84d   : > { %3240 = vmatprep.subr.bf16.mxu0 %v3705_v5  ;;  %3262 = vmatprep.subr.bf16.mxu1 %v3706_v6  ;;  %v2397_v6 = vsub.s32 5, %v4415_v17 }
 0x850   : > { %3241 = vmatpush3.bf16.msra.mxu0 %v3707_v7  ;;  %3263 = vmatpush3.bf16.msra.mxu1 %v3708_v8  ;;  %v3738_v8 = vld [vmem:[%s4381_s19] sm:$0x3f] }
 0x851   : > { %v2398_v9 = vrot.slane %v3738_v8, %v2397_v6 }
 0x906   : > { %v2243_v15 = vpop.f32.mrb[48].mxu0  ;;  %v2284_v16 = vpop.f32.mrb[48].mxu1 }
 0x907   : > { %v2244_v21 = vadd.f32 %v2243_v15, %v2032_v11  ;;  %v2285_v22 = vadd.f32 %v2284_v16, %v2040_v12  ;;  %v2245_v23 = vpop.f32.mrb[49].mxu0  ;;  %v2286_v24 = vpop.f32.mrb[49].mxu1 }
 0x908   : > { %v2246_v25 = vadd.f32 %v2245_v23, %v2036_v13  ;;  %v2287_v26 = vadd.f32 %v2286_v24, %v2044_v14  ;;  %v2247_v10 = vpop.f32.mrb[50].mxu0  ;;  %v2288_v27 = vpop.f32.mrb[50].mxu1 }
 0x909   : > { %v2295_v28 = vmul.f32 0.044715, %v2244_v21  ;;  %v2297_v29 = vmul.f32 0.044715, %v2285_v22  ;;  %v2248_v30 = vpop.f32.mrb[51].mxu0  ;;  %v2289_v31 = vpop.f32.mrb[51].mxu1 }
 0x90a   : > { %v2296_v32 = vmul.f32 0.044715, %v2246_v25  ;;  %v2298_v34 = vmul.f32 0.044715, %v2287_v26  ;;  %v2291_v52 = vmul.f32 0.5, %v2244_v21  ;;  %v2292_v54 = vmul.f32 0.5, %v2246_v25 }
 0x90b   : > { %v2299_v35 = vmul.f32 %v2295_v28, %v2244_v21  ;;  %v2301_v36 = vmul.f32 %v2297_v29, %v2285_v22  ;;  %v2294_v58 = vmul.f32 0.5, %v2287_v26  ;;  %v2293_v62 = vmul.f32 0.5, %v2285_v22  ;;  %v3739_v10 = vld [vmem:[#allocation10] sm:$0xff] (!%p3146_p9)   ;;  %v3740_v28 = vld [vmem:[#allocation10 + $0x8] sm:$0xff] (!%p3146_p9)  }
 0x90c   : > { %v2300_v37 = vmul.f32 %v2296_v32, %v2246_v25  ;;  %v2302_v33 = vmul.f32 %v2298_v34, %v2287_v26  ;;  %v4014_v27 = vmov (!%p3146_p9), 0.0   ;;  %v3741_v34 = vld [vmem:[#allocation10 + $0x10] sm:$0xff] (!%p3146_p9)  }
 0x90d   : > { %v2303_v38 = vmul.f32 %v2299_v35, %v2244_v21  ;;  %v2305_v39 = vmul.f32 %v2301_v36, %v2285_v22  ;;  %3455 = vmatprep.subr.bf16.mxu0 (!%p3146_p9), %v4014_v27  ;;  %v3742_v35 = vld [vmem:[#allocation10 + $0x18] sm:$0xff] (!%p3146_p9)   ;;  %v3743_v36 = vld [vmem:[#allocation10 + $0x20] sm:$0xff] (!%p3146_p9)  }
 0x90e   : > { %v2304_v40 = vmul.f32 %v2300_v37, %v2246_v25  ;;  %v2306_v41 = vmul.f32 %v2302_v33, %v2287_v26  ;;  %v3744_v37 = vld [vmem:[#allocation10 + $0x28] sm:$0xff] (!%p3146_p9)   ;;  %v3745_v33 = vld [vmem:[#allocation10 + $0x30] sm:$0xff] (!%p3146_p9)  }
 0x90f   : > { %v2307_v42 = vadd.f32 %v2303_v38, %v2244_v21  ;;  %v2309_v43 = vadd.f32 %v2305_v39, %v2285_v22  ;;  %v3746_v38 = vld [vmem:[#allocation10 + $0x38] sm:$0xff] (!%p3146_p9)  }
 0x910   : > { %v2308_v44 = vadd.f32 %v2304_v40, %v2246_v25  ;;  %v2310_v19 = vadd.f32 %v2306_v41, %v2287_v26 }
 0x911   : > { %v2311_v45 = vmul.f32 0.7978846, %v2307_v42  ;;  %v2313_v48 = vmul.f32 0.7978846, %v2309_v43  ;;  %v2677_v42 = vld [vmem:[#allocation8] sm:$0x3] (!%p3146_p9) }
 0x912   : > { %v2312_v46 = vmul.f32 0.7978846, %v2308_v44  ;;  %v2314_v47 = vmul.f32 0.7978846, %v2310_v19  ;;  %v2694_v43 = vrot.slane (!%p3146_p9), %v2677_v42, %v4418_v18 }
 0x913   : > { %3729 = vtanh.f32 %v2311_v45  ;;  %v2699_v45 = vrot.slane (!%p3146_p9), %v2677_v42, %v4424_v20 }
 0x914   : > { %3731 = vtanh.f32 %v2312_v46 }
 0x915   : > { %3733 = vtanh.f32 %v2314_v47 }
 0x916   : > { %3735 = vtanh.f32 %v2313_v48 }
 0x91d   : > { %v3730_v50 = vpop.eup %3729 }
 0x91e   : > { %v3732_v51 = vpop.eup %3731  ;;  %v2319_v53 = vadd.f32 1.0, %v3730_v50  ;;  %v3147_v50 = vld [vmem:[#allocation11] ss:$0 sm:$0xff] (!%p3146_p9) }
 0x91f   : > { %v3734_v55 = vpop.eup %3733  ;;  %v2320_v56 = vadd.f32 1.0, %v3732_v51 }
 0x920   : > { %v3736_v57 = vpop.eup %3735  ;;  %v2322_v59 = vadd.f32 1.0, %v3734_v55  ;;  %v2323_v60 = vmul.f32 %v2319_v53, %v2291_v52 }
 0x921   : > { %v2324_v61 = vmul.f32 %v2320_v56, %v2292_v54  ;;  %v2321_v63 = vadd.f32 1.0, %v3736_v57 }
 0x922   : > { %v2326_v0 = vmul.f32 %v2322_v59, %v2294_v58  ;;  %v2327_v4 = vpack.c.bf16 %v2323_v60, %v2323_v60 }
 0x923   : > { %v2328_v1 = vpack.c.bf16 %v2324_v61, %v2324_v61  ;;  %v2325_v2 = vmul.f32 %v2321_v63, %v2293_v62 }
 0x924   : > { %v2330_v3 = vpack.c.bf16 %v2326_v0, %v2326_v0 }
 0x925   : > { %2623 = vmatprep.mubr.bf16.mxu0 %v2328_v1  ;;  %v2329_v5 = vpack.c.bf16 %v2325_v2, %v2325_v2 }
 0x926   : > { %2663 = vmatprep.mubr.bf16.mxu1 %v2330_v3  ;;  %2624 = vmatmul.mubr.bf16.vlgmr.msra.gmra.mrb[52].mxu0 %v2327_v4 }
 0x927   : > { %2664 = vmatmul.mubr.bf16.vlgmr.msra.gmra.mrb[52].mxu1 %v2329_v5  ;;  %3456 = vmatpush3.bf16.msra.mxu0 (!%p3146_p9), %v3739_v10 }
 0x928   : > { %3457 = vmatprep.subr.bf16.mxu0 (!%p3146_p9), %v4014_v27  ;;  %3471 = vmatprep.mubr.msk.bf16.mxu0 (!%p3146_p9), %vm4015_vm6, %v4014_v27 }
 0x92b   : > { %3458 = vmatpush3.bf16.msra.mxu0 (!%p3146_p9), %v3740_v28 }
 0x92c   : > { %3459 = vmatprep.subr.bf16.mxu0 (!%p3146_p9), %v4014_v27 }
 0x92f   : > { %3460 = vmatpush3.bf16.msra.mxu0 (!%p3146_p9), %v3741_v34 }
 0x930   : > { %3461 = vmatprep.subr.bf16.mxu0 (!%p3146_p9), %v4014_v27 }
 0x933   : > { %3462 = vmatpush3.bf16.msra.mxu0 (!%p3146_p9), %v3742_v35 }
 0x934   : > { %3463 = vmatprep.subr.bf16.mxu0 (!%p3146_p9), %v4014_v27 }
 0x937   : > { %3464 = vmatpush3.bf16.msra.mxu0 (!%p3146_p9), %v3743_v36 }
 0x938   : > { %3465 = vmatprep.subr.bf16.mxu0 (!%p3146_p9), %v4014_v27 }
 0x93b   : > { %3466 = vmatpush3.bf16.msra.mxu0 (!%p3146_p9), %v3744_v37 }
 0x93c   : > { %3467 = vmatprep.subr.bf16.mxu0 (!%p3146_p9), %v4014_v27 }
 0x93f   : > { %3468 = vmatpush3.bf16.msra.mxu0 (!%p3146_p9), %v3745_v33 }
 0x940   : > { %3469 = vmatprep.subr.bf16.mxu0 (!%p3146_p9), %v4014_v27 }
 0x943   : > { %3470 = vmatpush3.bf16.msra.mxu0 (!%p3146_p9), %v3746_v38 }
 0x9f9   : > { %v3242_v7 = vpop.f32.mrb[52].mxu0 }
 0x9fa   : > { %v3264_v11 = vpop.f32.mrb[52].mxu1  ;;  %v3243_v12 = vpop.f32.mrb[53].mxu0 }
 0x9fb   : > { %v3244_v13 = vadd.f32 %v3243_v12, %v3242_v7  ;;  %v3265_v14 = vpop.f32.mrb[53].mxu1  ;;  %v3245_v15 = vpop.f32.mrb[54].mxu0 }
 0x9fc   : > { %v3266_v16 = vadd.f32 %v3265_v14, %v3264_v11  ;;  %v3267_v21 = vpop.f32.mrb[54].mxu1  ;;  %v3246_v22 = vpop.f32.mrb[55].mxu0 }
 0x9fd   : > { %v2626_v23 = vadd.f32 %v3244_v13, %v2398_v9  ;;  %v3268_v24 = vpop.f32.mrb[55].mxu1  ;;  %2676 = sbr.rel (%p3146_p9) target bundleno = 3093 (0xc15), region = 92 }
 0x9ff   : > { %v2666_v25 = vadd.f32 %v3266_v16, %v2626_v23 }
 0xa01   : > { %v2671_v26 = vadd.f32 %v2666_v25, %v4590_v49 }
 0xa03   : > { %2672 = vst [vmem:[#allocation2] sm:$0x3] %v2671_v26  ;;  %v2678_v17 = vsel (!%p3146_p9), %vm589_vm0, %v2671_v26, 0.0 }
 0xa04   : > { %2679 = vadd.xlane.f32.xlu0 %v2678_v17 }
 0xa91   : > { %v2680_v29 = vpop.xlane.xlu0 %2679 }
 0xa92   : > { %v2681_v30 = vmul.f32 0.0078125, %v2680_v29 }
 0xa94   : > { %v2682_v31 = vsub.f32 %v2671_v26, %v2681_v30 }
 0xa96   : > { %v2683_v32 = vmul.f32 %v2682_v31, %v2682_v31 }
 0xa98   : > { %v2684_v49 = vsel %vm589_vm0, %v2683_v32, 0.0 }
 0xa99   : > { %2685 = vadd.xlane.f32.xlu0 %v2684_v49 }
 0xb26   : > { %v2686_v39 = vpop.xlane.xlu0 %2685 }
 0xb27   : > { %v2687_v40 = vmul.f32 0.0078125, %v2686_v39 }
 0xb29   : > { %v2688_v41 = vadd.f32 1e-06, %v2687_v40 }
 0xb2b   : > { %3747 = vrsqrt.f32 %v2688_v41 }
 0xb35   : > { %v3748_v44 = vpop.eup %3747 }
 0xb36   : > { %v2690_v19 = vmul.f32 %v3748_v44, %v2682_v31 }
 0xb38   : > { %v2695_v46 = vmul.f32 %v2694_v43, %v2690_v19 }
 0xb3a   : > { %v2700_v47 = vadd.f32 %v2699_v45, %v2695_v46 }
 0xb3c   : > { %v2701_v48 = vpack.c.bf16 %v2700_v47, %v2700_v47 }
 0xb3e   : > { %3472 = vmatmul.mubr.bf16.vlgmr.msra.gmra.mrb[0].mxu0 %v2701_v48 }
 0xc11   : > { %v2807_v51 = vpop.f32.mrb[0].mxu0 }
 0xc12   : > { %v2808_v52 = vadd.f32 %v3147_v50, %v2807_v51  ;;  %v3473_v53 = vpop.f32.mrb[1].mxu0 }
 0xc13   : > { %v2810_v55 = vpop.f32.mrb[2].mxu0 }
 0xc14   : > { %2813 = vst [vmem:[%s4396_s1] sm:$0x3] %v2808_v52  ;;  %v3474_v54 = vpop.f32.mrb[3].mxu0 }
 0xc15 PF: > { %s28_s20 = sadd.s32 1, %s4001_s20   ;;  %s4784_s10 = sld [smem:[#allocation17_spill]] }
 0xc16   : > { %p25_p1 = scmp.ge.s32.totalorder %s28_s20, 6   ;;  %s4785_s15 = sld [smem:[#allocation23_spill]] }
 0xc17   : > { %s4786_s17 = sld [smem:[#allocation20_spill]]  ;;  %s4787_s26 = sld [smem:[#allocation21_spill]] }
 0xc18   : > { %s4788_s19 = sld [smem:[#allocation22_spill]]  ;;  %s4789_s13 = smov %s3977_s14 }
 0xc19   : > { %s4791_s16 = smov %s3993_s18  ;;  %27 = sbr.rel (!%p25_p1) target bundleno = 18 (0x12), region = 156 }
 0xc1b   : > { %s4790_s14 = smov %s4784_s10 }
 0xc1d   : > { %s4792_s18 = smov %s4787_s26 }
 0xc20   :  { %2833 = vsyncpa [#allocation4], 1 }
 0xc21   :  { %2835 = vsyncpa [#allocation4 + $0x1], 1 }
 0xc22   :  { %2836 = vsyncpa [#allocation6], 1 }
 0xc23   :  { %2838 = vsyncpa [#allocation6 + $0x1], 1 }
 0xc24   :  { %2839 = vsyncpa [#allocation9], 1 }
 0xc25   :  { %2840 = vsyncpa [#allocation12], 1 }

// kernel: _lambda_.6
= control target key start
LH: loop header
LB: loop body
LE: loop exit
PB: predicated region body
PF: predicated region fallthrough
CT: control target
= control target key end

     0   :  { %s3817_s13 = smov 0   ;;  %s3819_s14 = smov 0   ;;  %s4289_s0 = inlined_call_operand.vmem [shape: f32[2,8,128], index: 0, kind: input, shape index: {}]   ;;  %s4290_s1 = inlined_call_operand.vmem [shape: f32[2,6,128], index: 1, kind: input, shape index: {}]   ;;  %s4291_s2 = inlined_call_operand.vmem [shape: f32[2,1,512], index: 2, kind: input, shape index: {}]   ;;  %s4292_s3 = inlined_call_operand.vmem [shape: bf16[2,12,32,128], index: 3, kind: input, shape index: {}]   ;;  %s4293_s4 = inlined_call_operand.vmem [shape: bf16[2,4,32,128], index: 4, kind: input, shape index: {}]   ;;  %s4294_s5 = inlined_call_operand.vmem [shape: bf16[2,128,512], index: 5, kind: input, shape index: {}]   ;;  %s4295_s6 = inlined_call_operand.vmem [shape: bf16[2,512,128], index: 6, kind: input, shape index: {}]   ;;  %s4296_s7 = inlined_call_operand.vmem [shape: f32[2,128], index: 7, kind: input, shape index: {}]   ;;  %s4297_s8 = inlined_call_operand.vmem [shape: bf16[128,512], index: 8, kind: input, shape index: {}]   ;;  %s4298_s9 = inlined_call_operand.vmem [shape: f32[1,512], index: 9, kind: input, shape index: {}]   ;;  %s4299_s10 = inlined_call_operand.vmem [shape: f32[2,8,512], index: 10, kind: output, shape index: {}]  }
   0x1   :  { %4303 = sst [smem:[#allocation8_spill]] %s4289_s0  ;;  %s3821_s15 = smov 0  }
   0x2   :  { %4304 = sst [smem:[#allocation9_spill]] %s4290_s1  ;;  %s3823_s16 = smov 0  }
   0x3   :  { %s3825_s17 = smov 0  }
   0x4 LB: > { %4305 = sst [smem:[#allocation3_spill]] %s3748_s15  ;;  %s29_s18 = sadd.s32 1, %s3748_s15  ;;  %s3756_s17 = sphi %s3825_s17, %s20_s17   ;;  %s3752_s16 = sphi %s3823_s16, %s4316_s16   ;;  %s3748_s15 = sphi %s3821_s15, %s4315_s15   ;;  %s3744_s14 = sphi %s3819_s14, %s4314_s14   ;;  %s3740_s13 = sphi %s3817_s13, %s4313_s13  }
   0x5   : > { %4306 = sst [smem:[#allocation4_spill]] %s3752_s16  ;;  %s32_s19 = sadd.s32 1, %s3752_s16 }
   0x6   : > { %4307 = sst [smem:[#allocation5_spill]] %s3756_s17  ;;  %p30_p0 = scmp.ge.s32.totalorder %s29_s18, 2 }
   0x7   : > { %p3036_p1 = scmp.ge.s32.totalorder %s3756_s17, 1  ;;  %p381_p2 = scmp.lt.s32.totalorder %s3756_s17, 5 }
   0x8   : > { %s4318_s18 = smov (%p30_p0, %s29_s18), 0  ;;  %s4320_s19 = smov (!%p30_p0, %s32_s19), %s3752_s16 }
   0x9   : > { %4308 = sst [smem:[#allocation6_spill]] %s4318_s18  ;;  %p382_p3 = pnand %p3036_p1, %p381_p2 }
   0xa   : > { %p34_p4 = scmp.ge.s32.totalorder %s4320_s19, 2  ;;  %p446_p5 = scmp.lt.s32.totalorder (!%p382_p3), %s3744_s14, 1 }
   0xb   : > { %385 = sbr.rel (%p382_p3) target bundleno = 2887 (0xb47), region = 60  ;;  %p450_p6 = scmp.lt.s32.totalorder (!%p382_p3), %s3740_s13, 1 }
   0xc   : > { %s4322_s19 = smov (%p34_p4, %s4320_s19), 0  ;;  %s4310_s0 = sld [smem:[#allocation8_spill]] (!%p382_p3) }
   0xd   : > { %4309 = sst [smem:[#allocation7_spill]] %s4322_s19  ;;  %s4311_s1 = sld [smem:[#allocation9_spill]] (!%p382_p3) }
   0xe   : > { %p3049_p7 = scmp.ne.s32.totalorder (!%p382_p3), %s3740_s13, 0 }
  0x12   : > { %s4324_s14 = smov (!%p446_p5, %s3744_s14), 1 }
  0x13   : > { %s451_s20 = scalar_select %p450_p6, %s3740_s13, 1 }
  0x14   : > { %s3037_s21 = sshll.u32 %s4324_s14, 3  ;;  %s3196_s22 = sshll.u32 %s4324_s14, 5 }
  0x15   : > { %s449_s25 = scalar_lea.vmem %s4310_s0, %s3037_s21  ;;  %s3038_s26 = sshll.u32 %s451_s20, 3 }
  0x16   : > { %s3857_s29 = scalar_lea.vmem %s4311_s1, %s3038_s26  ;;  %s3039_s30 = sshll.u32 %s451_s20, 2  ;;  %v488_v0 = vld [vmem:[%s449_s25] sm:$0xff] (!%p3049_p7) }
  0x17   : > { %s3862_s19 = scalar_lea.vmem %s4291_s2, %s3039_s30  ;;  %s3481_s18 = smul.u32 192, %s451_s20  ;;  %489 = vst [vmem:[#allocation2] sm:$0xff] (!%p3049_p7), %v488_v0 }
  0x18   : > { %s3193_s16 = sshll.u32 %s451_s20, 6  ;;  %s3194_s15 = sshll.u32 %s451_s20, 8 }
  0x19   : > { %s3867_s23 = scalar_lea.vmem %s4292_s3, %s3481_s18  ;;  %s3872_s27 = scalar_lea.vmem %s4293_s4, %s3193_s16 }
  0x1a   : > { %s3877_s0 = scalar_lea.vmem %s4294_s5, %s3194_s15  ;;  %s3882_s12 = scalar_lea.vmem %s4295_s6, %s3194_s15 }
  0x1b   : > { %s3887_s17 = scalar_lea.vmem %s4299_s10, %s3196_s22  ;;  %487 = sbr.rel (%p3049_p7) target bundleno = 34 (0x22), region = 64 }
  0x22 PF: > { %v490_v1 = vld [vmem:[#allocation2] sm:$0xff]  ;;  %v3527_v7 = vld [vmem:[%s3867_s23 + $0x10] sm:$0xff]   ;;  %v3758_v8 = vmov 0.0   ;;  %v3528_v9 = vld [vmem:[%s3867_s23 + $0x8] sm:$0xff]   ;;  %vm3759_vm0 = vmmov 0   ;;  %v505_v13 = vlaneseq  ;;  %vm1200_vm1 = vcmask 261120  }
  0x23   : > { %493 = vadd.xlane.f32.xlu0 %v490_v1  ;;  %v3526_v6 = vld [vmem:[%s3867_s23] sm:$0xff]   ;;  %3305 = vmatprep.subr.bf16.mxu0 %v3758_v8  ;;  %v3529_v10 = vld [vmem:[%s3867_s23 + $0x18] sm:$0xff]   ;;  %v3531_v26 = vld [vmem:[%s3867_s23 + $0x30] sm:$0xff]   ;;  %vm1437_vm2 = vcmask 1043456   ;;  %vm1385_vm3 = vcmask 64512   ;;  %p3158_p8 = scmp.ne.s32.totalorder %s3740_s13, 1 }
  0x24   : > { %3313 = vmatprep.subr.bf16.mxu1 %v3758_v8  ;;  %3306 = vmatpush3.bf16.xpose.msra.mxu0 %v3526_v6  ;;  %v3904_v15 = vshrl.u32 %v505_v13, 7  ;;  %v3910_v17 = vld [vmem:[%s3857_s29] sm:$0x3f]  ;;  %v3532_v28 = vld [vmem:[%s3867_s23 + $0x28] sm:$0xff]   ;;  %v3533_v29 = vld [vmem:[%s3867_s23 + $0x38] sm:$0xff]  }
  0x25   : > { %3314 = vmatpush3.bf16.xpose.msra.mxu1 %v3527_v7  ;;  %3307 = vmatprep.subr.bf16.mxu0 %v3758_v8  ;;  %v3530_v25 = vld [vmem:[%s3867_s23 + $0x20] sm:$0xff]   ;;  %v3535_v31 = vld [vmem:[%s3867_s23 + $0x50] sm:$0xff]   ;;  %v3536_v32 = vld [vmem:[%s3867_s23 + $0x48] sm:$0xff]  }
  0x26   : > { %3315 = vmatprep.subr.bf16.mxu1 %v3758_v8  ;;  %3309 = vmatprep.mubr.msk.bf16.mxu0 %vm3759_vm0, %v3758_v8  ;;  %v3907_v16 = vsub.s32 0, %v3904_v15  ;;  %v3913_v18 = vsub.s32 1, %v3904_v15  ;;  %v3534_v30 = vld [vmem:[%s3867_s23 + $0x40] sm:$0xff]   ;;  %v3537_v33 = vld [vmem:[%s3867_s23 + $0x58] sm:$0xff]   ;;  %v3539_v35 = vld [vmem:[%s3867_s23 + $0x70] sm:$0xff]  }
  0x27   : > { %3317 = vmatprep.mubr.msk.bf16.mxu1 %vm3759_vm0, %v3758_v8  ;;  %v3538_v34 = vld [vmem:[%s3867_s23 + $0x60] sm:$0xff]   ;;  %v3540_v36 = vld [vmem:[%s3867_s23 + $0x68] sm:$0xff]   ;;  %v3541_v37 = vld [vmem:[%s3867_s23 + $0x78] sm:$0xff]  }
  0x28   : > { %v508_v19 = vrot.slane %v3910_v17, %v3907_v16  ;;  %v513_v21 = vrot.slane %v3910_v17, %v3913_v18  ;;  %v3542_v38 = vld [vmem:[%s3867_s23 + $0x80] sm:$0xff]   ;;  %v3543_v39 = vld [vmem:[%s3867_s23 + $0x90] sm:$0xff]   ;;  %v3544_v40 = vld [vmem:[%s3867_s23 + $0x88] sm:$0xff]  }
  0x29   : > { %v3545_v41 = vld [vmem:[%s3867_s23 + $0x98] sm:$0xff]   ;;  %v3546_v42 = vld [vmem:[%s3867_s23 + $0xa0] sm:$0xff]   ;;  %v3547_v43 = vld [vmem:[%s3867_s23 + $0xb0] sm:$0xff]  }
  0x2a   : > { %v3548_v44 = vld [vmem:[%s3867_s23 + $0xa8] sm:$0xff]   ;;  %v3549_v45 = vld [vmem:[%s3867_s23 + $0xb8] sm:$0xff]  }
  0x2c   : > { %3308 = vmatpush3.bf16.xpose.msra.mxu0 %v3528_v9 }
  0x2d   : > { %3316 = vmatpush3.bf16.xpose.msra.mxu1 %v3529_v10  ;;  %3321 = vmatprep.subr.bf16.mxu0 %v3758_v8 }
  0x2e   : > { %3329 = vmatprep.subr.bf16.mxu1 %v3758_v8 }
  0xb0   : > { %v494_v2 = vpop.xlane.xlu0 %493 }
  0xb1   : > { %v496_v3 = vmul.f32 0.0078125, %v494_v2 }
  0xb3   : > { %v497_v4 = vsub.f32 %v490_v1, %v496_v3 }
  0xb5   : > { %v498_v5 = vmul.f32 %v497_v4, %v497_v4 }
  0xb7   : > { %499 = vadd.xlane.f32.xlu0 %v498_v5 }
 0x144   : > { %v500_v11 = vpop.xlane.xlu0 %499 }
 0x145   : > { %v501_v12 = vmul.f32 0.0078125, %v500_v11 }
 0x147   : > { %v502_v14 = vadd.f32 1e-06, %v501_v12 }
 0x149   : > { %3638 = vrsqrt.f32 %v502_v14 }
 0x153   : > { %v3639_v20 = vpop.eup %3638 }
 0x154   : > { %v504_v22 = vmul.f32 %v3639_v20, %v497_v4 }
 0x156   : > { %v509_v23 = vmul.f32 %v508_v19, %v504_v22 }
 0x158   : > { %v514_v24 = vadd.f32 %v513_v21, %v509_v23 }
 0x15a   : > { %v3921_v27 = vpack.c.bf16 %v514_v24, %v514_v24 }
 0x15c   : > { %3310 = vmatmul.mubr.bf16.vlgmr.msra.gmra.mrb[0].mxu0 %v3921_v27  ;;  %3318 = vmatmul.mubr.bf16.vlgmr.msra.gmra.mrb[0].mxu1 %v3921_v27 }
 0x15d   : > { %3322 = vmatpush3.bf16.xpose.msra.mxu0 %v3530_v25  ;;  %3330 = vmatpush3.bf16.xpose.msra.mxu1 %v3531_v26 }
 0x15e   : > { %3323 = vmatprep.subr.bf16.mxu0 %v3758_v8  ;;  %3331 = vmatprep.subr.bf16.mxu1 %v3758_v8 }
 0x15f   : > { %3325 = vmatprep.mubr.msk.bf16.mxu0 %vm3759_vm0, %v3758_v8  ;;  %3333 = vmatprep.mubr.msk.bf16.mxu1 %vm3759_vm0, %v3758_v8 }
 0x165   : > { %3324 = vmatpush3.bf16.xpose.msra.mxu0 %v3532_v28  ;;  %3332 = vmatpush3.bf16.xpose.msra.mxu1 %v3533_v29 }
 0x166   : > { %3337 = vmatprep.subr.bf16.mxu0 %v3758_v8  ;;  %3345 = vmatprep.subr.bf16.mxu1 %v3758_v8 }
 0x16c   : > { %3326 = vmatmul.mubr.bf16.vlgmr.msra.gmra.mrb[4].mxu0 %v3921_v27  ;;  %3334 = vmatmul.mubr.bf16.vlgmr.msra.gmra.mrb[4].mxu1 %v3921_v27 }
 0x16d   : > { %3338 = vmatpush3.bf16.xpose.msra.mxu0 %v3534_v30  ;;  %3346 = vmatpush3.bf16.xpose.msra.mxu1 %v3535_v31 }
 0x16e   : > { %3339 = vmatprep.subr.bf16.mxu0 %v3758_v8  ;;  %3347 = vmatprep.subr.bf16.mxu1 %v3758_v8 }
 0x16f   : > { %3341 = vmatprep.mubr.msk.bf16.mxu0 %vm3759_vm0, %v3758_v8  ;;  %3349 = vmatprep.mubr.msk.bf16.mxu1 %vm3759_vm0, %v3758_v8 }
 0x175   : > { %3340 = vmatpush3.bf16.xpose.msra.mxu0 %v3536_v32  ;;  %3348 = vmatpush3.bf16.xpose.msra.mxu1 %v3537_v33 }
 0x176   : > { %3353 = vmatprep.subr.bf16.mxu0 %v3758_v8  ;;  %3361 = vmatprep.subr.bf16.mxu1 %v3758_v8 }
 0x17c   : > { %3342 = vmatmul.mubr.bf16.vlgmr.msra.gmra.mrb[8].mxu0 %v3921_v27  ;;  %3350 = vmatmul.mubr.bf16.vlgmr.msra.gmra.mrb[8].mxu1 %v3921_v27 }
 0x17d   : > { %3354 = vmatpush3.bf16.xpose.msra.mxu0 %v3538_v34  ;;  %3362 = vmatpush3.bf16.xpose.msra.mxu1 %v3539_v35 }
 0x17e   : > { %3355 = vmatprep.subr.bf16.mxu0 %v3758_v8  ;;  %3363 = vmatprep.subr.bf16.mxu1 %v3758_v8 }
 0x17f   : > { %3357 = vmatprep.mubr.msk.bf16.mxu0 %vm3759_vm0, %v3758_v8  ;;  %3365 = vmatprep.mubr.msk.bf16.mxu1 %vm3759_vm0, %v3758_v8 }
 0x185   : > { %3356 = vmatpush3.bf16.xpose.msra.mxu0 %v3540_v36  ;;  %3364 = vmatpush3.bf16.xpose.msra.mxu1 %v3541_v37 }
 0x186   : > { %3369 = vmatprep.subr.bf16.mxu0 %v3758_v8  ;;  %3377 = vmatprep.subr.bf16.mxu1 %v3758_v8 }
 0x18c   : > { %3358 = vmatmul.mubr.bf16.vlgmr.msra.gmra.mrb[12].mxu0 %v3921_v27  ;;  %3366 = vmatmul.mubr.bf16.vlgmr.msra.gmra.mrb[12].mxu1 %v3921_v27 }
 0x18d   : > { %3370 = vmatpush3.bf16.xpose.msra.mxu0 %v3542_v38  ;;  %3378 = vmatpush3.bf16.xpose.msra.mxu1 %v3543_v39 }
 0x18e   : > { %3371 = vmatprep.subr.bf16.mxu0 %v3758_v8  ;;  %3379 = vmatprep.subr.bf16.mxu1 %v3758_v8 }
 0x18f   : > { %3373 = vmatprep.mubr.msk.bf16.mxu0 %vm3759_vm0, %v3758_v8  ;;  %3381 = vmatprep.mubr.msk.bf16.mxu1 %vm3759_vm0, %v3758_v8 }
 0x195   : > { %3372 = vmatpush3.bf16.xpose.msra.mxu0 %v3544_v40  ;;  %3380 = vmatpush3.bf16.xpose.msra.mxu1 %v3545_v41 }
 0x196   : > { %3385 = vmatprep.subr.bf16.mxu0 %v3758_v8  ;;  %3393 = vmatprep.subr.bf16.mxu1 %v3758_v8 }
 0x19c   : > { %3374 = vmatmul.mubr.bf16.vlgmr.msra.gmra.mrb[16].mxu0 %v3921_v27  ;;  %3382 = vmatmul.mubr.bf16.vlgmr.msra.gmra.mrb[16].mxu1 %v3921_v27 }
 0x19d   : > { %3386 = vmatpush3.bf16.xpose.msra.mxu0 %v3546_v42  ;;  %3394 = vmatpush3.bf16.xpose.msra.mxu1 %v3547_v43 }
 0x19e   : > { %3387 = vmatprep.subr.bf16.mxu0 %v3758_v8  ;;  %3395 = vmatprep.subr.bf16.mxu1 %v3758_v8 }
 0x19f   : > { %3389 = vmatprep.mubr.msk.bf16.mxu0 %vm3759_vm0, %v3758_v8  ;;  %3397 = vmatprep.mubr.msk.bf16.mxu1 %vm3759_vm0, %v3758_v8 }
 0x1a5   : > { %3388 = vmatpush3.bf16.xpose.msra.mxu0 %v3548_v44  ;;  %3396 = vmatpush3.bf16.xpose.msra.mxu1 %v3549_v45 }
 0x1a6   : > { %3401 = vmatprep.subr.bf16.mxu0 %v3758_v8  ;;  %3407 = vmatprep.subr.bf16.mxu1 %v3758_v8 }
 0x1ac   : > { %3390 = vmatmul.mubr.bf16.vlgmr.msra.gmra.mrb[20].mxu0 %v3921_v27  ;;  %3398 = vmatmul.mubr.bf16.vlgmr.msra.gmra.mrb[20].mxu1 %v3921_v27 }
 0x1ad   : > { %3403 = vmatprep.mubr.msk.bf16.mxu0 %vm3759_vm0, %v3758_v8  ;;  %3409 = vmatprep.mubr.msk.bf16.mxu1 %vm3759_vm0, %v3758_v8 }
 0x22f   : > { %v610_v46 = vpop.f32.mrb[0].mxu0  ;;  %v662_v47 = vpop.f32.mrb[0].mxu1 }
 0x230   : > { %v3311_v48 = vpop.f32.mrb[1].mxu0  ;;  %v3319_v49 = vpop.f32.mrb[1].mxu1  ;;  %v1188_v11 = vpack.c.bf16 %v610_v46, %v610_v46  ;;  %v1189_v12 = vpack.c.bf16 %v662_v47, %v662_v47 }
 0x231   : > { %v613_v50 = vpop.f32.mrb[2].mxu0  ;;  %v665_v51 = vpop.f32.mrb[2].mxu1 }
 0x232   : > { %v3312_v52 = vpop.f32.mrb[3].mxu0  ;;  %v3320_v53 = vpop.f32.mrb[3].mxu1 }
 0x23f   : > { %v714_v54 = vpop.f32.mrb[4].mxu0  ;;  %v766_v55 = vpop.f32.mrb[4].mxu1 }
 0x240   : > { %v3327_v56 = vpop.f32.mrb[5].mxu0  ;;  %v3335_v57 = vpop.f32.mrb[5].mxu1  ;;  %v1190_v29 = vpack.c.bf16 %v714_v54, %v714_v54  ;;  %v1191_v30 = vpack.c.bf16 %v766_v55, %v766_v55 }
 0x241   : > { %v717_v58 = vpop.f32.mrb[6].mxu0  ;;  %v769_v59 = vpop.f32.mrb[6].mxu1 }
 0x242   : > { %v3328_v60 = vpop.f32.mrb[7].mxu0  ;;  %v3336_v61 = vpop.f32.mrb[7].mxu1 }
 0x24f   : > { %v818_v62 = vpop.f32.mrb[8].mxu0  ;;  %v870_v63 = vpop.f32.mrb[8].mxu1 }
 0x250   : > { %v1192_v0 = vpack.c.bf16 %v818_v62, %v818_v62  ;;  %v1193_v1 = vpack.c.bf16 %v870_v63, %v870_v63  ;;  %v3343_v2 = vpop.f32.mrb[9].mxu0  ;;  %v3351_v3 = vpop.f32.mrb[9].mxu1 }
 0x251   : > { %v821_v4 = vpop.f32.mrb[10].mxu0  ;;  %v873_v5 = vpop.f32.mrb[10].mxu1 }
 0x252   : > { %v1205_v6 = vsel %vm1200_vm1, %v1192_v0, 0  ;;  %v1251_v7 = vsel %vm1200_vm1, %v1193_v1, 0  ;;  %v3344_v9 = vpop.f32.mrb[11].mxu0  ;;  %v3352_v10 = vpop.f32.mrb[11].mxu1 }
 0x253   : > { %3402 = vmatpush3.bf16.xpose.msra.mxu0 %v1205_v6  ;;  %3408 = vmatpush3.bf16.xpose.msra.mxu1 %v1251_v7 }
 0x254   : > { %3413 = vmatprep.subr.bf16.mxu0 %v3758_v8  ;;  %3419 = vmatprep.subr.bf16.mxu1 %v3758_v8 }
 0x25a   : > { %3404 = vmatmul.mubr.msk.bf16.vlgmr.msra.gmra.mrb[24].mxu0 %vm1200_vm1, %v1188_v11  ;;  %3410 = vmatmul.mubr.msk.bf16.vlgmr.msra.gmra.mrb[24].mxu1 %vm1200_vm1, %v1189_v12 }
 0x25b   : > { %3415 = vmatprep.mubr.msk.bf16.mxu0 %vm3759_vm0, %v3758_v8  ;;  %3421 = vmatprep.mubr.msk.bf16.mxu1 %vm3759_vm0, %v3758_v8 }
 0x25f   : > { %v922_v13 = vpop.f32.mrb[12].mxu0  ;;  %v974_v14 = vpop.f32.mrb[12].mxu1 }
 0x260   : > { %v1194_v19 = vpack.c.bf16 %v922_v13, %v922_v13  ;;  %v1195_v20 = vpack.c.bf16 %v974_v14, %v974_v14  ;;  %v3359_v21 = vpop.f32.mrb[13].mxu0  ;;  %v3367_v22 = vpop.f32.mrb[13].mxu1 }
 0x261   : > { %v925_v23 = vpop.f32.mrb[14].mxu0  ;;  %v977_v24 = vpop.f32.mrb[14].mxu1 }
 0x262   : > { %v1297_v25 = vsel %vm1200_vm1, %v1194_v19, 0  ;;  %v1343_v26 = vsel %vm1200_vm1, %v1195_v20, 0  ;;  %v3360_v27 = vpop.f32.mrb[15].mxu0  ;;  %v3368_v28 = vpop.f32.mrb[15].mxu1 }
 0x263   : > { %3414 = vmatpush3.bf16.xpose.msra.mxu0 %v1297_v25  ;;  %3420 = vmatpush3.bf16.xpose.msra.mxu1 %v1343_v26 }
 0x264   : > { %3425 = vmatprep.subr.bf16.mxu0 %v3758_v8  ;;  %3431 = vmatprep.subr.bf16.mxu1 %v3758_v8 }
 0x26a   : > { %3416 = vmatmul.mubr.msk.bf16.vlgmr.msra.gmra.mrb[28].mxu0 %vm1200_vm1, %v1190_v29  ;;  %3422 = vmatmul.mubr.msk.bf16.vlgmr.msra.gmra.mrb[28].mxu1 %vm1200_vm1, %v1191_v30 }
 0x26b   : > { %3427 = vmatprep.mubr.msk.bf16.mxu0 %vm3759_vm0, %v3758_v8  ;;  %3433 = vmatprep.mubr.msk.bf16.mxu1 %vm3759_vm0, %v3758_v8 }
 0x26f   : > { %v1026_v31 = vpop.f32.mrb[16].mxu0  ;;  %v1078_v32 = vpop.f32.mrb[16].mxu1 }
 0x270   : > { %v1196_v33 = vpack.c.bf16 %v1026_v31, %v1026_v31  ;;  %v1197_v34 = vpack.c.bf16 %v1078_v32, %v1078_v32  ;;  %v3375_v35 = vpop.f32.mrb[17].mxu0  ;;  %v3383_v36 = vpop.f32.mrb[17].mxu1 }
 0x271   : > { %v1029_v37 = vpop.f32.mrb[18].mxu0  ;;  %v1081_v38 = vpop.f32.mrb[18].mxu1 }
 0x272   : > { %v1439_v39 = vsel %vm1437_vm2, %v1196_v33, 0  ;;  %v1485_v40 = vsel %vm1437_vm2, %v1197_v34, 0  ;;  %v3376_v41 = vpop.f32.mrb[19].mxu0  ;;  %v3384_v42 = vpop.f32.mrb[19].mxu1 }
 0x273   : > { %3426 = vmatpush3.bf16.msra.mxu0 %v1439_v39  ;;  %3432 = vmatpush3.bf16.msra.mxu1 %v1485_v40 }
 0x274   : > { %3437 = vmatprep.subr.bf16.mxu0 %v3758_v8  ;;  %3443 = vmatprep.subr.bf16.mxu1 %v3758_v8 }
 0x27f   : > { %v1130_v43 = vpop.f32.mrb[20].mxu0  ;;  %v1182_v44 = vpop.f32.mrb[20].mxu1 }
 0x280   : > { %v1198_v45 = vpack.c.bf16 %v1130_v43, %v1130_v43  ;;  %v1199_v46 = vpack.c.bf16 %v1182_v44, %v1182_v44  ;;  %v3391_v47 = vpop.f32.mrb[21].mxu0  ;;  %v3399_v48 = vpop.f32.mrb[21].mxu1 }
 0x281   : > { %v1133_v49 = vpop.f32.mrb[22].mxu0  ;;  %v1185_v50 = vpop.f32.mrb[22].mxu1 }
 0x282   : > { %v4022_v51 = vsel %vm1437_vm2, %v1198_v45, 0  ;;  %v4025_v52 = vsel %vm1437_vm2, %v1199_v46, 0  ;;  %v3392_v53 = vpop.f32.mrb[23].mxu0  ;;  %v3400_v54 = vpop.f32.mrb[23].mxu1 }
 0x283   : > { %v3552_v54 = vld [vmem:[%s3872_s27 + $0x10] sm:$0xff]  }
 0x32d   : > { %v1241_v55 = vpop.f32.mrb[24].mxu0  ;;  %v1287_v56 = vpop.f32.mrb[24].mxu1 }
 0x32e   : > { %v3405_v57 = vpop.f32.mrb[25].mxu0  ;;  %v3411_v58 = vpop.f32.mrb[25].mxu1  ;;  %v1386_v59 = vsel %vm1385_vm3, %v1241_v55, -inf  ;;  %v1389_v0 = vsel %vm1385_vm3, %v1287_v56, -inf }
 0x32f   : > { %v1290_v60 = vpop.f32.mrb[26].mxu1  ;;  %1387 = vmax.xlane.f32.xlu1 %v1386_v59  ;;  %v1244_v61 = vpop.f32.mrb[26].mxu0  ;;  %v3554_v57 = vld [vmem:[%s3872_s27 + $0x20] sm:$0xff]  }
 0x330   : > { %v3406_v62 = vpop.f32.mrb[27].mxu0  ;;  %v3412_v63 = vpop.f32.mrb[27].mxu1 }
 0x331   : > { %v3555_v63 = vld [vmem:[%s3872_s27 + $0x30] sm:$0xff]  }
 0x333   : > { %1390 = vmax.xlane.f32.xlu1 %v1389_v0  ;;  %v3556_v0 = vld [vmem:[%s3872_s27 + $0x28] sm:$0xff]  }
 0x33d   : > { %v1333_v1 = vpop.f32.mrb[28].mxu0  ;;  %v1379_v2 = vpop.f32.mrb[28].mxu1 }
 0x33e   : > { %v3417_v3 = vpop.f32.mrb[29].mxu0  ;;  %v3423_v4 = vpop.f32.mrb[29].mxu1  ;;  %v1395_v5 = vsel %vm1385_vm3, %v1379_v2, -inf  ;;  %v1392_v6 = vsel %vm1385_vm3, %v1333_v1, -inf }
 0x33f   : > { %v1382_v7 = vpop.f32.mrb[30].mxu1  ;;  %1396 = vmax.xlane.f32.xlu1 %v1395_v5  ;;  %1393 = vmax.xlane.f32.xlu0 %v1392_v6  ;;  %v1336_v9 = vpop.f32.mrb[30].mxu0  ;;  %v3557_v5 = vld [vmem:[%s3872_s27 + $0x38] sm:$0xff]  }
 0x340   : > { %v3418_v10 = vpop.f32.mrb[31].mxu0  ;;  %v3424_v11 = vpop.f32.mrb[31].mxu1 }
 0x3bc   : > { %v1388_v12 = vpop.xlane.xlu1 %1387 }
 0x3bd   : > { %v1398_v13 = vsub.f32 %v1241_v55, %v1388_v12  ;;  %v3553_v55 = vld [vmem:[%s3872_s27 + $0x18] sm:$0xff]  }
 0x3bf   : > { %v1402_v14 = vmul.f32 1.442695, %v1398_v13 }
 0x3c0   : > { %v1391_v19 = vpop.xlane.xlu1 %1390 }
 0x3c1   : > { %3640 = vpow2.f32 %v1402_v14  ;;  %v1399_v20 = vsub.f32 %v1287_v56, %v1391_v19 }
 0x3c3   : > { %v1404_v21 = vmul.f32 1.442695, %v1399_v20 }
 0x3c5   : > { %3642 = vpow2.f32 %v1404_v21 }
 0x3cb   : > { %v3641_v22 = vpop.eup %3640 }
 0x3cc   : > { %v1397_v23 = vpop.xlane.xlu1 %1396  ;;  %v1394_v24 = vpop.xlane.xlu0 %1393  ;;  %v1410_v25 = vsel %vm1385_vm3, %v3641_v22, 0.0 }
 0x3cd   : > { %v1401_v26 = vsub.f32 %v1379_v2, %v1397_v23  ;;  %v1400_v27 = vsub.f32 %v1333_v1, %v1394_v24  ;;  %1411 = vadd.xlane.f32.xlu0 %v1410_v25 }
 0x3cf   : > { %v3643_v28 = vpop.eup %3642  ;;  %v1408_v29 = vmul.f32 1.442695, %v1401_v26  ;;  %v1406_v30 = vmul.f32 1.442695, %v1400_v27 }
 0x3d0   : > { %v1413_v31 = vsel %vm1385_vm3, %v3643_v28, 0.0 }
 0x3d1   : > { %3644 = vpow2.f32 %v1408_v29  ;;  %1414 = vadd.xlane.f32.xlu1 %v1413_v31 }
 0x3d2   : > { %3646 = vpow2.f32 %v1406_v30  ;;  %v1865_v30 = vsub.s32 4, %v3904_v15 }
 0x3db   : > { %v3645_v32 = vpop.eup %3644 }
 0x3dc   : > { %v3647_v33 = vpop.eup %3646  ;;  %v1419_v34 = vsel %vm1385_vm3, %v3645_v32, 0.0 }
 0x3dd   : > { %1420 = vadd.xlane.f32.xlu1 %v1419_v34  ;;  %v1416_v35 = vsel %vm1385_vm3, %v3647_v33, 0.0 }
 0x3de   : > { %1417 = vadd.xlane.f32.xlu0 %v1416_v35 }
 0x45a   : > { %v1412_v36 = vpop.xlane.xlu0 %1411 }
 0x45b   : > { %3648 = vrcp.f32 %v1412_v36 }
 0x45e   : > { %v1415_v37 = vpop.xlane.xlu1 %1414 }
 0x45f   : > { %3650 = vrcp.f32 %v1415_v37 }
 0x465   : > { %v3649_v38 = vpop.eup %3648 }
 0x466   : > { %v1423_v39 = vmul.f32 %v3649_v38, %v3641_v22 }
 0x468   : > { %v1430_v40 = vpack.c.bf16 %v1423_v39, %v1423_v39 }
 0x469   : > { %v3651_v41 = vpop.eup %3650 }
 0x46a   : > { %v1425_v42 = vmul.f32 %v3651_v41, %v3643_v28  ;;  %v1421_v43 = vpop.xlane.xlu1 %1420  ;;  %3428 = vmatmul.mubr.msk.bf16.vlgmr.msra.gmra.mrb[32].mxu0 %vm1385_vm3, %v1430_v40  ;;  %v1866_v40 = vrot.slane %v3910_v17, %v1865_v30  ;;  %v3666_v41 = vld [vmem:[#allocation2] sm:$0xff] }
 0x46b   : > { %3652 = vrcp.f32 %v1421_v43  ;;  %3438 = vmatpush3.bf16.msra.mxu0 %v4022_v51  ;;  %v1418_v44 = vpop.xlane.xlu0 %1417  ;;  %3439 = vmatprep.mubr.msk.bf16.mxu0 %vm3759_vm0, %v3758_v8  ;;  %v3550_v51 = vld [vmem:[%s3872_s27] sm:$0xff]  }
 0x46c   : > { %3654 = vrcp.f32 %v1418_v44  ;;  %v1431_v45 = vpack.c.bf16 %v1425_v42, %v1425_v42  ;;  %3449 = vmatprep.subr.bf16.mxu0 %v3758_v8  ;;  %v3558_v44 = vld [vmem:[%s3877_s0] ss:$16 sps:$4 sm:$0xff]  }
 0x46e   : > { %3434 = vmatmul.mubr.msk.bf16.vlgmr.msra.gmra.mrb[32].mxu1 %vm1385_vm3, %v1431_v45  ;;  %v3560_v45 = vld [vmem:[%s3877_s0 + $0x4] ss:$16 sps:$4 sm:$0xff]  }
 0x46f   : > { %3444 = vmatpush3.bf16.msra.mxu1 %v4025_v52  ;;  %3445 = vmatprep.mubr.msk.bf16.mxu1 %vm3759_vm0, %v3758_v8  ;;  %v3551_v52 = vld [vmem:[%s3872_s27 + $0x8] sm:$0xff]  }
 0x470   : > { %3457 = vmatprep.subr.bf16.mxu1 %v3758_v8 }
 0x475   : > { %v3653_v46 = vpop.eup %3652 }
 0x476   : > { %v3655_v47 = vpop.eup %3654  ;;  %v1429_v48 = vmul.f32 %v3653_v46, %v3645_v32  ;;  %v3561_v46 = vld [vmem:[%s3877_s0 + $0x8] ss:$16 sps:$4 sm:$0xff]  }
 0x477   : > { %v1427_v49 = vmul.f32 %v3655_v47, %v3647_v33  ;;  %v3563_v47 = vld [vmem:[%s3877_s0 + $0xc] ss:$16 sps:$4 sm:$0xff]  }
 0x478   : > { %v1433_v50 = vpack.c.bf16 %v1429_v48, %v1429_v48  ;;  %v3566_v48 = vld [vmem:[%s3877_s0 + $0x24] ss:$16 sps:$4 sm:$0xff]  }
 0x479   : > { %v1432_v53 = vpack.c.bf16 %v1427_v49, %v1427_v49  ;;  %v3569_v49 = vld [vmem:[%s3877_s0 + $0x2c] ss:$16 sps:$4 sm:$0xff]  }
 0x47a   : > { %3446 = vmatmul.mubr.msk.bf16.vlgmr.msra.gmra.mrb[36].mxu1 %vm1385_vm3, %v1433_v50  ;;  %v3564_v50 = vld [vmem:[%s3877_s0 + $0x20] ss:$16 sps:$4 sm:$0xff]  }
 0x47b   : > { %3440 = vmatmul.mubr.msk.bf16.vlgmr.msra.gmra.mrb[36].mxu0 %vm1385_vm3, %v1432_v53  ;;  %3461 = vmatprep.mubr.msk.bf16.mxu1 %vm3759_vm0, %v3758_v8  ;;  %v3572_v53 = vld [vmem:[%s3877_s0 + $0x44] ss:$16 sps:$4 sm:$0xff]  }
 0x47c   : > { %3450 = vmatpush3.bf16.msra.mxu0 %v3550_v51  ;;  %3453 = vmatprep.mubr.msk.bf16.mxu0 %vm3759_vm0, %v3758_v8  ;;  %v3567_v51 = vld [vmem:[%s3877_s0 + $0x28] ss:$16 sps:$4 sm:$0xff]  }
 0x47d   : > { %3451 = vmatprep.subr.bf16.mxu0 %v3758_v8  ;;  %3458 = vmatpush3.bf16.msra.mxu1 %v3552_v54  ;;  %v3570_v54 = vld [vmem:[%s3877_s0 + $0x40] ss:$16 sps:$4 sm:$0xff]  }
 0x47e   : > { %3459 = vmatprep.subr.bf16.mxu1 %v3758_v8 }
 0x480   : > { %3452 = vmatpush3.bf16.msra.mxu0 %v3551_v52  ;;  %v3575_v52 = vld [vmem:[%s3877_s0 + $0x4c] ss:$16 sps:$4 sm:$0xff]  }
 0x481   : > { %3465 = vmatprep.subr.bf16.mxu0 %v3758_v8  ;;  %3460 = vmatpush3.bf16.msra.mxu1 %v3553_v55  ;;  %v3573_v55 = vld [vmem:[%s3877_s0 + $0x48] ss:$16 sps:$4 sm:$0xff]  }
 0x482   : > { %3473 = vmatprep.subr.bf16.mxu1 %v3758_v8 }
 0x53d   : > { %v1475_v56 = vpop.f32.mrb[32].mxu0 }
 0x53e   : > { %v1619_v58 = vpack.c.bf16 %v1475_v56, %v1475_v56  ;;  %v3429_v59 = vpop.f32.mrb[33].mxu0 }
 0x53f   : > { %v1478_v60 = vpop.f32.mrb[34].mxu0 }
 0x540   : > { %v3430_v61 = vpop.f32.mrb[35].mxu0  ;;  %3454 = vmatmul.mubr.msk.bf16.vlgmr.msra.gmra.mrb[40].mxu0 %vm1200_vm1, %v1619_v58  ;;  %v3578_v60 = vld [vmem:[%s3877_s0 + $0x64] ss:$16 sps:$4 sm:$0xff]  }
 0x541   : > { %v1521_v62 = vpop.f32.mrb[32].mxu1  ;;  %3466 = vmatpush3.bf16.msra.mxu0 %v3554_v57  ;;  %3469 = vmatprep.mubr.msk.bf16.mxu0 %vm3759_vm0, %v3758_v8  ;;  %v3581_v61 = vld [vmem:[%s3877_s0 + $0x6c] ss:$16 sps:$4 sm:$0xff]  }
 0x542   : > { %v1620_v1 = vpack.c.bf16 %v1521_v62, %v1521_v62  ;;  %v3435_v2 = vpop.f32.mrb[33].mxu1  ;;  %3467 = vmatprep.subr.bf16.mxu0 %v3758_v8  ;;  %v3576_v62 = vld [vmem:[%s3877_s0 + $0x60] ss:$16 sps:$4 sm:$0xff]  }
 0x543   : > { %v1524_v3 = vpop.f32.mrb[34].mxu1  ;;  %v3582_v2 = vld [vmem:[%s3877_s0 + $0x80] ss:$16 sps:$4 sm:$0xff]  }
 0x544   : > { %v3436_v4 = vpop.f32.mrb[35].mxu1  ;;  %3462 = vmatmul.mubr.msk.bf16.vlgmr.msra.gmra.mrb[40].mxu1 %vm1200_vm1, %v1620_v1  ;;  %v3587_v1 = vld [vmem:[%s3877_s0 + $0x8c] ss:$16 sps:$4 sm:$0xff]   ;;  %v3585_v3 = vld [vmem:[%s3877_s0 + $0x88] ss:$16 sps:$4 sm:$0xff]  }
 0x545   : > { %3474 = vmatpush3.bf16.msra.mxu1 %v3555_v63  ;;  %3468 = vmatpush3.bf16.msra.mxu0 %v3556_v0  ;;  %v3579_v63 = vld [vmem:[%s3877_s0 + $0x68] ss:$16 sps:$4 sm:$0xff]   ;;  %v3584_v0 = vld [vmem:[%s3877_s0 + $0x84] ss:$16 sps:$4 sm:$0xff]  }
 0x546   : > { %3475 = vmatprep.subr.bf16.mxu1 %v3758_v8  ;;  %3477 = vmatprep.mubr.msk.bf16.mxu1 %vm3759_vm0, %v3758_v8  ;;  %v3590_v4 = vld [vmem:[%s3877_s0 + $0xa4] ss:$16 sps:$4 sm:$0xff]  }
 0x547   : > { %2103 = vmatprep.subr.bf16.mxu0 %v3560_v45  ;;  %v3618_v45 = vld [vmem:[%s3882_s12 + $0x58] sm:$0xff]  }
 0x549   : > { %3476 = vmatpush3.bf16.msra.mxu1 %v3557_v5  ;;  %v3593_v5 = vld [vmem:[%s3877_s0 + $0xac] ss:$16 sps:$4 sm:$0xff]  }
 0x54a   : > { %2144 = vmatprep.subr.bf16.mxu1 %v3563_v47  ;;  %v3620_v47 = vld [vmem:[%s3882_s12 + $0x18] sm:$0xff]  }
 0x54d   : > { %v1613_v6 = vpop.f32.mrb[36].mxu1 }
 0x54e   : > { %v1567_v7 = vpop.f32.mrb[36].mxu0  ;;  %v1622_v9 = vpack.c.bf16 %v1613_v6, %v1613_v6  ;;  %v3447_v10 = vpop.f32.mrb[37].mxu1  ;;  %v3588_v6 = vld [vmem:[%s3877_s0 + $0xa0] ss:$16 sps:$4 sm:$0xff]  }
 0x54f   : > { %v1621_v11 = vpack.c.bf16 %v1567_v7, %v1567_v7  ;;  %v3441_v12 = vpop.f32.mrb[37].mxu0  ;;  %v1616_v13 = vpop.f32.mrb[38].mxu1  ;;  %v3591_v7 = vld [vmem:[%s3877_s0 + $0xa8] ss:$16 sps:$4 sm:$0xff]   ;;  %v3599_v10 = vld [vmem:[%s3877_s0 + $0xcc] ss:$16 sps:$4 sm:$0xff]  }
 0x550   : > { %v1570_v14 = vpop.f32.mrb[38].mxu0  ;;  %v3448_v19 = vpop.f32.mrb[39].mxu1  ;;  %3478 = vmatmul.mubr.msk.bf16.vlgmr.msra.gmra.mrb[44].mxu1 %vm1200_vm1, %v1622_v9  ;;  %v3596_v9 = vld [vmem:[%s3877_s0 + $0xc4] ss:$16 sps:$4 sm:$0xff]   ;;  %v3597_v12 = vld [vmem:[%s3877_s0 + $0xc8] ss:$16 sps:$4 sm:$0xff]  }
 0x551   : > { %v3442_v20 = vpop.f32.mrb[39].mxu0  ;;  %3470 = vmatmul.mubr.msk.bf16.vlgmr.msra.gmra.mrb[44].mxu0 %vm1200_vm1, %v1621_v11  ;;  %2145 = vmatpush1.bf16.msra.mxu1 %v3561_v46  ;;  %v3594_v11 = vld [vmem:[%s3877_s0 + $0xc0] ss:$16 sps:$4 sm:$0xff]   ;;  %v3602_v14 = vld [vmem:[%s3877_s0 + $0xe4] ss:$16 sps:$4 sm:$0xff]   ;;  %v3619_v46 = vld [vmem:[%s3882_s12 + $0xd8] sm:$0xff]  }
 0x552   : > { %2104 = vmatpush1.bf16.msra.mxu0 %v3558_v44  ;;  %2146 = vmatprep.subr.bf16.mxu1 %v3569_v49  ;;  %v3600_v13 = vld [vmem:[%s3877_s0 + $0xe0] ss:$16 sps:$4 sm:$0xff]   ;;  %v3603_v19 = vld [vmem:[%s3877_s0 + $0xe8] ss:$16 sps:$4 sm:$0xff]   ;;  %v3605_v20 = vld [vmem:[%s3877_s0 + $0xec] ss:$16 sps:$4 sm:$0xff]  }
 0x553   : > { %2105 = vmatprep.subr.bf16.mxu0 %v3566_v48  ;;  %v3617_v44 = vld [vmem:[%s3882_s12 + $0x90] sm:$0xff]   ;;  %v3621_v48 = vld [vmem:[%s3882_s12 + $0x98] sm:$0xff]   ;;  %v3622_v49 = vld [vmem:[%s3882_s12 + $0x60] sm:$0xff]  }
 0x555   : > { %2147 = vmatpush1.bf16.msra.mxu1 %v3567_v51  ;;  %v3624_v51 = vld [vmem:[%s3882_s12 + $0x20] sm:$0xff]  }
 0x556   : > { %2106 = vmatpush1.bf16.msra.mxu0 %v3564_v50  ;;  %2148 = vmatprep.subr.bf16.mxu1 %v3575_v52  ;;  %v3623_v50 = vld [vmem:[%s3882_s12 + $0xe0] sm:$0xff]   ;;  %v3626_v52 = vld [vmem:[%s3882_s12 + $0x68] sm:$0xff]  }
 0x557   : > { %2107 = vmatprep.subr.bf16.mxu0 %v3572_v53  ;;  %v3625_v53 = vld [vmem:[%s3882_s12 + $0xa0] sm:$0xff]  }
 0x559   : > { %2149 = vmatpush1.bf16.msra.mxu1 %v3573_v55  ;;  %v3628_v55 = vld [vmem:[%s3882_s12 + $0x28] sm:$0xff]  }
 0x55a   : > { %2108 = vmatpush1.bf16.msra.mxu0 %v3570_v54  ;;  %2150 = vmatprep.subr.bf16.mxu1 %v3581_v61  ;;  %v3627_v54 = vld [vmem:[%s3882_s12 + $0xe8] sm:$0xff]   ;;  %v3634_v61 = vld [vmem:[%s3882_s12 + $0x78] sm:$0xff]  }
 0x55b   : > { %2109 = vmatprep.subr.bf16.mxu0 %v3578_v60  ;;  %v3633_v60 = vld [vmem:[%s3882_s12 + $0xb0] sm:$0xff]  }
 0x55d   : > { %2151 = vmatpush1.bf16.msra.mxu1 %v3579_v63  ;;  %v3636_v63 = vld [vmem:[%s3882_s12 + $0x38] sm:$0xff]  }
 0x55e   : > { %2110 = vmatpush1.bf16.msra.mxu0 %v3576_v62  ;;  %2152 = vmatprep.subr.bf16.mxu1 %v3587_v1  ;;  %v3635_v62 = vld [vmem:[%s3882_s12 + $0xf8] sm:$0xff]   ;;  %v492_v1 = vld [vmem:[%s3862_s19] sm:$0xf] }
 0x55f   : > { %2111 = vmatprep.subr.bf16.mxu0 %v3584_v0  ;;  %v3637_v0 = vld [vmem:[%s3882_s12 + $0xb8] sm:$0xff]  }
 0x561   : > { %2153 = vmatpush1.bf16.msra.mxu1 %v3585_v3 }
 0x562   : > { %2112 = vmatpush1.bf16.msra.mxu0 %v3582_v2  ;;  %2154 = vmatprep.subr.bf16.mxu1 %v3593_v5  ;;  %v1926_v2 = vrot.slane %v492_v1, %v3907_v16 }
 0x563   : > { %2113 = vmatprep.subr.bf16.mxu0 %v3590_v4  ;;  %v1930_v4 = vrot.slane %v492_v1, %v3913_v18 }
 0x565   : > { %2155 = vmatpush1.bf16.msra.mxu1 %v3591_v7 }
 0x566   : > { %2114 = vmatpush1.bf16.msra.mxu0 %v3588_v6  ;;  %2156 = vmatprep.subr.bf16.mxu1 %v3599_v10 }
 0x567   : > { %2115 = vmatprep.subr.bf16.mxu0 %v3596_v9 }
 0x569   : > { %2157 = vmatpush1.bf16.msra.mxu1 %v3597_v12 }
 0x56a   : > { %2116 = vmatpush1.bf16.msra.mxu0 %v3594_v11  ;;  %2158 = vmatprep.subr.bf16.mxu1 %v3605_v20 }
 0x56b   : > { %2117 = vmatprep.subr.bf16.mxu0 %v3602_v14 }
 0x56d   : > { %2159 = vmatpush1.bf16.msra.mxu1 %v3603_v19 }
 0x56e   : > { %2118 = vmatpush1.bf16.msra.mxu0 %v3600_v13 }
 0x613   : > { %v1688_v21 = vpop.f32.mrb[40].mxu0 }
 0x614   : > { %v3455_v22 = vpop.f32.mrb[41].mxu0 }
 0x615   : > { %v1691_v23 = vpop.f32.mrb[42].mxu0 }
 0x616   : > { %v3456_v24 = vpop.f32.mrb[43].mxu0 }
 0x617   : > { %v1743_v8 = vpop.f32.mrb[40].mxu1 }
 0x618   : > { %v1859_v25 = vadd.f32 %v1743_v8, %v1688_v21  ;;  %v3463_v26 = vpop.f32.mrb[41].mxu1  ;;  %v3760_v21 = vmov 0   ;;  %v4112_v8 = vsub.s32 2, %v3904_v15 }
 0x619   : > { %v1746_v27 = vpop.f32.mrb[42].mxu1  ;;  %2135 = vmatprep.mubr.bf16.mxu0 %v3760_v21  ;;  %2176 = vmatprep.mubr.bf16.mxu1 %v3760_v21 }
 0x61a   : > { %v3464_v28 = vpop.f32.mrb[43].mxu1  ;;  %v1882_v26 = vrot.slane %v3910_v17, %v4112_v8  ;;  %v1934_v3 = vrot.slane %v492_v1, %v4112_v8 }
 0x623   : > { %v1853_v29 = vpop.f32.mrb[44].mxu1 }
 0x624   : > { %v1798_v31 = vpop.f32.mrb[44].mxu0  ;;  %v3479_v32 = vpop.f32.mrb[45].mxu1 }
 0x625   : > { %v1860_v33 = vadd.f32 %v1859_v25, %v1798_v31  ;;  %v3471_v34 = vpop.f32.mrb[45].mxu0  ;;  %v1856_v35 = vpop.f32.mrb[46].mxu1  ;;  %v4115_v25 = vsub.s32 3, %v3904_v15 }
 0x626   : > { %v1801_v36 = vpop.f32.mrb[46].mxu0  ;;  %v3480_v37 = vpop.f32.mrb[47].mxu1  ;;  %v3607_v34 = vld [vmem:[%s3882_s12 + $0xc0] sm:$0xff]  }
 0x627   : > { %v1861_v38 = vadd.f32 %v1860_v33, %v1853_v29  ;;  %v3472_v39 = vpop.f32.mrb[47].mxu0  ;;  %v1887_v29 = vrot.slane %v3910_v17, %v4115_v25  ;;  %v3606_v33 = vld [vmem:[%s3882_s12 + $0x40] sm:$0xff]   ;;  %3283 = vmatprep.subr.bf16.mxu1 %v3607_v34  ;;  %v3610_v17 = vld [vmem:[%s3882_s12 + $0x48] sm:$0xff]   ;;  %v1938_v5 = vrot.slane %v492_v1, %v4115_v25 }
 0x628   : > { %v3608_v35 = vld [vmem:[%s3882_s12] sm:$0xff]   ;;  %3261 = vmatprep.subr.bf16.mxu0 %v3606_v33  ;;  %v3611_v37 = vld [vmem:[%s3882_s12 + $0xc8] sm:$0xff]  }
 0x629   : > { %v1862_v42 = vadd.f32 %v3666_v41, %v1861_v38  ;;  %v3609_v36 = vld [vmem:[%s3882_s12 + $0x80] sm:$0xff]   ;;  %v3612_v38 = vld [vmem:[%s3882_s12 + $0x8] sm:$0xff]   ;;  %v3615_v41 = vld [vmem:[%s3882_s12 + $0xd0] sm:$0xff]  }
 0x62a   : > { %v3613_v39 = vld [vmem:[%s3882_s12 + $0x88] sm:$0xff]  }
 0x62b   : > { %v4075_v43 = vadd.f32 %v1866_v40, %v1862_v42  ;;  %v3614_v40 = vld [vmem:[%s3882_s12 + $0x50] sm:$0xff]  }
 0x62c   : > { %v3616_v42 = vld [vmem:[%s3882_s12 + $0x10] sm:$0xff]  }
 0x62d   : > { %1868 = vadd.xlane.f32.xlu0 %v4075_v43 }
 0x6ba   : > { %v1869_v56 = vpop.xlane.xlu0 %1868 }
 0x6bb   : > { %v1870_v57 = vmul.f32 0.0078125, %v1869_v56  ;;  %v3629_v56 = vld [vmem:[%s3882_s12 + $0xa8] sm:$0xff]  }
 0x6bd   : > { %v1871_v58 = vsub.f32 %v4075_v43, %v1870_v57  ;;  %v3630_v57 = vld [vmem:[%s3882_s12 + $0x70] sm:$0xff]  }
 0x6bf   : > { %v1872_v59 = vmul.f32 %v1871_v58, %v1871_v58 }
 0x6c1   : > { %1873 = vadd.xlane.f32.xlu1 %v1872_v59  ;;  %v3632_v59 = vld [vmem:[%s3882_s12 + $0x30] sm:$0xff]  }
 0x74e   : > { %v1874_v22 = vpop.xlane.xlu1 %1873 }
 0x74f   : > { %v1875_v23 = vmul.f32 0.0078125, %v1874_v22 }
 0x751   : > { %v1876_v24 = vadd.f32 1e-06, %v1875_v23 }
 0x753   : > { %3656 = vrsqrt.f32 %v1876_v24 }
 0x75d   : > { %v3657_v27 = vpop.eup %3656 }
 0x75e   : > { %v1878_v28 = vmul.f32 %v3657_v27, %v1871_v58  ;;  %v3631_v58 = vld [vmem:[%s3882_s12 + $0xf0] sm:$0xff]  }
 0x760   : > { %v1883_v30 = vmul.f32 %v1882_v26, %v1878_v28 }
 0x762   : > { %v1888_v31 = vadd.f32 %v1887_v29, %v1883_v30 }
 0x764   : > { %v1889_v32 = vpack.c.bf16 %v1888_v31, %v1888_v31 }
 0x766   : > { %2136 = vmatmul.mubr.bf16.vlgmr.msra.gmra.mrb[48].mxu0 %v1889_v32  ;;  %2177 = vmatmul.mubr.bf16.vlgmr.msra.gmra.mrb[48].mxu1 %v1889_v32 }
 0x767   : > { %3262 = vmatpush3.bf16.msra.mxu0 %v3608_v35  ;;  %3284 = vmatpush3.bf16.msra.mxu1 %v3609_v36 }
 0x768   : > { %3263 = vmatprep.subr.bf16.mxu0 %v3610_v17  ;;  %3285 = vmatprep.subr.bf16.mxu1 %v3611_v37 }
 0x76b   : > { %3264 = vmatpush3.bf16.msra.mxu0 %v3612_v38  ;;  %3286 = vmatpush3.bf16.msra.mxu1 %v3613_v39 }
 0x76c   : > { %3265 = vmatprep.subr.bf16.mxu0 %v3614_v40  ;;  %3287 = vmatprep.subr.bf16.mxu1 %v3615_v41 }
 0x76f   : > { %3266 = vmatpush3.bf16.msra.mxu0 %v3616_v42  ;;  %3288 = vmatpush3.bf16.msra.mxu1 %v3617_v44 }
 0x770   : > { %3267 = vmatprep.subr.bf16.mxu0 %v3618_v45  ;;  %3289 = vmatprep.subr.bf16.mxu1 %v3619_v46 }
 0x773   : > { %3268 = vmatpush3.bf16.msra.mxu0 %v3620_v47  ;;  %3290 = vmatpush3.bf16.msra.mxu1 %v3621_v48 }
 0x774   : > { %3269 = vmatprep.subr.bf16.mxu0 %v3622_v49  ;;  %3291 = vmatprep.subr.bf16.mxu1 %v3623_v50 }
 0x777   : > { %3270 = vmatpush3.bf16.msra.mxu0 %v3624_v51  ;;  %3292 = vmatpush3.bf16.msra.mxu1 %v3625_v53 }
 0x778   : > { %3271 = vmatprep.subr.bf16.mxu0 %v3626_v52  ;;  %3293 = vmatprep.subr.bf16.mxu1 %v3627_v54 }
 0x77b   : > { %3272 = vmatpush3.bf16.msra.mxu0 %v3628_v55  ;;  %3294 = vmatpush3.bf16.msra.mxu1 %v3629_v56 }
 0x77c   : > { %3273 = vmatprep.subr.bf16.mxu0 %v3630_v57  ;;  %3295 = vmatprep.subr.bf16.mxu1 %v3631_v58 }
 0x77f   : > { %3274 = vmatpush3.bf16.msra.mxu0 %v3632_v59  ;;  %3296 = vmatpush3.bf16.msra.mxu1 %v3633_v60 }
 0x780   : > { %3275 = vmatprep.subr.bf16.mxu0 %v3634_v61  ;;  %3297 = vmatprep.subr.bf16.mxu1 %v3635_v62 }
 0x783   : > { %3276 = vmatpush3.bf16.msra.mxu0 %v3636_v63  ;;  %3298 = vmatpush3.bf16.msra.mxu1 %v3637_v0  ;;  %v2291_v0 = vsub.s32 5, %v3904_v15  ;;  %v3668_v15 = vld [vmem:[%s4297_s8 + $0x4] ss:$16 sps:$4 sm:$0xff] (!%p3158_p8)  }
 0x784   : > { %2808 = vmatprep.subr.bf16.mxu0 (!%p3158_p8), %v3668_v15 }
 0x839   : > { %v2137_v6 = vpop.f32.mrb[48].mxu0  ;;  %v2178_v7 = vpop.f32.mrb[48].mxu1 }
 0x83a   : > { %v2138_v9 = vadd.f32 %v2137_v6, %v1926_v2  ;;  %v2179_v10 = vadd.f32 %v2178_v7, %v1934_v3  ;;  %v2139_v11 = vpop.f32.mrb[49].mxu0  ;;  %v2180_v12 = vpop.f32.mrb[49].mxu1  ;;  %v3667_v2 = vld [vmem:[%s3857_s29] sm:$0x3f] }
 0x83b   : > { %v2140_v13 = vadd.f32 %v2139_v11, %v1930_v4  ;;  %v2181_v14 = vadd.f32 %v2180_v12, %v1938_v5  ;;  %v2141_v19 = vpop.f32.mrb[50].mxu0  ;;  %v2182_v20 = vpop.f32.mrb[50].mxu1  ;;  %v2292_v3 = vrot.slane %v3667_v2, %v2291_v0 }
 0x83c   : > { %v2189_v21 = vmul.f32 0.044715, %v2138_v9  ;;  %v2191_v22 = vmul.f32 0.044715, %v2179_v10  ;;  %v2142_v23 = vpop.f32.mrb[51].mxu0  ;;  %v2183_v24 = vpop.f32.mrb[51].mxu1 }
 0x83d   : > { %v2190_v26 = vmul.f32 0.044715, %v2140_v13  ;;  %v2192_v27 = vmul.f32 0.044715, %v2181_v14  ;;  %v2185_v46 = vmul.f32 0.5, %v2138_v9  ;;  %v2186_v49 = vmul.f32 0.5, %v2140_v13 }
 0x83e   : > { %v2193_v28 = vmul.f32 %v2189_v21, %v2138_v9  ;;  %v2195_v29 = vmul.f32 %v2191_v22, %v2179_v10  ;;  %v2188_v53 = vmul.f32 0.5, %v2181_v14  ;;  %v2187_v56 = vmul.f32 0.5, %v2179_v10  ;;  %v3670_v21 = vld [vmem:[%s4297_s8 + $0xc] ss:$16 sps:$4 sm:$0xff] (!%p3158_p8)   ;;  %v3672_v22 = vld [vmem:[%s4297_s8] ss:$16 sps:$4 sm:$0xff] (!%p3158_p8)  }
 0x83f   : > { %v2194_v30 = vmul.f32 %v2190_v26, %v2140_v13  ;;  %v2196_v31 = vmul.f32 %v2192_v27, %v2181_v14  ;;  %v3674_v23 = vld [vmem:[%s4297_s8 + $0x24] ss:$16 sps:$4 sm:$0xff] (!%p3158_p8)   ;;  %v3676_v24 = vld [vmem:[%s4297_s8 + $0x2c] ss:$16 sps:$4 sm:$0xff] (!%p3158_p8)   ;;  %2849 = vmatprep.subr.bf16.mxu1 (!%p3158_p8), %v3670_v21  ;;  %v3678_v26 = vld [vmem:[%s4297_s8 + $0x20] ss:$16 sps:$4 sm:$0xff] (!%p3158_p8)  }
 0x840   : > { %v2197_v32 = vmul.f32 %v2193_v28, %v2138_v9  ;;  %v2199_v33 = vmul.f32 %v2195_v29, %v2179_v10  ;;  %v3679_v27 = vld [vmem:[%s4297_s8 + $0x28] ss:$16 sps:$4 sm:$0xff] (!%p3158_p8)  }
 0x841   : > { %v2198_v34 = vmul.f32 %v2194_v30, %v2140_v13  ;;  %v2200_v35 = vmul.f32 %v2196_v31, %v2181_v14 }
 0x842   : > { %v2201_v36 = vadd.f32 %v2197_v32, %v2138_v9  ;;  %v2203_v17 = vadd.f32 %v2199_v33, %v2179_v10  ;;  %v3680_v32 = vld [vmem:[%s4297_s8 + $0x44] ss:$16 sps:$4 sm:$0xff] (!%p3158_p8)   ;;  %v3682_v33 = vld [vmem:[%s4297_s8 + $0x4c] ss:$16 sps:$4 sm:$0xff] (!%p3158_p8)  }
 0x843   : > { %v2202_v37 = vadd.f32 %v2198_v34, %v2140_v13  ;;  %v2204_v38 = vadd.f32 %v2200_v35, %v2181_v14  ;;  %v3684_v34 = vld [vmem:[%s4297_s8 + $0x40] ss:$16 sps:$4 sm:$0xff] (!%p3158_p8)   ;;  %v3685_v35 = vld [vmem:[%s4297_s8 + $0x48] ss:$16 sps:$4 sm:$0xff] (!%p3158_p8)  }
 0x844   : > { %v2205_v39 = vmul.f32 0.7978846, %v2201_v36  ;;  %v2207_v42 = vmul.f32 0.7978846, %v2203_v17  ;;  %v3686_v36 = vld [vmem:[%s4297_s8 + $0x64] ss:$16 sps:$4 sm:$0xff] (!%p3158_p8)  }
 0x845   : > { %v2206_v40 = vmul.f32 0.7978846, %v2202_v37  ;;  %v2208_v41 = vmul.f32 0.7978846, %v2204_v38  ;;  %v3688_v17 = vld [vmem:[%s4297_s8 + $0x6c] ss:$16 sps:$4 sm:$0xff] (!%p3158_p8)  }
 0x846   : > { %3658 = vtanh.f32 %v2205_v39  ;;  %v3690_v37 = vld [vmem:[%s4297_s8 + $0x60] ss:$16 sps:$4 sm:$0xff] (!%p3158_p8)   ;;  %v3691_v38 = vld [vmem:[%s4297_s8 + $0x68] ss:$16 sps:$4 sm:$0xff] (!%p3158_p8)   ;;  %v3692_v39 = vld [vmem:[%s4297_s8 + $0x84] ss:$16 sps:$4 sm:$0xff] (!%p3158_p8)  }
 0x847   : > { %3660 = vtanh.f32 %v2206_v40  ;;  %v3694_v40 = vld [vmem:[%s4297_s8 + $0x8c] ss:$16 sps:$4 sm:$0xff] (!%p3158_p8)  }
 0x848   : > { %3662 = vtanh.f32 %v2208_v41  ;;  %v3696_v41 = vld [vmem:[%s4297_s8 + $0x80] ss:$16 sps:$4 sm:$0xff] (!%p3158_p8)  }
 0x849   : > { %3664 = vtanh.f32 %v2207_v42  ;;  %v3697_v42 = vld [vmem:[%s4297_s8 + $0x88] ss:$16 sps:$4 sm:$0xff] (!%p3158_p8)  }
 0x850   : > { %v3659_v44 = vpop.eup %3658 }
 0x851   : > { %v3661_v45 = vpop.eup %3660  ;;  %v2213_v47 = vadd.f32 1.0, %v3659_v44  ;;  %v3698_v44 = vld [vmem:[%s4297_s8 + $0xa4] ss:$16 sps:$4 sm:$0xff] (!%p3158_p8)  }
 0x852   : > { %v3663_v48 = vpop.eup %3662  ;;  %v2214_v50 = vadd.f32 1.0, %v3661_v45  ;;  %v3700_v45 = vld [vmem:[%s4297_s8 + $0xac] ss:$16 sps:$4 sm:$0xff] (!%p3158_p8)  }
 0x853   : > { %v3665_v51 = vpop.eup %3664  ;;  %v2216_v52 = vadd.f32 1.0, %v3663_v48  ;;  %v2217_v54 = vmul.f32 %v2213_v47, %v2185_v46  ;;  %v3702_v46 = vld [vmem:[%s4297_s8 + $0xa0] ss:$16 sps:$4 sm:$0xff] (!%p3158_p8)   ;;  %v3703_v47 = vld [vmem:[%s4297_s8 + $0xa8] ss:$16 sps:$4 sm:$0xff] (!%p3158_p8)  }
 0x854   : > { %v2218_v55 = vmul.f32 %v2214_v50, %v2186_v49  ;;  %v2215_v57 = vadd.f32 1.0, %v3665_v51  ;;  %v3704_v48 = vld [vmem:[%s4297_s8 + $0xc4] ss:$16 sps:$4 sm:$0xff] (!%p3158_p8)   ;;  %v3706_v49 = vld [vmem:[%s4297_s8 + $0xcc] ss:$16 sps:$4 sm:$0xff] (!%p3158_p8)   ;;  %v3761_v50 = vmov (!%p3158_p8), 0  }
 0x855   : > { %v2220_v58 = vmul.f32 %v2216_v52, %v2188_v53  ;;  %v2221_v62 = vpack.c.bf16 %v2217_v54, %v2217_v54  ;;  %v3708_v51 = vld [vmem:[%s4297_s8 + $0xc0] ss:$16 sps:$4 sm:$0xff] (!%p3158_p8)   ;;  %v3709_v53 = vld [vmem:[%s4297_s8 + $0xc8] ss:$16 sps:$4 sm:$0xff] (!%p3158_p8)   ;;  %v3710_v52 = vld [vmem:[%s4297_s8 + $0xe4] ss:$16 sps:$4 sm:$0xff] (!%p3158_p8)  }
 0x856   : > { %v2222_v59 = vpack.c.bf16 %v2218_v55, %v2218_v55  ;;  %v2219_v60 = vmul.f32 %v2215_v57, %v2187_v56  ;;  %v3712_v54 = vld [vmem:[%s4297_s8 + $0xec] ss:$16 sps:$4 sm:$0xff] (!%p3158_p8)   ;;  %v3714_v55 = vld [vmem:[%s4297_s8 + $0xe0] ss:$16 sps:$4 sm:$0xff] (!%p3158_p8)   ;;  %v3715_v56 = vld [vmem:[%s4297_s8 + $0xe8] ss:$16 sps:$4 sm:$0xff] (!%p3158_p8)  }
 0x857   : > { %v2224_v61 = vpack.c.bf16 %v2220_v58, %v2220_v58 }
 0x858   : > { %2517 = vmatprep.mubr.bf16.mxu0 %v2222_v59  ;;  %v2223_v63 = vpack.c.bf16 %v2219_v60, %v2219_v60  ;;  %v2571_v60 = vld [vmem:[%s4296_s7] sm:$0x3] (!%p3158_p8) }
 0x859   : > { %2557 = vmatprep.mubr.bf16.mxu1 %v2224_v61  ;;  %2518 = vmatmul.mubr.bf16.vlgmr.msra.gmra.mrb[52].mxu0 %v2221_v62  ;;  %v2586_v61 = vrot.slane (!%p3158_p8), %v2571_v60, %v3907_v16  ;;  %v2591_v0 = vrot.slane (!%p3158_p8), %v2571_v60, %v3913_v18 }
 0x85a   : > { %2558 = vmatmul.mubr.bf16.vlgmr.msra.gmra.mrb[52].mxu1 %v2223_v63  ;;  %2809 = vmatpush1.bf16.msra.mxu0 (!%p3158_p8), %v3672_v22 }
 0x85b   : > { %2810 = vmatprep.subr.bf16.mxu0 (!%p3158_p8), %v3674_v23  ;;  %2840 = vmatprep.mubr.bf16.mxu0 (!%p3158_p8), %v3761_v50 }
 0x85c   : > { %2881 = vmatprep.mubr.bf16.mxu1 (!%p3158_p8), %v3761_v50 }
 0x85e   : > { %2811 = vmatpush1.bf16.msra.mxu0 (!%p3158_p8), %v3678_v26 }
 0x85f   : > { %2812 = vmatprep.subr.bf16.mxu0 (!%p3158_p8), %v3680_v32 }
 0x862   : > { %2813 = vmatpush1.bf16.msra.mxu0 (!%p3158_p8), %v3684_v34 }
 0x863   : > { %2814 = vmatprep.subr.bf16.mxu0 (!%p3158_p8), %v3686_v36 }
 0x866   : > { %2815 = vmatpush1.bf16.msra.mxu0 (!%p3158_p8), %v3690_v37 }
 0x867   : > { %2816 = vmatprep.subr.bf16.mxu0 (!%p3158_p8), %v3692_v39 }
 0x86a   : > { %2817 = vmatpush1.bf16.msra.mxu0 (!%p3158_p8), %v3696_v41 }
 0x86b   : > { %2818 = vmatprep.subr.bf16.mxu0 (!%p3158_p8), %v3698_v44 }
 0x86e   : > { %2819 = vmatpush1.bf16.msra.mxu0 (!%p3158_p8), %v3702_v46 }
 0x86f   : > { %2820 = vmatprep.subr.bf16.mxu0 (!%p3158_p8), %v3704_v48 }
 0x872   : > { %2821 = vmatpush1.bf16.msra.mxu0 (!%p3158_p8), %v3708_v51 }
 0x873   : > { %2822 = vmatprep.subr.bf16.mxu0 (!%p3158_p8), %v3710_v52 }
 0x876   : > { %2823 = vmatpush1.bf16.msra.mxu0 (!%p3158_p8), %v3714_v55 }
 0x92c   : > { %v3277_v1 = vpop.f32.mrb[52].mxu0 }
 0x92d   : > { %v3299_v4 = vpop.f32.mrb[52].mxu1  ;;  %v3278_v5 = vpop.f32.mrb[53].mxu0 }
 0x92e   : > { %v3279_v6 = vadd.f32 %v3278_v5, %v3277_v1  ;;  %v3300_v7 = vpop.f32.mrb[53].mxu1  ;;  %v3280_v9 = vpop.f32.mrb[54].mxu0 }
 0x92f   : > { %v3301_v10 = vadd.f32 %v3300_v7, %v3299_v4  ;;  %v3302_v11 = vpop.f32.mrb[54].mxu1  ;;  %v3281_v12 = vpop.f32.mrb[55].mxu0  ;;  %v2626_v4 = vld [vmem:[%s4298_s9] sm:$0xf] (!%p3158_p8) }
 0x930   : > { %v2520_v13 = vadd.f32 %v3279_v6, %v2292_v3  ;;  %v3303_v14 = vpop.f32.mrb[55].mxu1  ;;  %2570 = sbr.rel (%p3158_p8) target bundleno = 2887 (0xb47), region = 68  ;;  %v2631_v5 = vrot.slane (!%p3158_p8), %v2626_v4, %v3907_v16  ;;  %v2639_v6 = vrot.slane (!%p3158_p8), %v2626_v4, %v4112_v8  ;;  %v2635_v7 = vrot.slane (!%p3158_p8), %v2626_v4, %v3913_v18 }
 0x931   : > { %v2643_v9 = vrot.slane (!%p3158_p8), %v2626_v4, %v4115_v25 }
 0x932   : > { %v2560_v19 = vadd.f32 %v3301_v10, %v2520_v13 }
 0x934   : > { %v2565_v20 = vadd.f32 %v2560_v19, %v4075_v43  ;;  %v3673_v43 = vld [vmem:[%s4297_s8 + $0x8] ss:$16 sps:$4 sm:$0xff] (!%p3158_p8)  }
 0x935   : > { %2850 = vmatpush1.bf16.msra.mxu1 (!%p3158_p8), %v3673_v43 }
 0x936   : > { %2566 = vst [vmem:[#allocation2] sm:$0xff] %v2565_v20  ;;  %2572 = vadd.xlane.f32.xlu0 (!%p3158_p8), %v2565_v20  ;;  %2851 = vmatprep.subr.bf16.mxu1 (!%p3158_p8), %v3676_v24 }
 0x939   : > { %2852 = vmatpush1.bf16.msra.mxu1 %v3679_v27 }
 0x93a   : > { %2853 = vmatprep.subr.bf16.mxu1 %v3682_v33 }
 0x93d   : > { %2854 = vmatpush1.bf16.msra.mxu1 %v3685_v35 }
 0x93e   : > { %2855 = vmatprep.subr.bf16.mxu1 %v3688_v17 }
 0x941   : > { %2856 = vmatpush1.bf16.msra.mxu1 %v3691_v38 }
 0x942   : > { %2857 = vmatprep.subr.bf16.mxu1 %v3694_v40 }
 0x945   : > { %2858 = vmatpush1.bf16.msra.mxu1 %v3697_v42 }
 0x946   : > { %2859 = vmatprep.subr.bf16.mxu1 %v3700_v45 }
 0x949   : > { %2860 = vmatpush1.bf16.msra.mxu1 %v3703_v47 }
 0x94a   : > { %2861 = vmatprep.subr.bf16.mxu1 %v3706_v49 }
 0x94d   : > { %2862 = vmatpush1.bf16.msra.mxu1 %v3709_v53 }
 0x94e   : > { %2863 = vmatprep.subr.bf16.mxu1 %v3712_v54 }
 0x951   : > { %2864 = vmatpush1.bf16.msra.mxu1 %v3715_v56 }
 0x9c3   : > { %v2573_v28 = vpop.xlane.xlu0 %2572 }
 0x9c4   : > { %v2574_v29 = vmul.f32 0.0078125, %v2573_v28 }
 0x9c6   : > { %v2575_v30 = vsub.f32 %v2565_v20, %v2574_v29 }
 0x9c8   : > { %v2576_v31 = vmul.f32 %v2575_v30, %v2575_v30 }
 0x9ca   : > { %2577 = vadd.xlane.f32.xlu0 %v2576_v31 }
 0xa57   : > { %v2578_v57 = vpop.xlane.xlu0 %2577 }
 0xa58   : > { %v2579_v58 = vmul.f32 0.0078125, %v2578_v57 }
 0xa5a   : > { %v2580_v59 = vadd.f32 1e-06, %v2579_v58 }
 0xa5c   : > { %3716 = vrsqrt.f32 %v2580_v59 }
 0xa66   : > { %v3717_v62 = vpop.eup %3716 }
 0xa67   : > { %v2582_v63 = vmul.f32 %v3717_v62, %v2575_v30 }
 0xa69   : > { %v2587_v1 = vmul.f32 %v2586_v61, %v2582_v63 }
 0xa6b   : > { %v2592_v2 = vadd.f32 %v2591_v0, %v2587_v1 }
 0xa6d   : > { %v2593_v3 = vpack.c.bf16 %v2592_v2, %v2592_v2 }
 0xa6f   : > { %2841 = vmatmul.mubr.bf16.vlgmr.msra.gmra.mrb[0].mxu0 %v2593_v3  ;;  %2882 = vmatmul.mubr.bf16.vlgmr.msra.gmra.mrb[0].mxu1 %v2593_v3 }
 0xb42   : > { %v2842_v10 = vpop.f32.mrb[0].mxu0  ;;  %v2883_v11 = vpop.f32.mrb[0].mxu1 }
 0xb43   : > { %v2843_v12 = vadd.f32 %v2842_v10, %v2631_v5  ;;  %v2884_v13 = vadd.f32 %v2883_v11, %v2639_v6  ;;  %v2844_v14 = vpop.f32.mrb[1].mxu0  ;;  %v2885_v19 = vpop.f32.mrb[1].mxu1 }
 0xb44   : > { %v2845_v20 = vadd.f32 %v2844_v14, %v2635_v7  ;;  %v2886_v15 = vadd.f32 %v2885_v19, %v2643_v9  ;;  %v2846_v21 = vpop.f32.mrb[2].mxu0  ;;  %v2887_v22 = vpop.f32.mrb[2].mxu1 }
 0xb45   : > { %2890 = vst [vmem:[%s3887_s17] sm:$0xff] %v2843_v12  ;;  %2892 = vst [vmem:[%s3887_s17 + $0x10] sm:$0xff] %v2884_v13  ;;  %v2847_v16 = vpop.f32.mrb[3].mxu0  ;;  %v2888_v8 = vpop.f32.mrb[3].mxu1 }
 0xb46   : > { %2891 = vst [vmem:[%s3887_s17 + $0x8] sm:$0xff] %v2845_v20  ;;  %2893 = vst [vmem:[%s3887_s17 + $0x18] sm:$0xff] %v2886_v15 }
 0xb47 PF: > { %s4312_s19 = sld [smem:[#allocation5_spill]]  ;;  %s4313_s13 = sld [smem:[#allocation3_spill]] }
 0xb48   : > { %s4314_s14 = sld [smem:[#allocation4_spill]]  ;;  %s4315_s15 = sld [smem:[#allocation6_spill]] }
 0xb49   : > { %s4316_s16 = sld [smem:[#allocation7_spill]] }
 0xb4d   : > { %s20_s17 = sadd.s32 1, %s4312_s19  }
 0xb4e   : > { %p17_p9 = scmp.ge.s32.totalorder %s20_s17, 6  }
 0xb50   :  { %19 = sbr.rel (!%p17_p9) target bundleno = 4 (0x4), region = 116 }

</bundles_post_ra>
